<compile_context>
chip_gen: v5e
topology: v5e:2x2
jax: 0.10.0
libtpu: 0.0.40
codegen_flags: <defaults>
</compile_context>

<pallas_src>
import jax
import jax.numpy as jnp
from jax.experimental import pallas as pl
from jax.experimental.pallas import tpu as pltpu


def decoder_kernel(y_ref, enc_ref, h0_ref, c0_ref,
                   w_att_ref, w_x_ref, w_ro_ref, w_rh_ref, b_ref,
                   w_comb_h_ref, w_comb_a_ref,
                   out_ref, xproj_ref):
    T, B, E = y_ref.shape
    _, S, H2 = enc_ref.shape
    H = h0_ref.shape[-1]
    G = 4 * H

    # ---- one-time, loop-invariant work (hoisted out of the recurrence) -------
    # Input-side gate projection for ALL timesteps: one lane-dense (T*B, E)@(E, 4H)
    # bf16 matmul, bias pre-folded, written once to VMEM scratch.
    y_all = y_ref[...].reshape(T * B, E).astype(jnp.bfloat16)
    xproj = jnp.dot(y_all, w_x_ref[...], preferred_element_type=jnp.float32)
    xproj_ref[...] = (xproj + b_ref[...]).reshape(T, B, G)

    # enc_hiddens_proj = att_projection(enc_hiddens): single flattened bf16 MXU matmul.
    enc = enc_ref[...]                                            # (B, S, 2H) f32 (for a_t)
    proj = jnp.dot(enc.reshape(B * S, H2).astype(jnp.bfloat16), w_att_ref[...],
                   preferred_element_type=jnp.float32).reshape(B, S, H)

    w_ro = w_ro_ref[...]            # (H, 4H) bf16: recurrent weights for o_prev
    w_rh = w_rh_ref[...]            # (H, 4H) bf16: recurrent weights for h
    w_comb_h = w_comb_h_ref[...]    # (H, H)  bf16
    w_comb_a = w_comb_a_ref[...]    # (2H, H) bf16

    # ---- recurrent step ------------------------------------------------------
    def step(t, carry):
        h, c, o_prev = carry

        # LSTMCell on Ybar_t = [Y_t, o_prev]: fused full-width (B, 4H) gate tensor,
        # only 2 small MXU matmuls on the recurrence critical path.
        gates = (xproj_ref[t]
                 + jnp.dot(o_prev.astype(jnp.bfloat16), w_ro,
                           preferred_element_type=jnp.float32)
                 + jnp.dot(h.astype(jnp.bfloat16), w_rh,
                           preferred_element_type=jnp.float32))
        # PyTorch LSTMCell gate order: i, f, g, o (static lane slices of 4H=128).
        i_g = jax.nn.sigmoid(gates[:, 0 * H:1 * H])
        f_g = jax.nn.sigmoid(gates[:, 1 * H:2 * H])
        g_g = jnp.tanh(gates[:, 2 * H:3 * H])
        o_g = jax.nn.sigmoid(gates[:, 3 * H:4 * H])
        c_new = f_g * c + i_g * g_g
        h_new = o_g * jnp.tanh(c_new)

        # Attention: e_t = bmm(enc_proj, h); softmax; a_t = bmm(alpha, enc).
        # Broadcast+reduce is the right regime at S=8/H=32 (couple of vregs);
        # TODO(synk): switch to MXU batched matmuls at production S/H.
        e_t = jnp.sum(proj * h_new[:, None, :], axis=-1)          # (B, S)
        m = jnp.max(e_t, axis=1, keepdims=True)
        p = jnp.exp(e_t - m)
        denom = jnp.sum(p, axis=1, keepdims=True)
        inv = pl.reciprocal(denom, approx=True)                   # EUP slot
        inv = inv * (2.0 - denom * inv)                           # one Newton step
        alpha = p * inv                                           # softmax(dim=1)
        a_t = jnp.sum(alpha[:, :, None] * enc, axis=1)            # (B, 2H)

        # Combined output projection on U_t = [h_new, a_t] (split bf16 matmul) + tanh.
        v_t = (jnp.dot(h_new.astype(jnp.bfloat16), w_comb_h,
                       preferred_element_type=jnp.float32)
               + jnp.dot(a_t.astype(jnp.bfloat16), w_comb_a,
                         preferred_element_type=jnp.float32))
        o_t = jnp.tanh(v_t)
        # TODO(synk): nn.Dropout is eval-mode identity here (no in-kernel RNG applied).

        out_ref[t] = o_t.astype(out_ref.dtype)   # VMEM store; HBM writeback happens once
        return (h_new, c_new, o_t)

    h0 = h0_ref[...]
    # T is small & static -> unroll for LLO scheduler visibility (re-sweep at larger T).
    jax.lax.fori_loop(0, T, step, (h0, c0_ref[...], jnp.zeros_like(h0)), unroll=True)


def decoder_forward_pallas(Y, enc_hiddens, h0, c0, params):
    T, B, E = Y.shape
    _, S, H2 = enc_hiddens.shape
    H = h0.shape[-1]
    assert H2 == 2 * H
    G = 4 * H

    # PyTorch Linear/LSTMCell weights are (out, in); kernel uses (in, out) layouts.
    # All matmul weights are cast to bf16 (f32 accumulation in-kernel); bias stays f32.
    w_ih_t = params["W_ih"].T                               # (E+H, 4H), gate order [i,f,g,o]
    w_x_full = w_ih_t[:E].astype(jnp.bfloat16)              # (E, 4H)   Y_t part
    w_o_full = w_ih_t[E:].astype(jnp.bfloat16)              # (H, 4H)   o_prev part
    w_h_full = params["W_hh"].T.astype(jnp.bfloat16)        # (H, 4H)
    bias = (params["b_ih"] + params["b_hh"]).reshape(1, G)  # pre-summed, f32

    w_att_k = params["W_att"].T.astype(jnp.bfloat16)        # (2H, H)
    w_comb_t = params["W_comb"].T                           # (3H, H)
    w_comb_h = w_comb_t[:H].astype(jnp.bfloat16)            # (H, H)
    w_comb_a = w_comb_t[H:].astype(jnp.bfloat16)            # (2H, H)

    grid_spec = pltpu.PrefetchScalarGridSpec(
        num_scalar_prefetch=0,
        grid=(1,),                              # single invocation; T loop is in-kernel
        in_specs=[
            pl.BlockSpec((T, B, E), lambda i: (0, 0, 0)),      # Y (whole sequence)
            pl.BlockSpec((B, S, H2), lambda i: (0, 0, 0)),     # enc_hiddens
            pl.BlockSpec((B, H), lambda i: (0, 0)),            # h0
            pl.BlockSpec((B, H), lambda i: (0, 0)),            # c0
            pl.BlockSpec((H2, H), lambda i: (0, 0)),           # W_att^T (bf16)
            pl.BlockSpec((E, G), lambda i: (0, 0)),            # W_ih^T Y part (bf16)
            pl.BlockSpec((H, G), lambda i: (0, 0)),            # W_ih^T o_prev part (bf16)
            pl.BlockSpec((H, G), lambda i: (0, 0)),            # W_hh^T (bf16)
            pl.BlockSpec((1, G), lambda i: (0, 0)),            # fused bias (f32)
            pl.BlockSpec((H, H), lambda i: (0, 0)),            # W_comb^T h part (bf16)
            pl.BlockSpec((2 * H, H), lambda i: (0, 0)),        # W_comb^T a_t part (bf16)
        ],
        out_specs=pl.BlockSpec((T, B, H), lambda i: (0, 0, 0)),  # one-shot writeback
        scratch_shapes=[pltpu.VMEM((T, B, G), jnp.float32)],     # hoisted X_proj
    )
    return pl.pallas_call(
        decoder_kernel,
        out_shape=jax.ShapeDtypeStruct((T, B, H), jnp.float32),
        grid_spec=grid_spec,
        # Production shapes: tile over B/T, mark batch axis "parallel" (v7x 2 TCs),
        # set vmem_limit_bytes, and make the output last dim a multiple of 128.
        compiler_params=pltpu.CompilerParams(dimension_semantics=("arbitrary",)),
    )(Y, enc_hiddens, h0, c0,
      w_att_k, w_x_full, w_o_full, w_h_full, bias, w_comb_h, w_comb_a)


def decoder_forward_ref(Y, enc, h0, c0, p):
    """Pure-JAX f32 reference mirroring the PyTorch forward (eval-mode dropout, no
    masking — the provided module's step() never uses enc_masks)."""
    proj = jnp.einsum("bsk,kh->bsh", enc, p["W_att"].T)

    def step(carry, y_t):
        h, c, o_prev = carry
        x = jnp.concatenate([y_t, o_prev], axis=-1)
        gates = x @ p["W_ih"].T + p["b_ih"] + h @ p["W_hh"].T + p["b_hh"]
        i, f, g, o = jnp.split(gates, 4, axis=-1)
        i, f, g, o = jax.nn.sigmoid(i), jax.nn.sigmoid(f), jnp.tanh(g), jax.nn.sigmoid(o)
        c_new = f * c + i * g
        h_new = o * jnp.tanh(c_new)
        e_t = jnp.einsum("bsh,bh->bs", proj, h_new)
        alpha = jax.nn.softmax(e_t, axis=1)
        a_t = jnp.einsum("bs,bsk->bk", alpha, enc)
        u = jnp.concatenate([h_new, a_t], axis=-1)
        o_t = jnp.tanh(u @ p["W_comb"].T)
        return (h_new, c_new, o_t), o_t

    _, outs = jax.lax.scan(step, (h0, c0, jnp.zeros_like(h0)), Y)
    return outs


if __name__ == "__main__":
    # Small shapes implied by the module's forward.
    B, S, E, H, V = 4, 8, 16, 32, 40
    TGT_LEN = 9            # forward drops the last row -> T = 8 steps
    T = TGT_LEN - 1

    key = jax.random.PRNGKey(0)
    keys = jax.random.split(key, 12)

    # Deterministic parameter init (shapes per nn.Module __init__).
    params = {
        "embed":  0.1 * jax.random.normal(keys[0], (V, E), jnp.float32),
        "W_att":  0.1 * jax.random.normal(keys[1], (H, 2 * H), jnp.float32),      # Linear(2H -> H)
        "W_comb": 0.1 * jax.random.normal(keys[2], (H, 3 * H), jnp.float32),      # Linear(3H -> H)
        "W_ih":   0.1 * jax.random.normal(keys[3], (4 * H, E + H), jnp.float32),  # LSTMCell
        "W_hh":   0.1 * jax.random.normal(keys[4], (4 * H, H), jnp.float32),
        "b_ih":   0.1 * jax.random.normal(keys[5], (4 * H,), jnp.float32),
        "b_hh":   0.1 * jax.random.normal(keys[6], (4 * H,), jnp.float32),
    }

    # Inputs.
    enc_hiddens = jax.random.normal(keys[7], (B, S, 2 * H), jnp.float32)
    enc_masks = jnp.zeros((B, S), jnp.float32)  # unused: the module's step() never applies it
    target_padded = jax.random.randint(keys[8], (TGT_LEN, B), 0, V)
    h0 = jax.random.normal(keys[9], (B, H), jnp.float32)
    c0 = jax.random.normal(keys[10], (B, H), jnp.float32)

    # Glue: drop last target row, embedding lookup (gather) in plain JAX.
    tgt = target_padded[:-1]                            # (T, B)
    Y = jnp.take(params["embed"], tgt, axis=0)          # (T, B, E)

    out = decoder_forward_pallas(Y, enc_hiddens, h0, c0, params)
    out = jax.block_until_ready(out)

    ref = decoder_forward_ref(Y, enc_hiddens, h0, c0, params)
    assert out.shape == (T, B, H)
    # Tolerance loosened for bf16 MXU operands (f32 accumulation kept in-kernel).
    assert jnp.allclose(out, ref, atol=3e-2, rtol=3e-2), float(jnp.max(jnp.abs(out - ref)))

    print("KERNEL_OK")
</pallas_src>

<mosaic_0001>
module attributes {stable_mosaic.version = 11 : i64} {
  func.func @decoder_kernel(%arg0: i32, %arg1: memref<8x4x16xf32, #tpu.memory_space<vmem>>, %arg2: memref<4x8x64xf32, #tpu.memory_space<vmem>>, %arg3: memref<4x32xf32, #tpu.memory_space<vmem>>, %arg4: memref<4x32xf32, #tpu.memory_space<vmem>>, %arg5: memref<64x32xbf16, #tpu.memory_space<vmem>>, %arg6: memref<16x128xbf16, #tpu.memory_space<vmem>>, %arg7: memref<32x128xbf16, #tpu.memory_space<vmem>>, %arg8: memref<32x128xbf16, #tpu.memory_space<vmem>>, %arg9: memref<1x128xf32, #tpu.memory_space<vmem>>, %arg10: memref<32x32xbf16, #tpu.memory_space<vmem>>, %arg11: memref<64x32xbf16, #tpu.memory_space<vmem>>, %arg12: memref<8x4x32xf32, #tpu.memory_space<vmem>>, %arg13: memref<8x4x128xf32, #tpu.memory_space<vmem>>) attributes {dimension_semantics = [#tpu.dimension_semantics<arbitrary>], iteration_bounds = array<i64: 1>, scalar_prefetch = 0 : i64, scratch_operands = 1 : i64, tpu.core_type = #tpu.core_type<tc>, window_params = [{pipeline_mode = #tpu.pipeline_mode<synchronous>, transform_indices = @transform_0, window_bounds = array<i64: 8, 4, 16>}, {pipeline_mode = #tpu.pipeline_mode<synchronous>, transform_indices = @transform_1, window_bounds = array<i64: 4, 8, 64>}, {pipeline_mode = #tpu.pipeline_mode<synchronous>, transform_indices = @transform_2, window_bounds = array<i64: 4, 32>}, {pipeline_mode = #tpu.pipeline_mode<synchronous>, transform_indices = @transform_3, window_bounds = array<i64: 4, 32>}, {pipeline_mode = #tpu.pipeline_mode<synchronous>, transform_indices = @transform_4, window_bounds = array<i64: 64, 32>}, {pipeline_mode = #tpu.pipeline_mode<synchronous>, transform_indices = @transform_5, window_bounds = array<i64: 16, 128>}, {pipeline_mode = #tpu.pipeline_mode<synchronous>, transform_indices = @transform_6, window_bounds = array<i64: 32, 128>}, {pipeline_mode = #tpu.pipeline_mode<synchronous>, transform_indices = @transform_7, window_bounds = array<i64: 32, 128>}, {pipeline_mode = #tpu.pipeline_mode<synchronous>, transform_indices = @transform_8, window_bounds = array<i64: 1, 128>}, {pipeline_mode = #tpu.pipeline_mode<synchronous>, transform_indices = @transform_9, window_bounds = array<i64: 32, 32>}, {pipeline_mode = #tpu.pipeline_mode<synchronous>, transform_indices = @transform_10, window_bounds = array<i64: 64, 32>}, {pipeline_mode = #tpu.pipeline_mode<synchronous>, transform_indices = @transform_11, window_bounds = array<i64: 8, 4, 32>}]} {
    %c0 = arith.constant 0 : index
    %c0_0 = arith.constant 0 : index
    %c0_1 = arith.constant 0 : index
    %0 = vector.load %arg1[%c0, %c0_0, %c0_1] : memref<8x4x16xf32, #tpu.memory_space<vmem>>, vector<8x4x16xf32>
    %1 = vector.shape_cast %0 : vector<8x4x16xf32> to vector<32x16xf32>
    %2 = arith.truncf %1 : vector<32x16xf32> to vector<32x16xbf16>
    %c0_2 = arith.constant 0 : index
    %c0_3 = arith.constant 0 : index
    %3 = vector.load %arg6[%c0_2, %c0_3] : memref<16x128xbf16, #tpu.memory_space<vmem>>, vector<16x128xbf16>
    %cst = arith.constant dense<0.000000e+00> : vector<32x128xf32>
    %4 = tpu.matmul %2, %3, %cst {dimension_numbers = #tpu.dot_dimension_numbers<[1], [0], [0], [1], [0, 0, 1, 1], [], []>} : vector<32x16xbf16>, vector<16x128xbf16>, vector<32x128xf32> -> vector<32x128xf32>
    %c0_4 = arith.constant 0 : index
    %c0_5 = arith.constant 0 : index
    %5 = vector.load %arg9[%c0_4, %c0_5] : memref<1x128xf32, #tpu.memory_space<vmem>>, vector<1x128xf32>
    %6 = vector.broadcast %5 : vector<1x128xf32> to vector<32x128xf32>
    %7 = arith.addf %4, %6 : vector<32x128xf32>
    %8 = vector.shape_cast %7 : vector<32x128xf32> to vector<8x4x128xf32>
    %c0_6 = arith.constant 0 : index
    %c0_7 = arith.constant 0 : index
    %c0_8 = arith.constant 0 : index
    %9 = vector.load %arg13[%c0_6, %c0_7, %c0_8] : memref<8x4x128xf32, #tpu.memory_space<vmem>>, vector<8x4x128xf32>
    tpu.vector_store %arg13[%c0_6, %c0_7, %c0_8], %8 {strides = array<i32>} : memref<8x4x128xf32, #tpu.memory_space<vmem>>, vector<8x4x128xf32>,
    %c0_9 = arith.constant 0 : index
    %c0_10 = arith.constant 0 : index
    %c0_11 = arith.constant 0 : index
    %10 = vector.load %arg2[%c0_9, %c0_10, %c0_11] : memref<4x8x64xf32, #tpu.memory_space<vmem>>, vector<4x8x64xf32>
    %11 = vector.shape_cast %10 : vector<4x8x64xf32> to vector<32x64xf32>
    %12 = arith.truncf %11 : vector<32x64xf32> to vector<32x64xbf16>
    %c0_12 = arith.constant 0 : index
    %c0_13 = arith.constant 0 : index
    %13 = vector.load %arg5[%c0_12, %c0_13] : memref<64x32xbf16, #tpu.memory_space<vmem>>, vector<64x32xbf16>
    %cst_14 = arith.constant dense<0.000000e+00> : vector<32x32xf32>
    %14 = tpu.matmul %12, %13, %cst_14 {dimension_numbers = #tpu.dot_dimension_numbers<[1], [0], [0], [1], [0, 0, 1, 1], [], []>} : vector<32x64xbf16>, vector<64x32xbf16>, vector<32x32xf32> -> vector<32x32xf32>
    %15 = vector.shape_cast %14 : vector<32x32xf32> to vector<4x8x32xf32>
    %c0_15 = arith.constant 0 : index
    %c0_16 = arith.constant 0 : index
    %16 = vector.load %arg7[%c0_15, %c0_16] : memref<32x128xbf16, #tpu.memory_space<vmem>>, vector<32x128xbf16>
    %c0_17 = arith.constant 0 : index
    %c0_18 = arith.constant 0 : index
    %17 = vector.load %arg8[%c0_17, %c0_18] : memref<32x128xbf16, #tpu.memory_space<vmem>>, vector<32x128xbf16>
    %c0_19 = arith.constant 0 : index
    %c0_20 = arith.constant 0 : index
    %18 = vector.load %arg10[%c0_19, %c0_20] : memref<32x32xbf16, #tpu.memory_space<vmem>>, vector<32x32xbf16>
    %c0_21 = arith.constant 0 : index
    %c0_22 = arith.constant 0 : index
    %19 = vector.load %arg11[%c0_21, %c0_22] : memref<64x32xbf16, #tpu.memory_space<vmem>>, vector<64x32xbf16>
    %c0_23 = arith.constant 0 : index
    %c0_24 = arith.constant 0 : index
    %20 = vector.load %arg3[%c0_23, %c0_24] : memref<4x32xf32, #tpu.memory_space<vmem>>, vector<4x32xf32>
    %c0_25 = arith.constant 0 : index
    %c0_26 = arith.constant 0 : index
    %21 = vector.load %arg4[%c0_25, %c0_26] : memref<4x32xf32, #tpu.memory_space<vmem>>, vector<4x32xf32>
    %cst_27 = arith.constant 0.000000e+00 : f32
    %22 = vector.broadcast %cst_27 : f32 to vector<4x32xf32>
    %c0_i32 = arith.constant 0 : i32
    %23 = arith.index_cast %c0_i32 : i32 to index
    %c0_28 = arith.constant 0 : index
    %c0_29 = arith.constant 0 : index
    %24 = vector.load %arg13[%23, %c0_28, %c0_29] : memref<8x4x128xf32, #tpu.memory_space<vmem>>, vector<1x4x128xf32>
    %25 = vector.shape_cast %24 : vector<1x4x128xf32> to vector<4x128xf32>
    %26 = arith.truncf %22 : vector<4x32xf32> to vector<4x32xbf16>
    %cst_30 = arith.constant dense<0.000000e+00> : vector<4x128xf32>
    %27 = tpu.matmul %26, %16, %cst_30 {dimension_numbers = #tpu.dot_dimension_numbers<[1], [0], [0], [1], [0, 0, 1, 1], [], []>} : vector<4x32xbf16>, vector<32x128xbf16>, vector<4x128xf32> -> vector<4x128xf32>
    %28 = arith.addf %25, %27 : vector<4x128xf32>
    %29 = arith.truncf %20 : vector<4x32xf32> to vector<4x32xbf16>
    %cst_31 = arith.constant dense<0.000000e+00> : vector<4x128xf32>
    %30 = tpu.matmul %29, %17, %cst_31 {dimension_numbers = #tpu.dot_dimension_numbers<[1], [0], [0], [1], [0, 0, 1, 1], [], []>} : vector<4x32xbf16>, vector<32x128xbf16>, vector<4x128xf32> -> vector<4x128xf32>
    %31 = arith.addf %28, %30 : vector<4x128xf32>
    %32 = vector.extract_strided_slice %31 {offsets = [0, 0], sizes = [4, 32], strides = [1, 1]} : vector<4x128xf32> to vector<4x32xf32>
    %33 = arith.negf %32 : vector<4x32xf32>
    %34 = math.exp %33 : vector<4x32xf32>
    %cst_32 = arith.constant 1.000000e+00 : f32
    %35 = vector.broadcast %cst_32 : f32 to vector<4x32xf32>
    %36 = arith.addf %35, %34 : vector<4x32xf32>
    %37 = arith.divf %35, %36 : vector<4x32xf32>
    %38 = vector.extract_strided_slice %31 {offsets = [0, 32], sizes = [4, 32], strides = [1, 1]} : vector<4x128xf32> to vector<4x32xf32>
    %39 = arith.negf %38 : vector<4x32xf32>
    %40 = math.exp %39 : vector<4x32xf32>
    %cst_33 = arith.constant 1.000000e+00 : f32
    %41 = vector.broadcast %cst_33 : f32 to vector<4x32xf32>
    %42 = arith.addf %41, %40 : vector<4x32xf32>
    %43 = arith.divf %41, %42 : vector<4x32xf32>
    %44 = vector.extract_strided_slice %31 {offsets = [0, 64], sizes = [4, 32], strides = [1, 1]} : vector<4x128xf32> to vector<4x32xf32>
    %45 = math.tanh %44 : vector<4x32xf32>
    %46 = vector.extract_strided_slice %31 {offsets = [0, 96], sizes = [4, 32], strides = [1, 1]} : vector<4x128xf32> to vector<4x32xf32>
    %47 = arith.negf %46 : vector<4x32xf32>
    %48 = math.exp %47 : vector<4x32xf32>
    %cst_34 = arith.constant 1.000000e+00 : f32
    %49 = vector.broadcast %cst_34 : f32 to vector<4x32xf32>
    %50 = arith.addf %49, %48 : vector<4x32xf32>
    %51 = arith.divf %49, %50 : vector<4x32xf32>
    %52 = arith.mulf %43, %21 : vector<4x32xf32>
    %53 = arith.mulf %37, %45 : vector<4x32xf32>
    %54 = arith.addf %52, %53 : vector<4x32xf32>
    %55 = math.tanh %54 : vector<4x32xf32>
    %56 = arith.mulf %51, %55 : vector<4x32xf32>
    %57 = vector.shape_cast %56 : vector<4x32xf32> to vector<4x1x32xf32>
    %58 = vector.broadcast %57 : vector<4x1x32xf32> to vector<4x8x32xf32>
    %59 = arith.mulf %15, %58 : vector<4x8x32xf32>
    %cst_35 = arith.constant dense<0.000000e+00> : vector<4x8xf32>
    %60 = vector.multi_reduction <add>, %59, %cst_35 [2] : vector<4x8x32xf32> to vector<4x8xf32>
    %cst_36 = arith.constant dense<0xFF800000> : vector<4xf32>
    %61 = vector.multi_reduction <maximumf>, %60, %cst_36 [1] : vector<4x8xf32> to vector<4xf32>
    %62 = vector.shape_cast %61 : vector<4xf32> to vector<4x1xf32>
    %63 = vector.broadcast %62 : vector<4x1xf32> to vector<4x8xf32>
    %64 = arith.subf %60, %63 : vector<4x8xf32>
    %65 = math.exp %64 : vector<4x8xf32>
    %cst_37 = arith.constant dense<0.000000e+00> : vector<4xf32>
    %66 = vector.multi_reduction <add>, %65, %cst_37 [1] : vector<4x8xf32> to vector<4xf32>
    %67 = vector.shape_cast %66 : vector<4xf32> to vector<4x1xf32>
    %68 = tpu.reciprocal %67 {approx = true} : vector<4x1xf32> -> vector<4x1xf32>
    %69 = arith.mulf %67, %68 : vector<4x1xf32>
    %cst_38 = arith.constant 2.000000e+00 : f32
    %70 = vector.broadcast %cst_38 : f32 to vector<4x1xf32>
    %71 = arith.subf %70, %69 : vector<4x1xf32>
    %72 = arith.mulf %68, %71 : vector<4x1xf32>
    %73 = vector.broadcast %72 : vector<4x1xf32> to vector<4x8xf32>
    %74 = arith.mulf %65, %73 : vector<4x8xf32>
    %75 = vector.shape_cast %74 : vector<4x8xf32> to vector<4x8x1xf32>
    %76 = vector.broadcast %75 : vector<4x8x1xf32> to vector<4x8x64xf32>
    %77 = arith.mulf %76, %10 : vector<4x8x64xf32>
    %cst_39 = arith.constant dense<0.000000e+00> : vector<4x64xf32>
    %78 = vector.multi_reduction <add>, %77, %cst_39 [1] : vector<4x8x64xf32> to vector<4x64xf32>
    %79 = arith.truncf %56 : vector<4x32xf32> to vector<4x32xbf16>
    %cst_40 = arith.constant dense<0.000000e+00> : vector<4x32xf32>
    %80 = tpu.matmul %79, %18, %cst_40 {dimension_numbers = #tpu.dot_dimension_numbers<[1], [0], [0], [1], [0, 0, 1, 1], [], []>} : vector<4x32xbf16>, vector<32x32xbf16>, vector<4x32xf32> -> vector<4x32xf32>
    %81 = arith.truncf %78 : vector<4x64xf32> to vector<4x64xbf16>
    %cst_41 = arith.constant dense<0.000000e+00> : vector<4x32xf32>
    %82 = tpu.matmul %81, %19, %cst_41 {dimension_numbers = #tpu.dot_dimension_numbers<[1], [0], [0], [1], [0, 0, 1, 1], [], []>} : vector<4x64xbf16>, vector<64x32xbf16>, vector<4x32xf32> -> vector<4x32xf32>
    %83 = arith.addf %80, %82 : vector<4x32xf32>
    %84 = math.tanh %83 : vector<4x32xf32>
    %85 = arith.index_cast %c0_i32 : i32 to index
    %c0_42 = arith.constant 0 : index
    %c0_43 = arith.constant 0 : index
    %86 = vector.load %arg12[%85, %c0_42, %c0_43] : memref<8x4x32xf32, #tpu.memory_space<vmem>>, vector<1x4x32xf32>
    %87 = vector.shape_cast %86 : vector<1x4x32xf32> to vector<4x32xf32>
    %88 = vector.shape_cast %84 : vector<4x32xf32> to vector<1x4x32xf32>
    tpu.vector_store %arg12[%85, %c0_42, %c0_43], %88 {strides = array<i32>} : memref<8x4x32xf32, #tpu.memory_space<vmem>>, vector<1x4x32xf32>,
    %c1_i32 = arith.constant 1 : i32
    %89 = arith.index_cast %c1_i32 : i32 to index
    %c0_44 = arith.constant 0 : index
    %c0_45 = arith.constant 0 : index
    %90 = vector.load %arg13[%89, %c0_44, %c0_45] : memref<8x4x128xf32, #tpu.memory_space<vmem>>, vector<1x4x128xf32>
    %91 = vector.shape_cast %90 : vector<1x4x128xf32> to vector<4x128xf32>
    %92 = arith.truncf %84 : vector<4x32xf32> to vector<4x32xbf16>
    %cst_46 = arith.constant dense<0.000000e+00> : vector<4x128xf32>
    %93 = tpu.matmul %92, %16, %cst_46 {dimension_numbers = #tpu.dot_dimension_numbers<[1], [0], [0], [1], [0, 0, 1, 1], [], []>} : vector<4x32xbf16>, vector<32x128xbf16>, vector<4x128xf32> -> vector<4x128xf32>
    %94 = arith.addf %91, %93 : vector<4x128xf32>
    %95 = arith.truncf %56 : vector<4x32xf32> to vector<4x32xbf16>
    %cst_47 = arith.constant dense<0.000000e+00> : vector<4x128xf32>
    %96 = tpu.matmul %95, %17, %cst_47 {dimension_numbers = #tpu.dot_dimension_numbers<[1], [0], [0], [1], [0, 0, 1, 1], [], []>} : vector<4x32xbf16>, vector<32x128xbf16>, vector<4x128xf32> -> vector<4x128xf32>
    %97 = arith.addf %94, %96 : vector<4x128xf32>
    %98 = vector.extract_strided_slice %97 {offsets = [0, 0], sizes = [4, 32], strides = [1, 1]} : vector<4x128xf32> to vector<4x32xf32>
    %99 = arith.negf %98 : vector<4x32xf32>
    %100 = math.exp %99 : vector<4x32xf32>
    %cst_48 = arith.constant 1.000000e+00 : f32
    %101 = vector.broadcast %cst_48 : f32 to vector<4x32xf32>
    %102 = arith.addf %101, %100 : vector<4x32xf32>
    %103 = arith.divf %101, %102 : vector<4x32xf32>
    %104 = vector.extract_strided_slice %97 {offsets = [0, 32], sizes = [4, 32], strides = [1, 1]} : vector<4x128xf32> to vector<4x32xf32>
    %105 = arith.negf %104 : vector<4x32xf32>
    %106 = math.exp %105 : vector<4x32xf32>
    %cst_49 = arith.constant 1.000000e+00 : f32
    %107 = vector.broadcast %cst_49 : f32 to vector<4x32xf32>
    %108 = arith.addf %107, %106 : vector<4x32xf32>
    %109 = arith.divf %107, %108 : vector<4x32xf32>
    %110 = vector.extract_strided_slice %97 {offsets = [0, 64], sizes = [4, 32], strides = [1, 1]} : vector<4x128xf32> to vector<4x32xf32>
    %111 = math.tanh %110 : vector<4x32xf32>
    %112 = vector.extract_strided_slice %97 {offsets = [0, 96], sizes = [4, 32], strides = [1, 1]} : vector<4x128xf32> to vector<4x32xf32>
    %113 = arith.negf %112 : vector<4x32xf32>
    %114 = math.exp %113 : vector<4x32xf32>
    %cst_50 = arith.constant 1.000000e+00 : f32
    %115 = vector.broadcast %cst_50 : f32 to vector<4x32xf32>
    %116 = arith.addf %115, %114 : vector<4x32xf32>
    %117 = arith.divf %115, %116 : vector<4x32xf32>
    %118 = arith.mulf %109, %54 : vector<4x32xf32>
    %119 = arith.mulf %103, %111 : vector<4x32xf32>
    %120 = arith.addf %118, %119 : vector<4x32xf32>
    %121 = math.tanh %120 : vector<4x32xf32>
    %122 = arith.mulf %117, %121 : vector<4x32xf32>
    %123 = vector.shape_cast %122 : vector<4x32xf32> to vector<4x1x32xf32>
    %124 = vector.broadcast %123 : vector<4x1x32xf32> to vector<4x8x32xf32>
    %125 = arith.mulf %15, %124 : vector<4x8x32xf32>
    %cst_51 = arith.constant dense<0.000000e+00> : vector<4x8xf32>
    %126 = vector.multi_reduction <add>, %125, %cst_51 [2] : vector<4x8x32xf32> to vector<4x8xf32>
    %cst_52 = arith.constant dense<0xFF800000> : vector<4xf32>
    %127 = vector.multi_reduction <maximumf>, %126, %cst_52 [1] : vector<4x8xf32> to vector<4xf32>
    %128 = vector.shape_cast %127 : vector<4xf32> to vector<4x1xf32>
    %129 = vector.broadcast %128 : vector<4x1xf32> to vector<4x8xf32>
    %130 = arith.subf %126, %129 : vector<4x8xf32>
    %131 = math.exp %130 : vector<4x8xf32>
    %cst_53 = arith.constant dense<0.000000e+00> : vector<4xf32>
    %132 = vector.multi_reduction <add>, %131, %cst_53 [1] : vector<4x8xf32> to vector<4xf32>
    %133 = vector.shape_cast %132 : vector<4xf32> to vector<4x1xf32>
    %134 = tpu.reciprocal %133 {approx = true} : vector<4x1xf32> -> vector<4x1xf32>
    %135 = arith.mulf %133, %134 : vector<4x1xf32>
    %cst_54 = arith.constant 2.000000e+00 : f32
    %136 = vector.broadcast %cst_54 : f32 to vector<4x1xf32>
    %137 = arith.subf %136, %135 : vector<4x1xf32>
    %138 = arith.mulf %134, %137 : vector<4x1xf32>
    %139 = vector.broadcast %138 : vector<4x1xf32> to vector<4x8xf32>
    %140 = arith.mulf %131, %139 : vector<4x8xf32>
    %141 = vector.shape_cast %140 : vector<4x8xf32> to vector<4x8x1xf32>
    %142 = vector.broadcast %141 : vector<4x8x1xf32> to vector<4x8x64xf32>
    %143 = arith.mulf %142, %10 : vector<4x8x64xf32>
    %cst_55 = arith.constant dense<0.000000e+00> : vector<4x64xf32>
    %144 = vector.multi_reduction <add>, %143, %cst_55 [1] : vector<4x8x64xf32> to vector<4x64xf32>
    %145 = arith.truncf %122 : vector<4x32xf32> to vector<4x32xbf16>
    %cst_56 = arith.constant dense<0.000000e+00> : vector<4x32xf32>
    %146 = tpu.matmul %145, %18, %cst_56 {dimension_numbers = #tpu.dot_dimension_numbers<[1], [0], [0], [1], [0, 0, 1, 1], [], []>} : vector<4x32xbf16>, vector<32x32xbf16>, vector<4x32xf32> -> vector<4x32xf32>
    %147 = arith.truncf %144 : vector<4x64xf32> to vector<4x64xbf16>
    %cst_57 = arith.constant dense<0.000000e+00> : vector<4x32xf32>
    %148 = tpu.matmul %147, %19, %cst_57 {dimension_numbers = #tpu.dot_dimension_numbers<[1], [0], [0], [1], [0, 0, 1, 1], [], []>} : vector<4x64xbf16>, vector<64x32xbf16>, vector<4x32xf32> -> vector<4x32xf32>
    %149 = arith.addf %146, %148 : vector<4x32xf32>
    %150 = math.tanh %149 : vector<4x32xf32>
    %151 = arith.index_cast %c1_i32 : i32 to index
    %c0_58 = arith.constant 0 : index
    %c0_59 = arith.constant 0 : index
    %152 = vector.load %arg12[%151, %c0_58, %c0_59] : memref<8x4x32xf32, #tpu.memory_space<vmem>>, vector<1x4x32xf32>
    %153 = vector.shape_cast %152 : vector<1x4x32xf32> to vector<4x32xf32>
    %154 = vector.shape_cast %150 : vector<4x32xf32> to vector<1x4x32xf32>
    tpu.vector_store %arg12[%151, %c0_58, %c0_59], %154 {strides = array<i32>} : memref<8x4x32xf32, #tpu.memory_space<vmem>>, vector<1x4x32xf32>,
    %c2_i32 = arith.constant 2 : i32
    %155 = arith.index_cast %c2_i32 : i32 to index
    %c0_60 = arith.constant 0 : index
    %c0_61 = arith.constant 0 : index
    %156 = vector.load %arg13[%155, %c0_60, %c0_61] : memref<8x4x128xf32, #tpu.memory_space<vmem>>, vector<1x4x128xf32>
    %157 = vector.shape_cast %156 : vector<1x4x128xf32> to vector<4x128xf32>
    %158 = arith.truncf %150 : vector<4x32xf32> to vector<4x32xbf16>
    %cst_62 = arith.constant dense<0.000000e+00> : vector<4x128xf32>
    %159 = tpu.matmul %158, %16, %cst_62 {dimension_numbers = #tpu.dot_dimension_numbers<[1], [0], [0], [1], [0, 0, 1, 1], [], []>} : vector<4x32xbf16>, vector<32x128xbf16>, vector<4x128xf32> -> vector<4x128xf32>
    %160 = arith.addf %157, %159 : vector<4x128xf32>
    %161 = arith.truncf %122 : vector<4x32xf32> to vector<4x32xbf16>
    %cst_63 = arith.constant dense<0.000000e+00> : vector<4x128xf32>
    %162 = tpu.matmul %161, %17, %cst_63 {dimension_numbers = #tpu.dot_dimension_numbers<[1], [0], [0], [1], [0, 0, 1, 1], [], []>} : vector<4x32xbf16>, vector<32x128xbf16>, vector<4x128xf32> -> vector<4x128xf32>
    %163 = arith.addf %160, %162 : vector<4x128xf32>
    %164 = vector.extract_strided_slice %163 {offsets = [0, 0], sizes = [4, 32], strides = [1, 1]} : vector<4x128xf32> to vector<4x32xf32>
    %165 = arith.negf %164 : vector<4x32xf32>
    %166 = math.exp %165 : vector<4x32xf32>
    %cst_64 = arith.constant 1.000000e+00 : f32
    %167 = vector.broadcast %cst_64 : f32 to vector<4x32xf32>
    %168 = arith.addf %167, %166 : vector<4x32xf32>
    %169 = arith.divf %167, %168 : vector<4x32xf32>
    %170 = vector.extract_strided_slice %163 {offsets = [0, 32], sizes = [4, 32], strides = [1, 1]} : vector<4x128xf32> to vector<4x32xf32>
    %171 = arith.negf %170 : vector<4x32xf32>
    %172 = math.exp %171 : vector<4x32xf32>
    %cst_65 = arith.constant 1.000000e+00 : f32
    %173 = vector.broadcast %cst_65 : f32 to vector<4x32xf32>
    %174 = arith.addf %173, %172 : vector<4x32xf32>
    %175 = arith.divf %173, %174 : vector<4x32xf32>
    %176 = vector.extract_strided_slice %163 {offsets = [0, 64], sizes = [4, 32], strides = [1, 1]} : vector<4x128xf32> to vector<4x32xf32>
    %177 = math.tanh %176 : vector<4x32xf32>
    %178 = vector.extract_strided_slice %163 {offsets = [0, 96], sizes = [4, 32], strides = [1, 1]} : vector<4x128xf32> to vector<4x32xf32>
    %179 = arith.negf %178 : vector<4x32xf32>
    %180 = math.exp %179 : vector<4x32xf32>
    %cst_66 = arith.constant 1.000000e+00 : f32
    %181 = vector.broadcast %cst_66 : f32 to vector<4x32xf32>
    %182 = arith.addf %181, %180 : vector<4x32xf32>
    %183 = arith.divf %181, %182 : vector<4x32xf32>
    %184 = arith.mulf %175, %120 : vector<4x32xf32>
    %185 = arith.mulf %169, %177 : vector<4x32xf32>
    %186 = arith.addf %184, %185 : vector<4x32xf32>
    %187 = math.tanh %186 : vector<4x32xf32>
    %188 = arith.mulf %183, %187 : vector<4x32xf32>
    %189 = vector.shape_cast %188 : vector<4x32xf32> to vector<4x1x32xf32>
    %190 = vector.broadcast %189 : vector<4x1x32xf32> to vector<4x8x32xf32>
    %191 = arith.mulf %15, %190 : vector<4x8x32xf32>
    %cst_67 = arith.constant dense<0.000000e+00> : vector<4x8xf32>
    %192 = vector.multi_reduction <add>, %191, %cst_67 [2] : vector<4x8x32xf32> to vector<4x8xf32>
    %cst_68 = arith.constant dense<0xFF800000> : vector<4xf32>
    %193 = vector.multi_reduction <maximumf>, %192, %cst_68 [1] : vector<4x8xf32> to vector<4xf32>
    %194 = vector.shape_cast %193 : vector<4xf32> to vector<4x1xf32>
    %195 = vector.broadcast %194 : vector<4x1xf32> to vector<4x8xf32>
    %196 = arith.subf %192, %195 : vector<4x8xf32>
    %197 = math.exp %196 : vector<4x8xf32>
    %cst_69 = arith.constant dense<0.000000e+00> : vector<4xf32>
    %198 = vector.multi_reduction <add>, %197, %cst_69 [1] : vector<4x8xf32> to vector<4xf32>
    %199 = vector.shape_cast %198 : vector<4xf32> to vector<4x1xf32>
    %200 = tpu.reciprocal %199 {approx = true} : vector<4x1xf32> -> vector<4x1xf32>
    %201 = arith.mulf %199, %200 : vector<4x1xf32>
    %cst_70 = arith.constant 2.000000e+00 : f32
    %202 = vector.broadcast %cst_70 : f32 to vector<4x1xf32>
    %203 = arith.subf %202, %201 : vector<4x1xf32>
    %204 = arith.mulf %200, %203 : vector<4x1xf32>
    %205 = vector.broadcast %204 : vector<4x1xf32> to vector<4x8xf32>
    %206 = arith.mulf %197, %205 : vector<4x8xf32>
    %207 = vector.shape_cast %206 : vector<4x8xf32> to vector<4x8x1xf32>
    %208 = vector.broadcast %207 : vector<4x8x1xf32> to vector<4x8x64xf32>
    %209 = arith.mulf %208, %10 : vector<4x8x64xf32>
    %cst_71 = arith.constant dense<0.000000e+00> : vector<4x64xf32>
    %210 = vector.multi_reduction <add>, %209, %cst_71 [1] : vector<4x8x64xf32> to vector<4x64xf32>
    %211 = arith.truncf %188 : vector<4x32xf32> to vector<4x32xbf16>
    %cst_72 = arith.constant dense<0.000000e+00> : vector<4x32xf32>
    %212 = tpu.matmul %211, %18, %cst_72 {dimension_numbers = #tpu.dot_dimension_numbers<[1], [0], [0], [1], [0, 0, 1, 1], [], []>} : vector<4x32xbf16>, vector<32x32xbf16>, vector<4x32xf32> -> vector<4x32xf32>
    %213 = arith.truncf %210 : vector<4x64xf32> to vector<4x64xbf16>
    %cst_73 = arith.constant dense<0.000000e+00> : vector<4x32xf32>
    %214 = tpu.matmul %213, %19, %cst_73 {dimension_numbers = #tpu.dot_dimension_numbers<[1], [0], [0], [1], [0, 0, 1, 1], [], []>} : vector<4x64xbf16>, vector<64x32xbf16>, vector<4x32xf32> -> vector<4x32xf32>
    %215 = arith.addf %212, %214 : vector<4x32xf32>
    %216 = math.tanh %215 : vector<4x32xf32>
    %217 = arith.index_cast %c2_i32 : i32 to index
    %c0_74 = arith.constant 0 : index
    %c0_75 = arith.constant 0 : index
    %218 = vector.load %arg12[%217, %c0_74, %c0_75] : memref<8x4x32xf32, #tpu.memory_space<vmem>>, vector<1x4x32xf32>
    %219 = vector.shape_cast %218 : vector<1x4x32xf32> to vector<4x32xf32>
    %220 = vector.shape_cast %216 : vector<4x32xf32> to vector<1x4x32xf32>
    tpu.vector_store %arg12[%217, %c0_74, %c0_75], %220 {strides = array<i32>} : memref<8x4x32xf32, #tpu.memory_space<vmem>>, vector<1x4x32xf32>,
    %c3_i32 = arith.constant 3 : i32
    %221 = arith.index_cast %c3_i32 : i32 to index
    %c0_76 = arith.constant 0 : index
    %c0_77 = arith.constant 0 : index
    %222 = vector.load %arg13[%221, %c0_76, %c0_77] : memref<8x4x128xf32, #tpu.memory_space<vmem>>, vector<1x4x128xf32>
    %223 = vector.shape_cast %222 : vector<1x4x128xf32> to vector<4x128xf32>
    %224 = arith.truncf %216 : vector<4x32xf32> to vector<4x32xbf16>
    %cst_78 = arith.constant dense<0.000000e+00> : vector<4x128xf32>
    %225 = tpu.matmul %224, %16, %cst_78 {dimension_numbers = #tpu.dot_dimension_numbers<[1], [0], [0], [1], [0, 0, 1, 1], [], []>} : vector<4x32xbf16>, vector<32x128xbf16>, vector<4x128xf32> -> vector<4x128xf32>
    %226 = arith.addf %223, %225 : vector<4x128xf32>
    %227 = arith.truncf %188 : vector<4x32xf32> to vector<4x32xbf16>
    %cst_79 = arith.constant dense<0.000000e+00> : vector<4x128xf32>
    %228 = tpu.matmul %227, %17, %cst_79 {dimension_numbers = #tpu.dot_dimension_numbers<[1], [0], [0], [1], [0, 0, 1, 1], [], []>} : vector<4x32xbf16>, vector<32x128xbf16>, vector<4x128xf32> -> vector<4x128xf32>
    %229 = arith.addf %226, %228 : vector<4x128xf32>
    %230 = vector.extract_strided_slice %229 {offsets = [0, 0], sizes = [4, 32], strides = [1, 1]} : vector<4x128xf32> to vector<4x32xf32>
    %231 = arith.negf %230 : vector<4x32xf32>
    %232 = math.exp %231 : vector<4x32xf32>
    %cst_80 = arith.constant 1.000000e+00 : f32
    %233 = vector.broadcast %cst_80 : f32 to vector<4x32xf32>
    %234 = arith.addf %233, %232 : vector<4x32xf32>
    %235 = arith.divf %233, %234 : vector<4x32xf32>
    %236 = vector.extract_strided_slice %229 {offsets = [0, 32], sizes = [4, 32], strides = [1, 1]} : vector<4x128xf32> to vector<4x32xf32>
    %237 = arith.negf %236 : vector<4x32xf32>
    %238 = math.exp %237 : vector<4x32xf32>
    %cst_81 = arith.constant 1.000000e+00 : f32
    %239 = vector.broadcast %cst_81 : f32 to vector<4x32xf32>
    %240 = arith.addf %239, %238 : vector<4x32xf32>
    %241 = arith.divf %239, %240 : vector<4x32xf32>
    %242 = vector.extract_strided_slice %229 {offsets = [0, 64], sizes = [4, 32], strides = [1, 1]} : vector<4x128xf32> to vector<4x32xf32>
    %243 = math.tanh %242 : vector<4x32xf32>
    %244 = vector.extract_strided_slice %229 {offsets = [0, 96], sizes = [4, 32], strides = [1, 1]} : vector<4x128xf32> to vector<4x32xf32>
    %245 = arith.negf %244 : vector<4x32xf32>
    %246 = math.exp %245 : vector<4x32xf32>
    %cst_82 = arith.constant 1.000000e+00 : f32
    %247 = vector.broadcast %cst_82 : f32 to vector<4x32xf32>
    %248 = arith.addf %247, %246 : vector<4x32xf32>
    %249 = arith.divf %247, %248 : vector<4x32xf32>
    %250 = arith.mulf %241, %186 : vector<4x32xf32>
    %251 = arith.mulf %235, %243 : vector<4x32xf32>
    %252 = arith.addf %250, %251 : vector<4x32xf32>
    %253 = math.tanh %252 : vector<4x32xf32>
    %254 = arith.mulf %249, %253 : vector<4x32xf32>
    %255 = vector.shape_cast %254 : vector<4x32xf32> to vector<4x1x32xf32>
    %256 = vector.broadcast %255 : vector<4x1x32xf32> to vector<4x8x32xf32>
    %257 = arith.mulf %15, %256 : vector<4x8x32xf32>
    %cst_83 = arith.constant dense<0.000000e+00> : vector<4x8xf32>
    %258 = vector.multi_reduction <add>, %257, %cst_83 [2] : vector<4x8x32xf32> to vector<4x8xf32>
    %cst_84 = arith.constant dense<0xFF800000> : vector<4xf32>
    %259 = vector.multi_reduction <maximumf>, %258, %cst_84 [1] : vector<4x8xf32> to vector<4xf32>
    %260 = vector.shape_cast %259 : vector<4xf32> to vector<4x1xf32>
    %261 = vector.broadcast %260 : vector<4x1xf32> to vector<4x8xf32>
    %262 = arith.subf %258, %261 : vector<4x8xf32>
    %263 = math.exp %262 : vector<4x8xf32>
    %cst_85 = arith.constant dense<0.000000e+00> : vector<4xf32>
    %264 = vector.multi_reduction <add>, %263, %cst_85 [1] : vector<4x8xf32> to vector<4xf32>
    %265 = vector.shape_cast %264 : vector<4xf32> to vector<4x1xf32>
    %266 = tpu.reciprocal %265 {approx = true} : vector<4x1xf32> -> vector<4x1xf32>
    %267 = arith.mulf %265, %266 : vector<4x1xf32>
    %cst_86 = arith.constant 2.000000e+00 : f32
    %268 = vector.broadcast %cst_86 : f32 to vector<4x1xf32>
    %269 = arith.subf %268, %267 : vector<4x1xf32>
    %270 = arith.mulf %266, %269 : vector<4x1xf32>
    %271 = vector.broadcast %270 : vector<4x1xf32> to vector<4x8xf32>
    %272 = arith.mulf %263, %271 : vector<4x8xf32>
    %273 = vector.shape_cast %272 : vector<4x8xf32> to vector<4x8x1xf32>
    %274 = vector.broadcast %273 : vector<4x8x1xf32> to vector<4x8x64xf32>
    %275 = arith.mulf %274, %10 : vector<4x8x64xf32>
    %cst_87 = arith.constant dense<0.000000e+00> : vector<4x64xf32>
    %276 = vector.multi_reduction <add>, %275, %cst_87 [1] : vector<4x8x64xf32> to vector<4x64xf32>
    %277 = arith.truncf %254 : vector<4x32xf32> to vector<4x32xbf16>
    %cst_88 = arith.constant dense<0.000000e+00> : vector<4x32xf32>
    %278 = tpu.matmul %277, %18, %cst_88 {dimension_numbers = #tpu.dot_dimension_numbers<[1], [0], [0], [1], [0, 0, 1, 1], [], []>} : vector<4x32xbf16>, vector<32x32xbf16>, vector<4x32xf32> -> vector<4x32xf32>
    %279 = arith.truncf %276 : vector<4x64xf32> to vector<4x64xbf16>
    %cst_89 = arith.constant dense<0.000000e+00> : vector<4x32xf32>
    %280 = tpu.matmul %279, %19, %cst_89 {dimension_numbers = #tpu.dot_dimension_numbers<[1], [0], [0], [1], [0, 0, 1, 1], [], []>} : vector<4x64xbf16>, vector<64x32xbf16>, vector<4x32xf32> -> vector<4x32xf32>
    %281 = arith.addf %278, %280 : vector<4x32xf32>
    %282 = math.tanh %281 : vector<4x32xf32>
    %283 = arith.index_cast %c3_i32 : i32 to index
    %c0_90 = arith.constant 0 : index
    %c0_91 = arith.constant 0 : index
    %284 = vector.load %arg12[%283, %c0_90, %c0_91] : memref<8x4x32xf32, #tpu.memory_space<vmem>>, vector<1x4x32xf32>
    %285 = vector.shape_cast %284 : vector<1x4x32xf32> to vector<4x32xf32>
    %286 = vector.shape_cast %282 : vector<4x32xf32> to vector<1x4x32xf32>
    tpu.vector_store %arg12[%283, %c0_90, %c0_91], %286 {strides = array<i32>} : memref<8x4x32xf32, #tpu.memory_space<vmem>>, vector<1x4x32xf32>,
    %c4_i32 = arith.constant 4 : i32
    %287 = arith.index_cast %c4_i32 : i32 to index
    %c0_92 = arith.constant 0 : index
    %c0_93 = arith.constant 0 : index
    %288 = vector.load %arg13[%287, %c0_92, %c0_93] : memref<8x4x128xf32, #tpu.memory_space<vmem>>, vector<1x4x128xf32>
    %289 = vector.shape_cast %288 : vector<1x4x128xf32> to vector<4x128xf32>
    %290 = arith.truncf %282 : vector<4x32xf32> to vector<4x32xbf16>
    %cst_94 = arith.constant dense<0.000000e+00> : vector<4x128xf32>
    %291 = tpu.matmul %290, %16, %cst_94 {dimension_numbers = #tpu.dot_dimension_numbers<[1], [0], [0], [1], [0, 0, 1, 1], [], []>} : vector<4x32xbf16>, vector<32x128xbf16>, vector<4x128xf32> -> vector<4x128xf32>
    %292 = arith.addf %289, %291 : vector<4x128xf32>
    %293 = arith.truncf %254 : vector<4x32xf32> to vector<4x32xbf16>
    %cst_95 = arith.constant dense<0.000000e+00> : vector<4x128xf32>
    %294 = tpu.matmul %293, %17, %cst_95 {dimension_numbers = #tpu.dot_dimension_numbers<[1], [0], [0], [1], [0, 0, 1, 1], [], []>} : vector<4x32xbf16>, vector<32x128xbf16>, vector<4x128xf32> -> vector<4x128xf32>
    %295 = arith.addf %292, %294 : vector<4x128xf32>
    %296 = vector.extract_strided_slice %295 {offsets = [0, 0], sizes = [4, 32], strides = [1, 1]} : vector<4x128xf32> to vector<4x32xf32>
    %297 = arith.negf %296 : vector<4x32xf32>
    %298 = math.exp %297 : vector<4x32xf32>
    %cst_96 = arith.constant 1.000000e+00 : f32
    %299 = vector.broadcast %cst_96 : f32 to vector<4x32xf32>
    %300 = arith.addf %299, %298 : vector<4x32xf32>
    %301 = arith.divf %299, %300 : vector<4x32xf32>
    %302 = vector.extract_strided_slice %295 {offsets = [0, 32], sizes = [4, 32], strides = [1, 1]} : vector<4x128xf32> to vector<4x32xf32>
    %303 = arith.negf %302 : vector<4x32xf32>
    %304 = math.exp %303 : vector<4x32xf32>
    %cst_97 = arith.constant 1.000000e+00 : f32
    %305 = vector.broadcast %cst_97 : f32 to vector<4x32xf32>
    %306 = arith.addf %305, %304 : vector<4x32xf32>
    %307 = arith.divf %305, %306 : vector<4x32xf32>
    %308 = vector.extract_strided_slice %295 {offsets = [0, 64], sizes = [4, 32], strides = [1, 1]} : vector<4x128xf32> to vector<4x32xf32>
    %309 = math.tanh %308 : vector<4x32xf32>
    %310 = vector.extract_strided_slice %295 {offsets = [0, 96], sizes = [4, 32], strides = [1, 1]} : vector<4x128xf32> to vector<4x32xf32>
    %311 = arith.negf %310 : vector<4x32xf32>
    %312 = math.exp %311 : vector<4x32xf32>
    %cst_98 = arith.constant 1.000000e+00 : f32
    %313 = vector.broadcast %cst_98 : f32 to vector<4x32xf32>
    %314 = arith.addf %313, %312 : vector<4x32xf32>
    %315 = arith.divf %313, %314 : vector<4x32xf32>
    %316 = arith.mulf %307, %252 : vector<4x32xf32>
    %317 = arith.mulf %301, %309 : vector<4x32xf32>
    %318 = arith.addf %316, %317 : vector<4x32xf32>
    %319 = math.tanh %318 : vector<4x32xf32>
    %320 = arith.mulf %315, %319 : vector<4x32xf32>
    %321 = vector.shape_cast %320 : vector<4x32xf32> to vector<4x1x32xf32>
    %322 = vector.broadcast %321 : vector<4x1x32xf32> to vector<4x8x32xf32>
    %323 = arith.mulf %15, %322 : vector<4x8x32xf32>
    %cst_99 = arith.constant dense<0.000000e+00> : vector<4x8xf32>
    %324 = vector.multi_reduction <add>, %323, %cst_99 [2] : vector<4x8x32xf32> to vector<4x8xf32>
    %cst_100 = arith.constant dense<0xFF800000> : vector<4xf32>
    %325 = vector.multi_reduction <maximumf>, %324, %cst_100 [1] : vector<4x8xf32> to vector<4xf32>
    %326 = vector.shape_cast %325 : vector<4xf32> to vector<4x1xf32>
    %327 = vector.broadcast %326 : vector<4x1xf32> to vector<4x8xf32>
    %328 = arith.subf %324, %327 : vector<4x8xf32>
    %329 = math.exp %328 : vector<4x8xf32>
    %cst_101 = arith.constant dense<0.000000e+00> : vector<4xf32>
    %330 = vector.multi_reduction <add>, %329, %cst_101 [1] : vector<4x8xf32> to vector<4xf32>
    %331 = vector.shape_cast %330 : vector<4xf32> to vector<4x1xf32>
    %332 = tpu.reciprocal %331 {approx = true} : vector<4x1xf32> -> vector<4x1xf32>
    %333 = arith.mulf %331, %332 : vector<4x1xf32>
    %cst_102 = arith.constant 2.000000e+00 : f32
    %334 = vector.broadcast %cst_102 : f32 to vector<4x1xf32>
    %335 = arith.subf %334, %333 : vector<4x1xf32>
    %336 = arith.mulf %332, %335 : vector<4x1xf32>
    %337 = vector.broadcast %336 : vector<4x1xf32> to vector<4x8xf32>
    %338 = arith.mulf %329, %337 : vector<4x8xf32>
    %339 = vector.shape_cast %338 : vector<4x8xf32> to vector<4x8x1xf32>
    %340 = vector.broadcast %339 : vector<4x8x1xf32> to vector<4x8x64xf32>
    %341 = arith.mulf %340, %10 : vector<4x8x64xf32>
    %cst_103 = arith.constant dense<0.000000e+00> : vector<4x64xf32>
    %342 = vector.multi_reduction <add>, %341, %cst_103 [1] : vector<4x8x64xf32> to vector<4x64xf32>
    %343 = arith.truncf %320 : vector<4x32xf32> to vector<4x32xbf16>
    %cst_104 = arith.constant dense<0.000000e+00> : vector<4x32xf32>
    %344 = tpu.matmul %343, %18, %cst_104 {dimension_numbers = #tpu.dot_dimension_numbers<[1], [0], [0], [1], [0, 0, 1, 1], [], []>} : vector<4x32xbf16>, vector<32x32xbf16>, vector<4x32xf32> -> vector<4x32xf32>
    %345 = arith.truncf %342 : vector<4x64xf32> to vector<4x64xbf16>
    %cst_105 = arith.constant dense<0.000000e+00> : vector<4x32xf32>
    %346 = tpu.matmul %345, %19, %cst_105 {dimension_numbers = #tpu.dot_dimension_numbers<[1], [0], [0], [1], [0, 0, 1, 1], [], []>} : vector<4x64xbf16>, vector<64x32xbf16>, vector<4x32xf32> -> vector<4x32xf32>
    %347 = arith.addf %344, %346 : vector<4x32xf32>
    %348 = math.tanh %347 : vector<4x32xf32>
    %349 = arith.index_cast %c4_i32 : i32 to index
    %c0_106 = arith.constant 0 : index
    %c0_107 = arith.constant 0 : index
    %350 = vector.load %arg12[%349, %c0_106, %c0_107] : memref<8x4x32xf32, #tpu.memory_space<vmem>>, vector<1x4x32xf32>
    %351 = vector.shape_cast %350 : vector<1x4x32xf32> to vector<4x32xf32>
    %352 = vector.shape_cast %348 : vector<4x32xf32> to vector<1x4x32xf32>
    tpu.vector_store %arg12[%349, %c0_106, %c0_107], %352 {strides = array<i32>} : memref<8x4x32xf32, #tpu.memory_space<vmem>>, vector<1x4x32xf32>,
    %c5_i32 = arith.constant 5 : i32
    %353 = arith.index_cast %c5_i32 : i32 to index
    %c0_108 = arith.constant 0 : index
    %c0_109 = arith.constant 0 : index
    %354 = vector.load %arg13[%353, %c0_108, %c0_109] : memref<8x4x128xf32, #tpu.memory_space<vmem>>, vector<1x4x128xf32>
    %355 = vector.shape_cast %354 : vector<1x4x128xf32> to vector<4x128xf32>
    %356 = arith.truncf %348 : vector<4x32xf32> to vector<4x32xbf16>
    %cst_110 = arith.constant dense<0.000000e+00> : vector<4x128xf32>
    %357 = tpu.matmul %356, %16, %cst_110 {dimension_numbers = #tpu.dot_dimension_numbers<[1], [0], [0], [1], [0, 0, 1, 1], [], []>} : vector<4x32xbf16>, vector<32x128xbf16>, vector<4x128xf32> -> vector<4x128xf32>
    %358 = arith.addf %355, %357 : vector<4x128xf32>
    %359 = arith.truncf %320 : vector<4x32xf32> to vector<4x32xbf16>
    %cst_111 = arith.constant dense<0.000000e+00> : vector<4x128xf32>
    %360 = tpu.matmul %359, %17, %cst_111 {dimension_numbers = #tpu.dot_dimension_numbers<[1], [0], [0], [1], [0, 0, 1, 1], [], []>} : vector<4x32xbf16>, vector<32x128xbf16>, vector<4x128xf32> -> vector<4x128xf32>
    %361 = arith.addf %358, %360 : vector<4x128xf32>
    %362 = vector.extract_strided_slice %361 {offsets = [0, 0], sizes = [4, 32], strides = [1, 1]} : vector<4x128xf32> to vector<4x32xf32>
    %363 = arith.negf %362 : vector<4x32xf32>
    %364 = math.exp %363 : vector<4x32xf32>
    %cst_112 = arith.constant 1.000000e+00 : f32
    %365 = vector.broadcast %cst_112 : f32 to vector<4x32xf32>
    %366 = arith.addf %365, %364 : vector<4x32xf32>
    %367 = arith.divf %365, %366 : vector<4x32xf32>
    %368 = vector.extract_strided_slice %361 {offsets = [0, 32], sizes = [4, 32], strides = [1, 1]} : vector<4x128xf32> to vector<4x32xf32>
    %369 = arith.negf %368 : vector<4x32xf32>
    %370 = math.exp %369 : vector<4x32xf32>
    %cst_113 = arith.constant 1.000000e+00 : f32
    %371 = vector.broadcast %cst_113 : f32 to vector<4x32xf32>
    %372 = arith.addf %371, %370 : vector<4x32xf32>
    %373 = arith.divf %371, %372 : vector<4x32xf32>
    %374 = vector.extract_strided_slice %361 {offsets = [0, 64], sizes = [4, 32], strides = [1, 1]} : vector<4x128xf32> to vector<4x32xf32>
    %375 = math.tanh %374 : vector<4x32xf32>
    %376 = vector.extract_strided_slice %361 {offsets = [0, 96], sizes = [4, 32], strides = [1, 1]} : vector<4x128xf32> to vector<4x32xf32>
    %377 = arith.negf %376 : vector<4x32xf32>
    %378 = math.exp %377 : vector<4x32xf32>
    %cst_114 = arith.constant 1.000000e+00 : f32
    %379 = vector.broadcast %cst_114 : f32 to vector<4x32xf32>
    %380 = arith.addf %379, %378 : vector<4x32xf32>
    %381 = arith.divf %379, %380 : vector<4x32xf32>
    %382 = arith.mulf %373, %318 : vector<4x32xf32>
    %383 = arith.mulf %367, %375 : vector<4x32xf32>
    %384 = arith.addf %382, %383 : vector<4x32xf32>
    %385 = math.tanh %384 : vector<4x32xf32>
    %386 = arith.mulf %381, %385 : vector<4x32xf32>
    %387 = vector.shape_cast %386 : vector<4x32xf32> to vector<4x1x32xf32>
    %388 = vector.broadcast %387 : vector<4x1x32xf32> to vector<4x8x32xf32>
    %389 = arith.mulf %15, %388 : vector<4x8x32xf32>
    %cst_115 = arith.constant dense<0.000000e+00> : vector<4x8xf32>
    %390 = vector.multi_reduction <add>, %389, %cst_115 [2] : vector<4x8x32xf32> to vector<4x8xf32>
    %cst_116 = arith.constant dense<0xFF800000> : vector<4xf32>
    %391 = vector.multi_reduction <maximumf>, %390, %cst_116 [1] : vector<4x8xf32> to vector<4xf32>
    %392 = vector.shape_cast %391 : vector<4xf32> to vector<4x1xf32>
    %393 = vector.broadcast %392 : vector<4x1xf32> to vector<4x8xf32>
    %394 = arith.subf %390, %393 : vector<4x8xf32>
    %395 = math.exp %394 : vector<4x8xf32>
    %cst_117 = arith.constant dense<0.000000e+00> : vector<4xf32>
    %396 = vector.multi_reduction <add>, %395, %cst_117 [1] : vector<4x8xf32> to vector<4xf32>
    %397 = vector.shape_cast %396 : vector<4xf32> to vector<4x1xf32>
    %398 = tpu.reciprocal %397 {approx = true} : vector<4x1xf32> -> vector<4x1xf32>
    %399 = arith.mulf %397, %398 : vector<4x1xf32>
    %cst_118 = arith.constant 2.000000e+00 : f32
    %400 = vector.broadcast %cst_118 : f32 to vector<4x1xf32>
    %401 = arith.subf %400, %399 : vector<4x1xf32>
    %402 = arith.mulf %398, %401 : vector<4x1xf32>
    %403 = vector.broadcast %402 : vector<4x1xf32> to vector<4x8xf32>
    %404 = arith.mulf %395, %403 : vector<4x8xf32>
    %405 = vector.shape_cast %404 : vector<4x8xf32> to vector<4x8x1xf32>
    %406 = vector.broadcast %405 : vector<4x8x1xf32> to vector<4x8x64xf32>
    %407 = arith.mulf %406, %10 : vector<4x8x64xf32>
    %cst_119 = arith.constant dense<0.000000e+00> : vector<4x64xf32>
    %408 = vector.multi_reduction <add>, %407, %cst_119 [1] : vector<4x8x64xf32> to vector<4x64xf32>
    %409 = arith.truncf %386 : vector<4x32xf32> to vector<4x32xbf16>
    %cst_120 = arith.constant dense<0.000000e+00> : vector<4x32xf32>
    %410 = tpu.matmul %409, %18, %cst_120 {dimension_numbers = #tpu.dot_dimension_numbers<[1], [0], [0], [1], [0, 0, 1, 1], [], []>} : vector<4x32xbf16>, vector<32x32xbf16>, vector<4x32xf32> -> vector<4x32xf32>
    %411 = arith.truncf %408 : vector<4x64xf32> to vector<4x64xbf16>
    %cst_121 = arith.constant dense<0.000000e+00> : vector<4x32xf32>
    %412 = tpu.matmul %411, %19, %cst_121 {dimension_numbers = #tpu.dot_dimension_numbers<[1], [0], [0], [1], [0, 0, 1, 1], [], []>} : vector<4x64xbf16>, vector<64x32xbf16>, vector<4x32xf32> -> vector<4x32xf32>
    %413 = arith.addf %410, %412 : vector<4x32xf32>
    %414 = math.tanh %413 : vector<4x32xf32>
    %415 = arith.index_cast %c5_i32 : i32 to index
    %c0_122 = arith.constant 0 : index
    %c0_123 = arith.constant 0 : index
    %416 = vector.load %arg12[%415, %c0_122, %c0_123] : memref<8x4x32xf32, #tpu.memory_space<vmem>>, vector<1x4x32xf32>
    %417 = vector.shape_cast %416 : vector<1x4x32xf32> to vector<4x32xf32>
    %418 = vector.shape_cast %414 : vector<4x32xf32> to vector<1x4x32xf32>
    tpu.vector_store %arg12[%415, %c0_122, %c0_123], %418 {strides = array<i32>} : memref<8x4x32xf32, #tpu.memory_space<vmem>>, vector<1x4x32xf32>,
    %c6_i32 = arith.constant 6 : i32
    %419 = arith.index_cast %c6_i32 : i32 to index
    %c0_124 = arith.constant 0 : index
    %c0_125 = arith.constant 0 : index
    %420 = vector.load %arg13[%419, %c0_124, %c0_125] : memref<8x4x128xf32, #tpu.memory_space<vmem>>, vector<1x4x128xf32>
    %421 = vector.shape_cast %420 : vector<1x4x128xf32> to vector<4x128xf32>
    %422 = arith.truncf %414 : vector<4x32xf32> to vector<4x32xbf16>
    %cst_126 = arith.constant dense<0.000000e+00> : vector<4x128xf32>
    %423 = tpu.matmul %422, %16, %cst_126 {dimension_numbers = #tpu.dot_dimension_numbers<[1], [0], [0], [1], [0, 0, 1, 1], [], []>} : vector<4x32xbf16>, vector<32x128xbf16>, vector<4x128xf32> -> vector<4x128xf32>
    %424 = arith.addf %421, %423 : vector<4x128xf32>
    %425 = arith.truncf %386 : vector<4x32xf32> to vector<4x32xbf16>
    %cst_127 = arith.constant dense<0.000000e+00> : vector<4x128xf32>
    %426 = tpu.matmul %425, %17, %cst_127 {dimension_numbers = #tpu.dot_dimension_numbers<[1], [0], [0], [1], [0, 0, 1, 1], [], []>} : vector<4x32xbf16>, vector<32x128xbf16>, vector<4x128xf32> -> vector<4x128xf32>
    %427 = arith.addf %424, %426 : vector<4x128xf32>
    %428 = vector.extract_strided_slice %427 {offsets = [0, 0], sizes = [4, 32], strides = [1, 1]} : vector<4x128xf32> to vector<4x32xf32>
    %429 = arith.negf %428 : vector<4x32xf32>
    %430 = math.exp %429 : vector<4x32xf32>
    %cst_128 = arith.constant 1.000000e+00 : f32
    %431 = vector.broadcast %cst_128 : f32 to vector<4x32xf32>
    %432 = arith.addf %431, %430 : vector<4x32xf32>
    %433 = arith.divf %431, %432 : vector<4x32xf32>
    %434 = vector.extract_strided_slice %427 {offsets = [0, 32], sizes = [4, 32], strides = [1, 1]} : vector<4x128xf32> to vector<4x32xf32>
    %435 = arith.negf %434 : vector<4x32xf32>
    %436 = math.exp %435 : vector<4x32xf32>
    %cst_129 = arith.constant 1.000000e+00 : f32
    %437 = vector.broadcast %cst_129 : f32 to vector<4x32xf32>
    %438 = arith.addf %437, %436 : vector<4x32xf32>
    %439 = arith.divf %437, %438 : vector<4x32xf32>
    %440 = vector.extract_strided_slice %427 {offsets = [0, 64], sizes = [4, 32], strides = [1, 1]} : vector<4x128xf32> to vector<4x32xf32>
    %441 = math.tanh %440 : vector<4x32xf32>
    %442 = vector.extract_strided_slice %427 {offsets = [0, 96], sizes = [4, 32], strides = [1, 1]} : vector<4x128xf32> to vector<4x32xf32>
    %443 = arith.negf %442 : vector<4x32xf32>
    %444 = math.exp %443 : vector<4x32xf32>
    %cst_130 = arith.constant 1.000000e+00 : f32
    %445 = vector.broadcast %cst_130 : f32 to vector<4x32xf32>
    %446 = arith.addf %445, %444 : vector<4x32xf32>
    %447 = arith.divf %445, %446 : vector<4x32xf32>
    %448 = arith.mulf %439, %384 : vector<4x32xf32>
    %449 = arith.mulf %433, %441 : vector<4x32xf32>
    %450 = arith.addf %448, %449 : vector<4x32xf32>
    %451 = math.tanh %450 : vector<4x32xf32>
    %452 = arith.mulf %447, %451 : vector<4x32xf32>
    %453 = vector.shape_cast %452 : vector<4x32xf32> to vector<4x1x32xf32>
    %454 = vector.broadcast %453 : vector<4x1x32xf32> to vector<4x8x32xf32>
    %455 = arith.mulf %15, %454 : vector<4x8x32xf32>
    %cst_131 = arith.constant dense<0.000000e+00> : vector<4x8xf32>
    %456 = vector.multi_reduction <add>, %455, %cst_131 [2] : vector<4x8x32xf32> to vector<4x8xf32>
    %cst_132 = arith.constant dense<0xFF800000> : vector<4xf32>
    %457 = vector.multi_reduction <maximumf>, %456, %cst_132 [1] : vector<4x8xf32> to vector<4xf32>
    %458 = vector.shape_cast %457 : vector<4xf32> to vector<4x1xf32>
    %459 = vector.broadcast %458 : vector<4x1xf32> to vector<4x8xf32>
    %460 = arith.subf %456, %459 : vector<4x8xf32>
    %461 = math.exp %460 : vector<4x8xf32>
    %cst_133 = arith.constant dense<0.000000e+00> : vector<4xf32>
    %462 = vector.multi_reduction <add>, %461, %cst_133 [1] : vector<4x8xf32> to vector<4xf32>
    %463 = vector.shape_cast %462 : vector<4xf32> to vector<4x1xf32>
    %464 = tpu.reciprocal %463 {approx = true} : vector<4x1xf32> -> vector<4x1xf32>
    %465 = arith.mulf %463, %464 : vector<4x1xf32>
    %cst_134 = arith.constant 2.000000e+00 : f32
    %466 = vector.broadcast %cst_134 : f32 to vector<4x1xf32>
    %467 = arith.subf %466, %465 : vector<4x1xf32>
    %468 = arith.mulf %464, %467 : vector<4x1xf32>
    %469 = vector.broadcast %468 : vector<4x1xf32> to vector<4x8xf32>
    %470 = arith.mulf %461, %469 : vector<4x8xf32>
    %471 = vector.shape_cast %470 : vector<4x8xf32> to vector<4x8x1xf32>
    %472 = vector.broadcast %471 : vector<4x8x1xf32> to vector<4x8x64xf32>
    %473 = arith.mulf %472, %10 : vector<4x8x64xf32>
    %cst_135 = arith.constant dense<0.000000e+00> : vector<4x64xf32>
    %474 = vector.multi_reduction <add>, %473, %cst_135 [1] : vector<4x8x64xf32> to vector<4x64xf32>
    %475 = arith.truncf %452 : vector<4x32xf32> to vector<4x32xbf16>
    %cst_136 = arith.constant dense<0.000000e+00> : vector<4x32xf32>
    %476 = tpu.matmul %475, %18, %cst_136 {dimension_numbers = #tpu.dot_dimension_numbers<[1], [0], [0], [1], [0, 0, 1, 1], [], []>} : vector<4x32xbf16>, vector<32x32xbf16>, vector<4x32xf32> -> vector<4x32xf32>
    %477 = arith.truncf %474 : vector<4x64xf32> to vector<4x64xbf16>
    %cst_137 = arith.constant dense<0.000000e+00> : vector<4x32xf32>
    %478 = tpu.matmul %477, %19, %cst_137 {dimension_numbers = #tpu.dot_dimension_numbers<[1], [0], [0], [1], [0, 0, 1, 1], [], []>} : vector<4x64xbf16>, vector<64x32xbf16>, vector<4x32xf32> -> vector<4x32xf32>
    %479 = arith.addf %476, %478 : vector<4x32xf32>
    %480 = math.tanh %479 : vector<4x32xf32>
    %481 = arith.index_cast %c6_i32 : i32 to index
    %c0_138 = arith.constant 0 : index
    %c0_139 = arith.constant 0 : index
    %482 = vector.load %arg12[%481, %c0_138, %c0_139] : memref<8x4x32xf32, #tpu.memory_space<vmem>>, vector<1x4x32xf32>
    %483 = vector.shape_cast %482 : vector<1x4x32xf32> to vector<4x32xf32>
    %484 = vector.shape_cast %480 : vector<4x32xf32> to vector<1x4x32xf32>
    tpu.vector_store %arg12[%481, %c0_138, %c0_139], %484 {strides = array<i32>} : memref<8x4x32xf32, #tpu.memory_space<vmem>>, vector<1x4x32xf32>,
    %c7_i32 = arith.constant 7 : i32
    %485 = arith.index_cast %c7_i32 : i32 to index
    %c0_140 = arith.constant 0 : index
    %c0_141 = arith.constant 0 : index
    %486 = vector.load %arg13[%485, %c0_140, %c0_141] : memref<8x4x128xf32, #tpu.memory_space<vmem>>, vector<1x4x128xf32>
    %487 = vector.shape_cast %486 : vector<1x4x128xf32> to vector<4x128xf32>
    %488 = arith.truncf %480 : vector<4x32xf32> to vector<4x32xbf16>
    %cst_142 = arith.constant dense<0.000000e+00> : vector<4x128xf32>
    %489 = tpu.matmul %488, %16, %cst_142 {dimension_numbers = #tpu.dot_dimension_numbers<[1], [0], [0], [1], [0, 0, 1, 1], [], []>} : vector<4x32xbf16>, vector<32x128xbf16>, vector<4x128xf32> -> vector<4x128xf32>
    %490 = arith.addf %487, %489 : vector<4x128xf32>
    %491 = arith.truncf %452 : vector<4x32xf32> to vector<4x32xbf16>
    %cst_143 = arith.constant dense<0.000000e+00> : vector<4x128xf32>
    %492 = tpu.matmul %491, %17, %cst_143 {dimension_numbers = #tpu.dot_dimension_numbers<[1], [0], [0], [1], [0, 0, 1, 1], [], []>} : vector<4x32xbf16>, vector<32x128xbf16>, vector<4x128xf32> -> vector<4x128xf32>
    %493 = arith.addf %490, %492 : vector<4x128xf32>
    %494 = vector.extract_strided_slice %493 {offsets = [0, 0], sizes = [4, 32], strides = [1, 1]} : vector<4x128xf32> to vector<4x32xf32>
    %495 = arith.negf %494 : vector<4x32xf32>
    %496 = math.exp %495 : vector<4x32xf32>
    %cst_144 = arith.constant 1.000000e+00 : f32
    %497 = vector.broadcast %cst_144 : f32 to vector<4x32xf32>
    %498 = arith.addf %497, %496 : vector<4x32xf32>
    %499 = arith.divf %497, %498 : vector<4x32xf32>
    %500 = vector.extract_strided_slice %493 {offsets = [0, 32], sizes = [4, 32], strides = [1, 1]} : vector<4x128xf32> to vector<4x32xf32>
    %501 = arith.negf %500 : vector<4x32xf32>
    %502 = math.exp %501 : vector<4x32xf32>
    %cst_145 = arith.constant 1.000000e+00 : f32
    %503 = vector.broadcast %cst_145 : f32 to vector<4x32xf32>
    %504 = arith.addf %503, %502 : vector<4x32xf32>
    %505 = arith.divf %503, %504 : vector<4x32xf32>
    %506 = vector.extract_strided_slice %493 {offsets = [0, 64], sizes = [4, 32], strides = [1, 1]} : vector<4x128xf32> to vector<4x32xf32>
    %507 = math.tanh %506 : vector<4x32xf32>
    %508 = vector.extract_strided_slice %493 {offsets = [0, 96], sizes = [4, 32], strides = [1, 1]} : vector<4x128xf32> to vector<4x32xf32>
    %509 = arith.negf %508 : vector<4x32xf32>
    %510 = math.exp %509 : vector<4x32xf32>
    %cst_146 = arith.constant 1.000000e+00 : f32
    %511 = vector.broadcast %cst_146 : f32 to vector<4x32xf32>
    %512 = arith.addf %511, %510 : vector<4x32xf32>
    %513 = arith.divf %511, %512 : vector<4x32xf32>
    %514 = arith.mulf %505, %450 : vector<4x32xf32>
    %515 = arith.mulf %499, %507 : vector<4x32xf32>
    %516 = arith.addf %514, %515 : vector<4x32xf32>
    %517 = math.tanh %516 : vector<4x32xf32>
    %518 = arith.mulf %513, %517 : vector<4x32xf32>
    %519 = vector.shape_cast %518 : vector<4x32xf32> to vector<4x1x32xf32>
    %520 = vector.broadcast %519 : vector<4x1x32xf32> to vector<4x8x32xf32>
    %521 = arith.mulf %15, %520 : vector<4x8x32xf32>
    %cst_147 = arith.constant dense<0.000000e+00> : vector<4x8xf32>
    %522 = vector.multi_reduction <add>, %521, %cst_147 [2] : vector<4x8x32xf32> to vector<4x8xf32>
    %cst_148 = arith.constant dense<0xFF800000> : vector<4xf32>
    %523 = vector.multi_reduction <maximumf>, %522, %cst_148 [1] : vector<4x8xf32> to vector<4xf32>
    %524 = vector.shape_cast %523 : vector<4xf32> to vector<4x1xf32>
    %525 = vector.broadcast %524 : vector<4x1xf32> to vector<4x8xf32>
    %526 = arith.subf %522, %525 : vector<4x8xf32>
    %527 = math.exp %526 : vector<4x8xf32>
    %cst_149 = arith.constant dense<0.000000e+00> : vector<4xf32>
    %528 = vector.multi_reduction <add>, %527, %cst_149 [1] : vector<4x8xf32> to vector<4xf32>
    %529 = vector.shape_cast %528 : vector<4xf32> to vector<4x1xf32>
    %530 = tpu.reciprocal %529 {approx = true} : vector<4x1xf32> -> vector<4x1xf32>
    %531 = arith.mulf %529, %530 : vector<4x1xf32>
    %cst_150 = arith.constant 2.000000e+00 : f32
    %532 = vector.broadcast %cst_150 : f32 to vector<4x1xf32>
    %533 = arith.subf %532, %531 : vector<4x1xf32>
    %534 = arith.mulf %530, %533 : vector<4x1xf32>
    %535 = vector.broadcast %534 : vector<4x1xf32> to vector<4x8xf32>
    %536 = arith.mulf %527, %535 : vector<4x8xf32>
    %537 = vector.shape_cast %536 : vector<4x8xf32> to vector<4x8x1xf32>
    %538 = vector.broadcast %537 : vector<4x8x1xf32> to vector<4x8x64xf32>
    %539 = arith.mulf %538, %10 : vector<4x8x64xf32>
    %cst_151 = arith.constant dense<0.000000e+00> : vector<4x64xf32>
    %540 = vector.multi_reduction <add>, %539, %cst_151 [1] : vector<4x8x64xf32> to vector<4x64xf32>
    %541 = arith.truncf %518 : vector<4x32xf32> to vector<4x32xbf16>
    %cst_152 = arith.constant dense<0.000000e+00> : vector<4x32xf32>
    %542 = tpu.matmul %541, %18, %cst_152 {dimension_numbers = #tpu.dot_dimension_numbers<[1], [0], [0], [1], [0, 0, 1, 1], [], []>} : vector<4x32xbf16>, vector<32x32xbf16>, vector<4x32xf32> -> vector<4x32xf32>
    %543 = arith.truncf %540 : vector<4x64xf32> to vector<4x64xbf16>
    %cst_153 = arith.constant dense<0.000000e+00> : vector<4x32xf32>
    %544 = tpu.matmul %543, %19, %cst_153 {dimension_numbers = #tpu.dot_dimension_numbers<[1], [0], [0], [1], [0, 0, 1, 1], [], []>} : vector<4x64xbf16>, vector<64x32xbf16>, vector<4x32xf32> -> vector<4x32xf32>
    %545 = arith.addf %542, %544 : vector<4x32xf32>
    %546 = math.tanh %545 : vector<4x32xf32>
    %547 = arith.index_cast %c7_i32 : i32 to index
    %c0_154 = arith.constant 0 : index
    %c0_155 = arith.constant 0 : index
    %548 = vector.load %arg12[%547, %c0_154, %c0_155] : memref<8x4x32xf32, #tpu.memory_space<vmem>>, vector<1x4x32xf32>
    %549 = vector.shape_cast %548 : vector<1x4x32xf32> to vector<4x32xf32>
    %550 = vector.shape_cast %546 : vector<4x32xf32> to vector<1x4x32xf32>
    tpu.vector_store %arg12[%547, %c0_154, %c0_155], %550 {strides = array<i32>} : memref<8x4x32xf32, #tpu.memory_space<vmem>>, vector<1x4x32xf32>,
    %c8_i32 = arith.constant 8 : i32
    return
  }
  func.func @transform_0(%arg0: i32) -> (i32, i32, i32) {
    %c0_i32 = arith.constant 0 : i32
    %c0_i32_0 = arith.constant 0 : i32
    %c0_i32_1 = arith.constant 0 : i32
    %c0_i32_2 = arith.constant 0 : i32
    return %c0_i32, %c0_i32_0, %c0_i32_1 : i32, i32, i32
  }
  func.func @transform_1(%arg0: i32) -> (i32, i32, i32) {
    %c0_i32 = arith.constant 0 : i32
    %c0_i32_0 = arith.constant 0 : i32
    %c0_i32_1 = arith.constant 0 : i32
    %c0_i32_2 = arith.constant 0 : i32
    return %c0_i32, %c0_i32_0, %c0_i32_1 : i32, i32, i32
  }
  func.func @transform_2(%arg0: i32) -> (i32, i32) {
    %c0_i32 = arith.constant 0 : i32
    %c0_i32_0 = arith.constant 0 : i32
    %c0_i32_1 = arith.constant 0 : i32
    return %c0_i32, %c0_i32_0 : i32, i32
  }
  func.func @transform_3(%arg0: i32) -> (i32, i32) {
    %c0_i32 = arith.constant 0 : i32
    %c0_i32_0 = arith.constant 0 : i32
    %c0_i32_1 = arith.constant 0 : i32
    return %c0_i32, %c0_i32_0 : i32, i32
  }
  func.func @transform_4(%arg0: i32) -> (i32, i32) {
    %c0_i32 = arith.constant 0 : i32
    %c0_i32_0 = arith.constant 0 : i32
    %c0_i32_1 = arith.constant 0 : i32
    return %c0_i32, %c0_i32_0 : i32, i32
  }
  func.func @transform_5(%arg0: i32) -> (i32, i32) {
    %c0_i32 = arith.constant 0 : i32
    %c0_i32_0 = arith.constant 0 : i32
    %c0_i32_1 = arith.constant 0 : i32
    return %c0_i32, %c0_i32_0 : i32, i32
  }
  func.func @transform_6(%arg0: i32) -> (i32, i32) {
    %c0_i32 = arith.constant 0 : i32
    %c0_i32_0 = arith.constant 0 : i32
    %c0_i32_1 = arith.constant 0 : i32
    return %c0_i32, %c0_i32_0 : i32, i32
  }
  func.func @transform_7(%arg0: i32) -> (i32, i32) {
    %c0_i32 = arith.constant 0 : i32
    %c0_i32_0 = arith.constant 0 : i32
    %c0_i32_1 = arith.constant 0 : i32
    return %c0_i32, %c0_i32_0 : i32, i32
  }
  func.func @transform_8(%arg0: i32) -> (i32, i32) {
    %c0_i32 = arith.constant 0 : i32
    %c0_i32_0 = arith.constant 0 : i32
    %c0_i32_1 = arith.constant 0 : i32
    return %c0_i32, %c0_i32_0 : i32, i32
  }
  func.func @transform_9(%arg0: i32) -> (i32, i32) {
    %c0_i32 = arith.constant 0 : i32
    %c0_i32_0 = arith.constant 0 : i32
    %c0_i32_1 = arith.constant 0 : i32
    return %c0_i32, %c0_i32_0 : i32, i32
  }
  func.func @transform_10(%arg0: i32) -> (i32, i32) {
    %c0_i32 = arith.constant 0 : i32
    %c0_i32_0 = arith.constant 0 : i32
    %c0_i32_1 = arith.constant 0 : i32
    return %c0_i32, %c0_i32_0 : i32, i32
  }
  func.func @transform_11(%arg0: i32) -> (i32, i32, i32) {
    %c0_i32 = arith.constant 0 : i32
    %c0_i32_0 = arith.constant 0 : i32
    %c0_i32_1 = arith.constant 0 : i32
    %c0_i32_2 = arith.constant 0 : i32
    return %c0_i32, %c0_i32_0, %c0_i32_1 : i32, i32, i32
  }
}

</mosaic_0001>

<bundles_post_ra>
// kernel: tpu_custom_call.1
= control target key start
LH: loop header
LB: loop body
LE: loop exit
PB: predicated region body
PF: predicated region fallthrough
CT: control target
= control target key end

     0   :  { %16 = vsyncpa [#allocation4], 0  ;;  %s4074_s0 = inlined_call_operand.vmem [shape: f32[8,4,16], index: 0, kind: input, shape index: {}]   ;;  %s4075_s1 = inlined_call_operand.vmem [shape: f32[4,8,64], index: 1, kind: input, shape index: {}]   ;;  %s4076_s2 = inlined_call_operand.hbm [shape: f32[4,32], index: 2, kind: input, shape index: {}]   ;;  %s4077_s3 = inlined_call_operand.hbm [shape: f32[4,32], index: 3, kind: input, shape index: {}]   ;;  %s4078_s4 = inlined_call_operand.vmem [shape: bf16[64,32], index: 4, kind: input, shape index: {}]   ;;  %s4079_s5 = inlined_call_operand.hbm [shape: bf16[16,128], index: 5, kind: input, shape index: {}]   ;;  %s4080_s6 = inlined_call_operand.vmem [shape: bf16[32,128], index: 6, kind: input, shape index: {}]   ;;  %s4081_s7 = inlined_call_operand.hbm [shape: bf16[32,128], index: 7, kind: input, shape index: {}]   ;;  %s4082_s8 = inlined_call_operand.vmem [shape: f32[1,128], index: 8, kind: input, shape index: {}]   ;;  %s4083_s9 = inlined_call_operand.hbm [shape: bf16[32,32], index: 9, kind: input, shape index: {}]   ;;  %s4084_s10 = inlined_call_operand.vmem [shape: bf16[64,32], index: 10, kind: input, shape index: {}]   ;;  %s4085_s11 = inlined_call_operand.hbm [shape: f32[8,4,32], index: 11, kind: output, shape index: {}]  }
   0x1   :  { %17 = vsyncpa [#allocation7], 0 }
   0x2   :  { %18 = vsyncpa [#allocation10], 0  ;;  %s40_s19 = sshll.u32 %s4077_s3, 4  ;;  %s41_s19 = int_to_ptr.hbm [resolvable:$true] %s40_s19 }
   0x3   :  { %19 = vsyncpa [#allocation5], 0  ;;  %s3211_s20 = smov [#allocation6]   ;;  %s67_s24 = sshll.u32 %s4081_s7, 4  ;;  %s68_s24 = int_to_ptr.hbm [resolvable:$true] %s67_s24 }
   0x4   :  { %s42_s21 = sshll.u32 %s3211_s20, 4  ;;  %s3212_s25 = smov [#allocation9]   ;;  %s43_s21 = int_to_ptr.vmem [resolvable:$true] %s42_s21 }
   0x5   :  { %45 = dma.hbm_to_vmem [thread:$0]  %s41_s19, 64, %s43_s21, [#allocation7]  }
   0x6   :  { %s69_s26 = sshll.u32 %s3212_s25, 4  ;;  %s29_s29 = sshll.u32 %s4076_s2, 4  ;;  %s70_s26 = int_to_ptr.vmem [resolvable:$true] %s69_s26  ;;  %s30_s29 = int_to_ptr.hbm [resolvable:$true] %s29_s29 }
   0x7   :  { %s3213_s3 = smov 64   ;;  %s3214_s30 = smov 4  }
   0x8   :  { %75 = dma.hbm_to_vmem [thread:$0]  %s68_s24, 256, %s70_s26, [#allocation10], %s3213_s3, %s3213_s3, %s3214_s30  }
   0x9   :  { %s52_s14 = sshll.u32 %s4079_s5, 4  ;;  %s3215_s7 = smov [#allocation3]   ;;  %s53_s14 = int_to_ptr.hbm [resolvable:$true] %s52_s14 }
   0xa   :  { %s31_s15 = sshll.u32 %s3215_s7, 4  ;;  %s3216_s16 = smov [#allocation8]   ;;  %s32_s15 = int_to_ptr.vmem [resolvable:$true] %s31_s15 }
   0xb   :  { %34 = dma.hbm_to_vmem [thread:$0]  %s30_s29, 64, %s32_s15, [#allocation4]  }
   0xc   :  { %s54_s17 = sshll.u32 %s3216_s16, 4  ;;  %s82_s19 = sshll.u32 %s4083_s9, 4  ;;  %s55_s17 = int_to_ptr.vmem [resolvable:$true] %s54_s17  ;;  %s83_s19 = int_to_ptr.hbm [resolvable:$true] %s82_s19 }
   0xd   :  { %60 = dma.hbm_to_vmem [thread:$0]  %s53_s14, 128, %s55_s17, [#allocation7], %s3213_s3, %s3213_s3, %s3214_s30  }
   0xe   :  { %s3217_s20 = smov [#allocation11]  }
   0xf   :  { %s84_s21 = sshll.u32 %s3217_s20, 4  ;;  %s85_s21 = int_to_ptr.vmem [resolvable:$true] %s84_s21 }
  0x10   :  { %90 = dma.hbm_to_vmem [thread:$0]  %s83_s19, 256, %s85_s21, [#allocation10], %s3213_s3, %s3213_s3, %s3214_s30  }
  0x11   :  { %3203 = dma.done.wait [#allocation4], 64  }
  0x12   :  { %3204 = vsyncadd [#allocation4], 4294967232 }
  0x13   :  { %3205 = dma.done.wait [#allocation7], 192  }
  0x14   :  { %3206 = vsyncadd [#allocation7], 4294967104 }
  0x15   :  { %3207 = dma.done.wait [#allocation10], 512  }
  0x16   :  { %3208 = vsyncadd [#allocation10], 4294966784  ;;  %v3218_v0 = vmov 0   ;;  %v3308_v1 = vld [vmem:[%s4080_s6 + $0x8] sm:$0xff]  ;;  %v3310_v2 = vld [vmem:[#allocation9 + $0x8] sm:$0xff]  ;;  %vm312_vm0 = vcmask 261120  }
  0x17   :  { %2875 = vset.pattern.permute.xlu2 %v3218_v0  ;;  %2874 = vset.pattern.permute.xlu1 %v3218_v0  ;;  %v3315_v3 = vld [vmem:[%s4080_s6] sm:$0xff]  ;;  %v3317_v4 = vld [vmem:[#allocation9] sm:$0xff]  ;;  %v2848_v5 = vld [vmem:[#allocation8] sm:$0xff]  ;;  %vm167_vm1 = vcmask 130048   ;;  %vm251_vm6 = vcmask 523264   ;;  %vm447_vm7 = vcmask 1041409  }
  0x18   :  { %2873 = vset.pattern.permute.xlu0 %v3218_v0  ;;  %v297_v6 = vld [vmem:[#allocation3] sm:$0xf]  ;;  %322 = vmatpush.bf16.msra.mxu2 %v3308_v1  ;;  %v114_v7 = vld [vmem:[%s4074_s0] sm:$0xf]  ;;  %v115_v8 = vld [vmem:[%s4074_s0 + $0x4] sm:$0xf] }
  0x19   :  { %352 = vmatpush.bf16.msra.mxu3 %v3310_v2  ;;  %v116_v9 = vld [vmem:[%s4074_s0 + $0x8] sm:$0xf]  ;;  %181 = vmatpush.bf16.msra.mxu0 %v2848_v5  ;;  %v117_v10 = vld [vmem:[%s4074_s0 + $0xc] sm:$0xf]  ;;  %130 = vst [vmem:[#allocation1] ss:$2 sm:$0xff] %v114_v7  ;;  %v330_v11 = vpack.c.bf16 %v297_v6, %v297_v6 }
  0x1a   :  { %132 = vst [vmem:[#allocation1 + $0x1] ss:$2 sm:$0xff] %v115_v8  ;;  %v3344_v15 = vld [vmem:[%s4082_s8] ss:$0 sm:$0xff]  ;;  %v298_v30 = vld [vmem:[#allocation6] sm:$0xf] }
  0x1b   :  { %134 = vst [vmem:[#allocation1 + $0x10] ss:$2 sm:$0xff] %v116_v9  ;;  %s3219_s8 = smov 32   ;;  %v2852_v46 = vld [vmem:[%s4078_s4 + $0x18] sm:$0xff]  ;;  %v2851_v47 = vld [vmem:[%s4078_s4 + $0x10] sm:$0xff]  ;;  %v2850_v48 = vld [vmem:[%s4078_s4 + $0x8] sm:$0xff] }
  0x1c   :  { %323 = vmatpush.bf16.msra.mxu2 %v3315_v3  ;;  %136 = vst [vmem:[#allocation1 + $0x11] ss:$2 sm:$0xff] %v117_v10  ;;  %262 = vmatpush.bf16.msra.mxu1 %v2852_v46  ;;  %v2849_v49 = vld [vmem:[%s4078_s4] sm:$0xff]  ;;  %v3371_v51 = vld [vmem:[%s4075_s1 + $0x8] sm:$0xff]  ;;  %v3382_v57 = vld [vmem:[%s4075_s1 + $0x10] sm:$0xff]  ;;  %vm449_vm8 = vcmask 1042434  }
  0x1d   :  { %678 = vmatpush.bf16.msrb.mxu0 %v3308_v1  ;;  %353 = vmatpush.bf16.msra.mxu3 %v3317_v4  ;;  %v3366_v50 = vld [vmem:[%s4075_s1] sm:$0xff]  ;;  %v3387_v58 = vld [vmem:[%s4075_s1 + $0x18] sm:$0xff]  ;;  %vm451_vm9 = vcmask 1043459   ;;  %vm454_vm10 = vcmask 60416   ;;  %vm664_vm11 = vcmask 257024   ;;  %s2730_s13 = sshll.u32 %s4085_s11, 4  ;;  %s2731_s13 = int_to_ptr.hbm [resolvable:$true] %s2730_s13 }
  0x1e   :  { %v217_v52 = vpack.c.bf16 %v3371_v51, %v3366_v50  ;;  %v218_v59 = vpack.c.bf16 %v3387_v58, %v3382_v57 }
  0x1f   :  { %324 = vmatmul.bf16.vlgmr.msra.gmra.mxu2 %v3218_v0 }
  0x20   :  { %2785 = vmatmul.msk.bf16.vlgmr.msra.gmra.mxu3 %vm312_vm0, %v330_v11  ;;  %263 = vmatpush.bf16.msra.mxu1 %v2851_v47 }
  0x21   :  { %679 = vmatpush.bf16.msrb.mxu0 %v3315_v3  ;;  %v145_v12 = vld.sshfl [vmem:[#allocation1] sm:$0xff pattern:$0x75316420] }
  0x23   :  { %v146_v13 = vld.sshfl [vmem:[#allocation1 + $0x10] sm:$0xff pattern:$0x75316420] }
  0x24   :  { %v153_v14 = vpack.c.bf16 %v146_v13, %v145_v12  ;;  %264 = vmatpush.bf16.msra.mxu1 %v2850_v48 }
  0x26   :  { %2749 = vmatmul.msk.bf16.vlgmr.msra.gmra.mxu0 %vm167_vm1, %v153_v14 }
  0x27   :  { %972 = vmatpush.bf16.msra.mxu0 %v3308_v1 }
  0x28   :  { %265 = vmatpush.bf16.msra.mxu1 %v2849_v49 }
  0x2b   :  { %973 = vmatpush.bf16.msra.mxu0 %v3315_v3  ;;  %2767 = vmatmul.msk.bf16.vlgmr.msra.gmra.mxu1 %vm251_vm6, %v217_v52 }
  0x3b   :  { %2768 = vmatmul.msk.bf16.gmra.mxu1 %vm251_vm6, %v218_v59 }
  0xa2   :  { %v325_v16 = vpop.f32.mrf.mxu2 }
  0xa3   :  { %v355_v17 = vpop.f32.mrf.mxu3  ;;  %v183_v18 = vpop.f32.mrf.mxu0 }
  0xa4   :  { %v184_v19 = vadd.f32 %v3344_v15, %v183_v18 }
  0xa6   :  { %v197_v20 = vrot.slane %v184_v19, 4  ;;  %205 = vst [vmem:[#allocation2] sm:$0xf] %v184_v19 }
  0xa8   :  { %206 = vst [vmem:[#allocation2 + $0x4] sm:$0xf] %v197_v20  ;;  %v3403_v10 = vpop.f32.mrf.mxu1 }
  0xaa   :  { %v327_v21 = vpop.f32.mrf.mxu2 }
  0xab   :  { %v357_v22 = vpop.f32.mrf.mxu3  ;;  %v185_v23 = vpop.f32.mrf.mxu0 }
  0xac   :  { %v186_v24 = vadd.f32 %v3344_v15, %v185_v23 }
  0xad   :  { %v299_v25 = vld [vmem:[#allocation2] sm:$0xf] }
  0xae   :  { %v329_v26 = vadd.f32 %v325_v16, %v299_v25  ;;  %v198_v27 = vrot.slane %v186_v24, 4  ;;  %207 = vst [vmem:[#allocation2 + $0x8] sm:$0xf] %v186_v24 }
  0xb0   :  { %v359_v28 = vadd.f32 %v355_v17, %v329_v26  ;;  %208 = vst [vmem:[#allocation2 + $0xc] sm:$0xf] %v198_v27  ;;  %v3407_v14 = vpop.f32.mrf.mxu1  ;;  %v441_v27 = vlaneseq }
  0xb2   :  { %2877 = vtanh.f32 %v359_v28  ;;  %v2786_v31 = vmul.f32 -1.442695, %v359_v28 }
  0xb4   :  { %2879 = vpow2.f32 %v2786_v31 }
  0xb8   :  { %v2878_v29 = vpop.eup %2877  ;;  %v3411_v19 = vpop.f32.mrf.mxu1 }
  0xb9   :  { %386 = vrot.lane.b32.xlu0 %v2878_v29, %s3213_s3 }
  0xba   :  { %v2880_v32 = vpop.eup %2879 }
  0xbb   :  { %v363_v33 = vadd.f32 1.0, %v2880_v32 }
  0xbd   :  { %2881 = vrcp.f32 %v363_v33  ;;  %v375_v39 = vand.u32 2147483648, %v363_v33  ;;  %vm369_vm3 = vweird.f32 %v363_v33  ;;  %v373_v40 = vand.u32 2147483647, %v363_v33 }
  0xbf   :  { %v376_v42 = vor.u32 1.1754944e-38, %v375_v39  ;;  %vm374_vm5 = vcmp.eq.f32.partialorder %v373_v40, 8.507059e+37 }
  0xc0   :  { %v3413_v20 = vpop.f32.mrf.mxu1 }
  0xc1   :  { %381 = vrot.lane.b32.xlu0 %v298_v30, %s3219_s8  ;;  %v3419_v30 = vand.u32 127, %v441_v27 }
  0xc3   :  { %v2882_v34 = vpop.eup %2881 }
  0xc4   :  { %v365_v35 = vmul.f32 %v2882_v34, %v363_v33  ;;  %vm370_vm2 = vweird.f32 %v2882_v34 }
  0xc5   :  { %vm371_vm4 = vmor %vm369_vm3, %vm370_vm2 }
  0xc6   :  { %v366_v36 = vsub.f32 1.0, %v365_v35 }
  0xc8   :  { %v367_v37 = vmul.f32 %v2882_v34, %v366_v36 }
  0xca   :  { %v368_v38 = vadd.f32 %v2882_v34, %v367_v37 }
  0xcc   :  { %v372_v41 = vsel %vm371_vm4, %v2882_v34, %v368_v38 }
  0xcd   :  { %v377_v44 = vsel %vm374_vm5, %v376_v42, %v372_v41 }
 0x12b   :  { %v387_v43 = vpop.permute.xlu0 %386 }
 0x12c   :  { %v389_v45 = vmul.f32 %v387_v43, %v377_v44 }
 0x12e   :  { %391 = vrot.lane.b32.xlu1 %v389_v45, %s3219_s8 }
 0x133   :  { %v382_v53 = vpop.permute.xlu0 %381 }
 0x134   :  { %v384_v54 = vmul.f32 %v382_v53, %v377_v44 }
 0x1a0   :  { %v392_v55 = vpop.permute.xlu1 %391 }
 0x1a1   :  { %v3376_v56 = vadd.f32 %v392_v55, %v384_v54 }
 0x1a3   :  { %2883 = vtanh.f32 %v3376_v56 }
 0x1a9   :  { %v2884_v60 = vpop.eup %2883 }
 0x1aa   :  { %397 = vrot.lane.b32.xlu1 %v2884_v60, %s3213_s3 }
 0x21c   :  { %v398_v61 = vpop.permute.xlu1 %397 }
 0x21d   :  { %v3393_v62 = vmul.f32 %v398_v61, %v377_v44 }
 0x21f   :  { %v405_v63 = vperm.slane %v3393_v62, 0  ;;  %v404_v0 = vrot.slane %v3393_v62, 3  ;;  %v403_v5 = vrot.slane %v3393_v62, 2  ;;  %v402_v8 = vrot.slane %v3393_v62, 1 }
 0x221   :  { %409 = vrot.lane.b32.xlu2 %v405_v63, %s3219_s8  ;;  %v408_v6 = vperm.slane %v404_v0, 0  ;;  %v407_v7 = vperm.slane %v403_v5, 0  ;;  %v406_v9 = vperm.slane %v402_v8, 0 }
 0x223   :  { %415 = vrot.lane.b32.xlu1 %v408_v6, %s3219_s8  ;;  %413 = vrot.lane.b32.xlu0 %v407_v7, %s3219_s8 }
 0x229   :  { %411 = vrot.lane.b32.xlu2 %v406_v9, %s3219_s8 }
 0x27b   :  { %v410_v11 = vpop.permute.xlu2 %409 }
 0x27c   :  { %v421_v12 = vmul.f32 %v410_v11, %v3403_v10 }
 0x27e   :  { %v425_v13 = vsel %vm312_vm0, %v421_v12, 0.0 }
 0x27f   :  { %426 = vadd.xlane.f32.xlu2 %v425_v13 }
 0x283   :  { %v412_v16 = vpop.permute.xlu2 %411 }
 0x284   :  { %v422_v17 = vmul.f32 %v412_v16, %v3407_v14 }
 0x286   :  { %v428_v18 = vsel %vm312_vm0, %v422_v17, 0.0 }
 0x287   :  { %429 = vadd.xlane.f32.xlu0 %v428_v18 }
 0x295   :  { %v416_v21 = vpop.permute.xlu1 %415  ;;  %v414_v22 = vpop.permute.xlu0 %413 }
 0x296   :  { %v424_v23 = vmul.f32 %v416_v21, %v3413_v20  ;;  %v423_v24 = vmul.f32 %v414_v22, %v3411_v19 }
 0x298   :  { %v431_v25 = vsel %vm312_vm0, %v423_v24, 0.0  ;;  %v434_v26 = vsel %vm312_vm0, %v424_v23, 0.0 }
 0x299   :  { %432 = vadd.xlane.f32.xlu1 %v431_v25  ;;  %435 = vadd.xlane.f32.xlu2 %v434_v26 }
 0x2f2   :  { %v427_v28 = vpop.xlane.xlu2 %426 }
 0x2f3   :  { %v443_v32 = vperm.slane %v427_v28, %v3419_v30 }
 0x2fa   :  { %v430_v29 = vpop.xlane.xlu0 %429 }
 0x2fb   :  { %v444_v31 = vperm.slane %v430_v29, %v3419_v30 }
 0x2fd   :  { %v448_v37 = vsel %vm447_vm7, %v444_v31, %v443_v32 }
 0x30c   :  { %v433_v33 = vpop.xlane.xlu1 %432  ;;  %v436_v34 = vpop.xlane.xlu2 %435 }
 0x30d   :  { %v445_v35 = vperm.slane %v433_v33, %v3419_v30  ;;  %v446_v36 = vperm.slane %v436_v34, %v3419_v30 }
 0x30f   :  { %v450_v38 = vsel %vm449_vm8, %v445_v35, %v448_v37  ;;  %v575_v35 = vpack.c.bf16 %v3393_v62, %v3393_v62  ;;  %v3444_v37 = vld [vmem:[#allocation11] sm:$0xff]  ;;  %v3459_v62 = vld [vmem:[%s4084_s10 + $0x10] sm:$0xff] }
 0x310   :  { %v452_v39 = vsel %vm451_vm9, %v446_v36, %v450_v38  ;;  %v3440_v36 = vld [vmem:[#allocation11 + $0x8] sm:$0xff]  ;;  %v3451_v38 = vld [vmem:[%s4084_s10 + $0x18] sm:$0xff] }
 0x311   :  { %v455_v40 = vsel %vm454_vm10, %v452_v39, -inf  ;;  %656 = vmatpush.bf16.msrb.mxu3 %v3440_v36  ;;  %950 = vmatpush.bf16.msrb.mxu1 %v3440_v36  ;;  %v3467_v39 = vld [vmem:[%s4084_s10 + $0x8] sm:$0xff] }
 0x312   :  { %456 = vmax.xlane.f32.xlu2 %v455_v40  ;;  %623 = vmatpush.bf16.msrb.mxu2 %v3451_v38  ;;  %v3473_v40 = vld [vmem:[%s4084_s10] sm:$0xff] }
 0x315   :  { %657 = vmatpush.bf16.msrb.mxu3 %v3444_v37  ;;  %951 = vmatpush.bf16.msrb.mxu1 %v3444_v37 }
 0x316   :  { %624 = vmatpush.bf16.msrb.mxu2 %v3459_v62 }
 0x319   :  { %1244 = vmatpush.bf16.msra.mxu1 %v3440_v36  ;;  %929 = vmatpush.bf16.msra.mxu3 %v3451_v38 }
 0x31a   :  { %625 = vmatpush.bf16.msrb.mxu2 %v3467_v39 }
 0x31d   :  { %1245 = vmatpush.bf16.msra.mxu1 %v3444_v37  ;;  %930 = vmatpush.bf16.msra.mxu3 %v3459_v62 }
 0x31e   :  { %626 = vmatpush.bf16.msrb.mxu2 %v3473_v40 }
 0x321   :  { %931 = vmatpush.bf16.msra.mxu3 %v3467_v39 }
 0x322   :  { %692 = vmatpush.bf16.msra.mxu2 %v3310_v2 }
 0x325   :  { %932 = vmatpush.bf16.msra.mxu3 %v3473_v40 }
 0x326   :  { %693 = vmatpush.bf16.msra.mxu2 %v3317_v4 }
 0x385   :  { %v457_v41 = vpop.xlane.xlu2 %456 }
 0x386   :  { %v459_v42 = vperm.slane %v457_v41, 0  ;;  %v460_v43 = vperm.slane %v457_v41, 1  ;;  %v461_v44 = vperm.slane %v457_v41, 2  ;;  %v462_v48 = vperm.slane %v457_v41, 3 }
 0x388   :  { %v467_v45 = vsub.f32 %v427_v28, %v459_v42  ;;  %v468_v46 = vsub.f32 %v430_v29, %v460_v43  ;;  %v469_v47 = vsub.f32 %v433_v33, %v461_v44  ;;  %v470_v54 = vsub.f32 %v436_v34, %v462_v48 }
 0x38a   :  { %v471_v49 = vmul.f32 1.442695, %v467_v45  ;;  %v473_v52 = vmul.f32 1.442695, %v468_v46  ;;  %v475_v53 = vmul.f32 1.442695, %v469_v47 }
 0x38b   :  { %v477_v55 = vmul.f32 1.442695, %v470_v54 }
 0x38c   :  { %2885 = vpow2.f32 %v471_v49 }
 0x38d   :  { %2887 = vpow2.f32 %v473_v52 }
 0x38e   :  { %2889 = vpow2.f32 %v475_v53 }
 0x38f   :  { %2891 = vpow2.f32 %v477_v55 }
 0x392   :  { %v2886_v59 = vpop.eup %2885 }
 0x393   :  { %v2888_v60 = vpop.eup %2887  ;;  %484 = vperm.xlu0 %2873, %v2886_v59  }
 0x394   :  { %v2890_v61 = vpop.eup %2889  ;;  %487 = vperm.xlu1 %2874, %v2888_v60  }
 0x395   :  { %490 = vperm.xlu2 %2875, %v2890_v61   ;;  %v2892_v63 = vpop.eup %2891 }
 0x39c   :  { %493 = vperm.xlu1 %2874, %v2892_v63  }
 0x3ef   :  { %v491_v8 = vpop.permute.xlu2 %490 }
 0x3f0   :  { %v497_v11 = vperm.slane %v491_v8, %v3419_v30 }
 0x405   :  { %v485_v5 = vpop.permute.xlu0 %484 }
 0x406   :  { %v488_v0 = vpop.permute.xlu1 %487  ;;  %v495_v7 = vperm.slane %v485_v5, %v3419_v30 }
 0x407   :  { %v496_v6 = vperm.slane %v488_v0, %v3419_v30 }
 0x409   :  { %v499_v9 = vsel %vm447_vm7, %v496_v6, %v495_v7 }
 0x40a   :  { %v500_v16 = vsel %vm449_vm8, %v497_v11, %v499_v9 }
 0x40e   :  { %v494_v12 = vpop.permute.xlu1 %493 }
 0x40f   :  { %v498_v13 = vperm.slane %v494_v12, %v3419_v30 }
 0x411   :  { %v501_v17 = vsel %vm451_vm9, %v498_v13, %v500_v16 }
 0x412   :  { %v503_v18 = vsel %vm454_vm10, %v501_v17, 0.0 }
 0x413   :  { %504 = vadd.xlane.f32.xlu2 %v503_v18 }
 0x486   :  { %v505_v21 = vpop.xlane.xlu2 %504 }
 0x487   :  { %2893 = vrcp.f32 %v505_v21 }
 0x48d   :  { %v2894_v22 = vpop.eup %2893 }
 0x48e   :  { %v507_v23 = vmul.f32 %v2894_v22, %v505_v21 }
 0x490   :  { %v508_v24 = vsub.f32 2.0, %v507_v23 }
 0x492   :  { %v509_v25 = vmul.f32 %v2894_v22, %v508_v24 }
 0x494   :  { %v512_v26 = vperm.slane %v509_v25, 1  ;;  %v511_v27 = vperm.slane %v509_v25, 0  ;;  %v514_v31 = vperm.slane %v509_v25, 3  ;;  %v513_v32 = vperm.slane %v509_v25, 2 }
 0x496   :  { %v520_v28 = vmul.f32 %v2888_v60, %v512_v26  ;;  %v519_v29 = vmul.f32 %v2886_v59, %v511_v27  ;;  %v522_v33 = vmul.f32 %v2892_v63, %v514_v31  ;;  %v521_v34 = vmul.f32 %v2890_v61, %v513_v32 }
 0x498   :  { %530 = vperm.xlu0 %2873, %v520_v28   ;;  %525 = vperm.xlu1 %2874, %v519_v29  }
 0x4a0   :  { %540 = vperm.xlu0 %2873, %v522_v33   ;;  %535 = vperm.xlu1 %2874, %v521_v34  }
 0x4a8   :  { %633 = vrot.lane.b32.xlu1 %v575_v35, %s3219_s8 }
 0x50a   :  { %v531_v41 = vpop.permute.xlu0 %530  ;;  %v526_v42 = vpop.permute.xlu1 %525 }
 0x50b   :  { %v544_v43 = vmul.f32 %v531_v41, %v3371_v51  ;;  %v543_v44 = vmul.f32 %v526_v42, %v3366_v50 }
 0x50d   :  { %v554_v45 = vsel %vm251_vm6, %v544_v43, 0.0  ;;  %v547_v46 = vsel %vm251_vm6, %v543_v44, 0.0 }
 0x50e   :  { %v555_v47 = vrot.slane %v554_v45, 4  ;;  %v548_v48 = vrot.slane %v547_v46, 4 }
 0x510   :  { %v556_v49 = vadd.f32 %v555_v47, %v554_v45  ;;  %v549_v52 = vadd.f32 %v548_v48, %v547_v46  ;;  %v118_v47 = vld [vmem:[%s4074_s0 + $0x10] sm:$0xf]  ;;  %v119_v48 = vld [vmem:[%s4074_s0 + $0x14] sm:$0xf] }
 0x511   :  { %138 = vst [vmem:[#allocation1 + $0x20] ss:$2 sm:$0xff] %v118_v47 }
 0x512   :  { %v557_v53 = vrot.slane %v556_v49, 2  ;;  %v550_v54 = vrot.slane %v549_v52, 2  ;;  %v541_v55 = vpop.permute.xlu0 %540  ;;  %v536_v59 = vpop.permute.xlu1 %535  ;;  %140 = vst [vmem:[#allocation1 + $0x21] ss:$2 sm:$0xff] %v119_v48 }
 0x513   :  { %v546_v60 = vmul.f32 %v541_v55, %v3387_v58  ;;  %v545_v61 = vmul.f32 %v536_v59, %v3382_v57 }
 0x514   :  { %v558_v63 = vadd.f32 %v557_v53, %v556_v49  ;;  %v551_v0 = vadd.f32 %v550_v54, %v549_v52  ;;  %v120_v49 = vld [vmem:[%s4074_s0 + $0x18] sm:$0xf]  ;;  %v121_v52 = vld [vmem:[%s4074_s0 + $0x1c] sm:$0xf] }
 0x515   :  { %v568_v5 = vsel %vm251_vm6, %v546_v60, 0.0  ;;  %v561_v6 = vsel %vm251_vm6, %v545_v61, 0.0  ;;  %142 = vst [vmem:[#allocation1 + $0x30] ss:$2 sm:$0xff] %v120_v49 }
 0x516   :  { %v559_v7 = vrot.slane %v558_v63, 1  ;;  %v552_v8 = vrot.slane %v551_v0, 1  ;;  %v569_v9 = vrot.slane %v568_v5, 4  ;;  %v562_v11 = vrot.slane %v561_v6, 4  ;;  %144 = vst [vmem:[#allocation1 + $0x31] ss:$2 sm:$0xff] %v121_v52 }
 0x518   :  { %v570_v12 = vadd.f32 %v569_v9, %v568_v5  ;;  %v563_v13 = vadd.f32 %v562_v11, %v561_v6  ;;  %v560_v16 = vadd.f32 %v559_v7, %v558_v63  ;;  %v553_v17 = vadd.f32 %v552_v8, %v551_v0 }
 0x519   :  { %v147_v53 = vld.sshfl [vmem:[#allocation1 + $0x20] sm:$0xff pattern:$0x75316420] }
 0x51a   :  { %v571_v18 = vrot.slane %v570_v12, 2  ;;  %v564_v21 = vrot.slane %v563_v13, 2  ;;  %v634_v22 = vpop.permute.xlu1 %633  ;;  %v577_v25 = vpack.c.bf16 %v560_v16, %v560_v16  ;;  %v576_v26 = vpack.c.bf16 %v553_v17, %v553_v17 }
 0x51b   :  { %2812 = vmatmul.msk.bf16.vlgmr.msrb.gmra.mxu3 %vm312_vm0, %v634_v22 }
 0x51c   :  { %v572_v23 = vadd.f32 %v571_v18, %v570_v12  ;;  %v565_v24 = vadd.f32 %v564_v21, %v563_v13  ;;  %1223 = vmatpush.bf16.msrb.mxu3 %v3451_v38  ;;  %v585_v32 = vunpack.c.l.b16 %v577_v25  ;;  %v584_v33 = vunpack.c.l.b16 %v576_v26  ;;  %v667_v18 = vld [vmem:[#allocation2 + $0x4] sm:$0xf] }
 0x51d   :  { %v148_v54 = vld.sshfl [vmem:[#allocation1 + $0x30] sm:$0xff pattern:$0x75316420] }
 0x51e   :  { %v573_v27 = vrot.slane %v572_v23, 1  ;;  %v566_v28 = vrot.slane %v565_v24, 1  ;;  %v588_v43 = vsel %vm447_vm7, %v585_v32, %v584_v33  ;;  %v154_v55 = vpack.c.bf16 %v148_v54, %v147_v53 }
 0x520   :  { %v574_v29 = vadd.f32 %v573_v27, %v572_v23  ;;  %v567_v31 = vadd.f32 %v566_v28, %v565_v24  ;;  %1224 = vmatpush.bf16.msrb.mxu3 %v3459_v62  ;;  %2750 = vmatmul.msk.bf16.gmra.mxu0 %vm167_vm1, %v154_v55 }
 0x522   :  { %v579_v34 = vpack.c.bf16 %v574_v29, %v574_v29  ;;  %v578_v35 = vpack.c.bf16 %v567_v31, %v567_v31 }
 0x524   :  { %v587_v41 = vunpack.c.l.b16 %v579_v34  ;;  %v586_v42 = vunpack.c.l.b16 %v578_v35  ;;  %1225 = vmatpush.bf16.msrb.mxu3 %v3467_v39 }
 0x526   :  { %v589_v44 = vsel %vm449_vm8, %v586_v42, %v588_v43 }
 0x527   :  { %v590_v45 = vsel %vm451_vm9, %v587_v41, %v589_v44 }
 0x528   :  { %v591_v46 = vpack.c.b16 %v590_v45, %v590_v45  ;;  %1226 = vmatpush.bf16.msrb.mxu3 %v3473_v40 }
 0x52a   :  { %2803 = vmatmul.msk.bf16.vlgmr.msrb.gmra.mxu2 %vm251_vm6, %v591_v46 }
 0x52b   :  { %986 = vmatpush.bf16.msrb.mxu2 %v3310_v2 }
 0x52f   :  { %987 = vmatpush.bf16.msrb.mxu2 %v3317_v4 }
 0x53a   :  { %2814 = vmatmul.msk.bf16.vlgmr.msra.gmra.mxu2 %vm312_vm0, %v634_v22 }
 0x53b   :  { %1280 = vmatpush.bf16.msra.mxu2 %v3310_v2 }
 0x53f   :  { %1281 = vmatpush.bf16.msra.mxu2 %v3317_v4 }
 0x59d   :  { %v188_v9 = vpop.f32.mrf.mxu0 }
 0x59e   :  { %v659_v59 = vpop.f32.mrf.mxu3  ;;  %v189_v11 = vadd.f32 %v3344_v15, %v188_v9 }
 0x5a0   :  { %v199_v12 = vrot.slane %v189_v11, 4  ;;  %209 = vst [vmem:[#allocation2 + $0x10] sm:$0xf] %v189_v11 }
 0x5a2   :  { %210 = vst [vmem:[#allocation2 + $0x14] sm:$0xf] %v199_v12 }
 0x5a5   :  { %v190_v13 = vpop.f32.mrf.mxu0 }
 0x5a6   :  { %v661_v60 = vpop.f32.mrf.mxu3  ;;  %v191_v16 = vadd.f32 %v3344_v15, %v190_v13 }
 0x5a8   :  { %v200_v17 = vrot.slane %v191_v16, 4  ;;  %211 = vst [vmem:[#allocation2 + $0x18] sm:$0xf] %v191_v16 }
 0x5aa   :  { %212 = vst [vmem:[#allocation2 + $0x1c] sm:$0xf] %v200_v17 }
 0x5ad   :  { %v628_v61 = vpop.f32.mrf.mxu2 }
 0x5ae   :  { %v660_v63 = vadd.f32 %v659_v59, %v628_v61 }
 0x5b0   :  { %2895 = vtanh.f32 %v660_v63 }
 0x5b5   :  { %v630_v0 = vpop.f32.mrf.mxu2 }
 0x5b6   :  { %v2896_v5 = vpop.eup %2895 }
 0x5b7   :  { %665 = vst.msk [vmem:[#allocation12] sm:$0xf] %vm664_vm11, %v2896_v5  ;;  %v668_v6 = vpack.c.bf16 %v2896_v5, %v2896_v5 }
 0x5b9   :  { %2813 = vmatmul.msk.bf16.vlgmr.msrb.gmra.mxu0 %vm312_vm0, %v668_v6 }
 0x5ba   :  { %1266 = vmatpush.bf16.msrb.mxu0 %v3308_v1 }
 0x5bd   :  { %v695_v7 = vpop.f32.mrf.mxu2 }
 0x5be   :  { %1267 = vmatpush.bf16.msrb.mxu0 %v3315_v3 }
 0x5c5   :  { %v697_v8 = vpop.f32.mrf.mxu2 }
 0x636   :  { %v681_v21 = vpop.f32.mrf.mxu0 }
 0x637   :  { %v685_v22 = vadd.f32 %v681_v21, %v667_v18 }
 0x639   :  { %v699_v1 = vadd.f32 %v695_v7, %v685_v22 }
 0x63b   :  { %2897 = vtanh.f32 %v699_v1  ;;  %v2815_v24 = vmul.f32 -1.442695, %v699_v1 }
 0x63d   :  { %2899 = vpow2.f32 %v2815_v24 }
 0x63e   :  { %v683_v23 = vpop.f32.mrf.mxu0 }
 0x641   :  { %v2898_v3 = vpop.eup %2897 }
 0x642   :  { %722 = vrot.lane.b32.xlu0 %v2898_v3, %s3213_s3 }
 0x643   :  { %v2900_v25 = vpop.eup %2899 }
 0x644   :  { %v703_v26 = vadd.f32 1.0, %v2900_v25 }
 0x646   :  { %2901 = vrcp.f32 %v703_v26  ;;  %v715_v32 = vand.u32 2147483648, %v703_v26  ;;  %vm709_vm13 = vweird.f32 %v703_v26  ;;  %v713_v33 = vand.u32 2147483647, %v703_v26 }
 0x648   :  { %v716_v35 = vor.u32 1.1754944e-38, %v715_v32  ;;  %vm714_vm15 = vcmp.eq.f32.partialorder %v713_v33, 8.507059e+37 }
 0x64c   :  { %v2902_v27 = vpop.eup %2901 }
 0x64d   :  { %v705_v28 = vmul.f32 %v2902_v27, %v703_v26  ;;  %vm710_vm12 = vweird.f32 %v2902_v27 }
 0x64e   :  { %vm711_vm14 = vmor %vm709_vm13, %vm710_vm12 }
 0x64f   :  { %v706_v15 = vsub.f32 1.0, %v705_v28 }
 0x651   :  { %v707_v29 = vmul.f32 %v2902_v27, %v706_v15 }
 0x653   :  { %v708_v31 = vadd.f32 %v2902_v27, %v707_v29 }
 0x655   :  { %v712_v34 = vsel %vm711_vm14, %v2902_v27, %v708_v31 }
 0x656   :  { %v717_v42 = vsel %vm714_vm15, %v716_v35, %v712_v34 }
 0x657   :  { %v720_v44 = vmul.f32 %v717_v42, %v3376_v56 }
 0x6b4   :  { %v723_v41 = vpop.permute.xlu0 %722 }
 0x6b5   :  { %v725_v43 = vmul.f32 %v723_v41, %v717_v42 }
 0x6b7   :  { %727 = vrot.lane.b32.xlu1 %v725_v43, %s3219_s8 }
 0x729   :  { %v728_v45 = vpop.permute.xlu1 %727 }
 0x72a   :  { %v3524_v46 = vadd.f32 %v728_v45, %v720_v44 }
 0x72c   :  { %2903 = vtanh.f32 %v3524_v46 }
 0x732   :  { %v2904_v47 = vpop.eup %2903 }
 0x733   :  { %733 = vrot.lane.b32.xlu0 %v2904_v47, %s3213_s3 }
 0x7a5   :  { %v734_v48 = vpop.permute.xlu0 %733 }
 0x7a6   :  { %v3528_v49 = vmul.f32 %v734_v48, %v717_v42 }
 0x7a8   :  { %v741_v52 = vperm.slane %v3528_v49, 0  ;;  %v739_v53 = vrot.slane %v3528_v49, 2  ;;  %v738_v54 = vrot.slane %v3528_v49, 1  ;;  %v740_v59 = vrot.slane %v3528_v49, 3 }
 0x7aa   :  { %745 = vrot.lane.b32.xlu1 %v741_v52, %s3219_s8  ;;  %v743_v56 = vperm.slane %v739_v53, 0  ;;  %v742_v55 = vperm.slane %v738_v54, 0  ;;  %v744_v60 = vperm.slane %v740_v59, 0 }
 0x7ac   :  { %749 = vrot.lane.b32.xlu2 %v743_v56, %s3219_s8  ;;  %747 = vrot.lane.b32.xlu0 %v742_v55, %s3219_s8 }
 0x7b2   :  { %751 = vrot.lane.b32.xlu1 %v744_v60, %s3219_s8 }
 0x806   :  { %v750_v61 = vpop.permute.xlu2 %749 }
 0x807   :  { %v759_v63 = vmul.f32 %v750_v61, %v3411_v19 }
 0x809   :  { %v767_v0 = vsel %vm312_vm0, %v759_v63, 0.0 }
 0x80a   :  { %768 = vadd.xlane.f32.xlu2 %v767_v0 }
 0x81c   :  { %v746_v5 = vpop.permute.xlu1 %745 }
 0x81d   :  { %v757_v6 = vmul.f32 %v746_v5, %v3403_v10 }
 0x81e   :  { %v748_v7 = vpop.permute.xlu0 %747 }
 0x81f   :  { %v758_v8 = vmul.f32 %v748_v7, %v3407_v14  ;;  %v761_v9 = vsel %vm312_vm0, %v757_v6, 0.0 }
 0x820   :  { %762 = vadd.xlane.f32.xlu0 %v761_v9 }
 0x821   :  { %v764_v11 = vsel %vm312_vm0, %v758_v8, 0.0 }
 0x822   :  { %765 = vadd.xlane.f32.xlu1 %v764_v11 }
 0x824   :  { %v752_v12 = vpop.permute.xlu1 %751 }
 0x825   :  { %v760_v13 = vmul.f32 %v752_v12, %v3413_v20 }
 0x827   :  { %v770_v16 = vsel %vm312_vm0, %v760_v13, 0.0 }
 0x828   :  { %771 = vadd.xlane.f32.xlu0 %v770_v16 }
 0x87d   :  { %v769_v22 = vpop.xlane.xlu2 %768 }
 0x87e   :  { %v779_v3 = vperm.slane %v769_v22, %v3419_v30 }
 0x893   :  { %v763_v17 = vpop.xlane.xlu0 %762 }
 0x894   :  { %v777_v1 = vperm.slane %v763_v17, %v3419_v30 }
 0x895   :  { %v766_v18 = vpop.xlane.xlu1 %765 }
 0x896   :  { %v778_v21 = vperm.slane %v766_v18, %v3419_v30 }
 0x898   :  { %v781_v23 = vsel %vm447_vm7, %v778_v21, %v777_v1 }
 0x899   :  { %v782_v26 = vsel %vm449_vm8, %v779_v3, %v781_v23 }
 0x89b   :  { %v772_v24 = vpop.xlane.xlu0 %771 }
 0x89c   :  { %v780_v25 = vperm.slane %v772_v24, %v3419_v30 }
 0x89e   :  { %v783_v27 = vsel %vm451_vm9, %v780_v25, %v782_v26  ;;  %v905_v26 = vpack.c.bf16 %v3528_v49, %v3528_v49 }
 0x89f   :  { %v785_v28 = vsel %vm454_vm10, %v783_v27, -inf }
 0x8a0   :  { %786 = vmax.xlane.f32.xlu1 %v785_v28 }
 0x913   :  { %v787_v15 = vpop.xlane.xlu1 %786 }
 0x914   :  { %v789_v29 = vperm.slane %v787_v15, 0  ;;  %v790_v31 = vperm.slane %v787_v15, 1  ;;  %v791_v32 = vperm.slane %v787_v15, 2  ;;  %v792_v33 = vperm.slane %v787_v15, 3 }
 0x916   :  { %v797_v34 = vsub.f32 %v763_v17, %v789_v29  ;;  %v798_v35 = vsub.f32 %v766_v18, %v790_v31  ;;  %v799_v41 = vsub.f32 %v769_v22, %v791_v32  ;;  %v800_v45 = vsub.f32 %v772_v24, %v792_v33 }
 0x918   :  { %v801_v42 = vmul.f32 1.442695, %v797_v34  ;;  %v803_v43 = vmul.f32 1.442695, %v798_v35  ;;  %v805_v44 = vmul.f32 1.442695, %v799_v41 }
 0x919   :  { %v807_v47 = vmul.f32 1.442695, %v800_v45 }
 0x91a   :  { %2905 = vpow2.f32 %v801_v42 }
 0x91b   :  { %2907 = vpow2.f32 %v803_v43 }
 0x91c   :  { %2909 = vpow2.f32 %v805_v44 }
 0x91d   :  { %2911 = vpow2.f32 %v807_v47 }
 0x920   :  { %v2906_v48 = vpop.eup %2905 }
 0x921   :  { %v2908_v52 = vpop.eup %2907  ;;  %814 = vperm.xlu0 %2873, %v2906_v48  }
 0x922   :  { %v2910_v53 = vpop.eup %2909  ;;  %817 = vperm.xlu1 %2874, %v2908_v52  }
 0x923   :  { %820 = vperm.xlu2 %2875, %v2910_v53   ;;  %v2912_v54 = vpop.eup %2911 }
 0x929   :  { %823 = vperm.xlu0 %2873, %v2912_v54  }
 0x97d   :  { %v821_v61 = vpop.permute.xlu2 %820 }
 0x97e   :  { %v827_v0 = vperm.slane %v821_v61, %v3419_v30 }
 0x993   :  { %v815_v56 = vpop.permute.xlu0 %814 }
 0x994   :  { %v818_v55 = vpop.permute.xlu1 %817  ;;  %v825_v60 = vperm.slane %v815_v56, %v3419_v30 }
 0x995   :  { %v826_v59 = vperm.slane %v818_v55, %v3419_v30 }
 0x997   :  { %v829_v63 = vsel %vm447_vm7, %v826_v59, %v825_v60 }
 0x998   :  { %v830_v7 = vsel %vm449_vm8, %v827_v0, %v829_v63 }
 0x99b   :  { %v824_v5 = vpop.permute.xlu0 %823 }
 0x99c   :  { %v828_v6 = vperm.slane %v824_v5, %v3419_v30 }
 0x99e   :  { %v831_v8 = vsel %vm451_vm9, %v828_v6, %v830_v7 }
 0x99f   :  { %v833_v9 = vsel %vm454_vm10, %v831_v8, 0.0 }
 0x9a0   :  { %834 = vadd.xlane.f32.xlu1 %v833_v9 }
 0xa13   :  { %v835_v11 = vpop.xlane.xlu1 %834 }
 0xa14   :  { %2913 = vrcp.f32 %v835_v11 }
 0xa1a   :  { %v2914_v12 = vpop.eup %2913 }
 0xa1b   :  { %v837_v13 = vmul.f32 %v2914_v12, %v835_v11 }
 0xa1d   :  { %v838_v16 = vsub.f32 2.0, %v837_v13 }
 0xa1f   :  { %v839_v17 = vmul.f32 %v2914_v12, %v838_v16 }
 0xa21   :  { %v842_v18 = vperm.slane %v839_v17, 1  ;;  %v841_v21 = vperm.slane %v839_v17, 0  ;;  %v844_v23 = vperm.slane %v839_v17, 3  ;;  %v843_v3 = vperm.slane %v839_v17, 2 }
 0xa23   :  { %v850_v22 = vmul.f32 %v2908_v52, %v842_v18  ;;  %v849_v1 = vmul.f32 %v2906_v48, %v841_v21  ;;  %v852_v24 = vmul.f32 %v2912_v54, %v844_v23  ;;  %v851_v25 = vmul.f32 %v2910_v53, %v843_v3 }
 0xa25   :  { %860 = vperm.xlu2 %2875, %v850_v22   ;;  %855 = vperm.xlu0 %2873, %v849_v1  }
 0xa2d   :  { %870 = vperm.xlu2 %2875, %v852_v24   ;;  %865 = vperm.xlu0 %2873, %v851_v25  }
 0xa35   :  { %939 = vrot.lane.b32.xlu0 %v905_v26, %s3219_s8 }
 0xa7f   :  { %v861_v27 = vpop.permute.xlu2 %860 }
 0xa80   :  { %v874_v15 = vmul.f32 %v861_v27, %v3371_v51 }
 0xa82   :  { %v884_v31 = vsel %vm251_vm6, %v874_v15, 0.0 }
 0xa83   :  { %v885_v33 = vrot.slane %v884_v31, 4 }
 0xa85   :  { %v886_v41 = vadd.f32 %v885_v33, %v884_v31  ;;  %v961_v33 = vld [vmem:[#allocation2 + $0x8] sm:$0xf] }
 0xa87   :  { %v871_v28 = vpop.permute.xlu2 %870  ;;  %v887_v45 = vrot.slane %v886_v41, 2 }
 0xa88   :  { %v876_v29 = vmul.f32 %v871_v28, %v3387_v58 }
 0xa89   :  { %v888_v58 = vadd.f32 %v887_v45, %v886_v41 }
 0xa8a   :  { %v898_v32 = vsel %vm251_vm6, %v876_v29, 0.0 }
 0xa8b   :  { %v899_v34 = vrot.slane %v898_v32, 4  ;;  %v889_v61 = vrot.slane %v888_v58, 1 }
 0xa8d   :  { %v900_v43 = vadd.f32 %v899_v34, %v898_v32  ;;  %v890_v7 = vadd.f32 %v889_v61, %v888_v58 }
 0xa8f   :  { %v901_v48 = vrot.slane %v900_v43, 2  ;;  %v907_v12 = vpack.c.bf16 %v890_v7, %v890_v7 }
 0xa91   :  { %v902_v56 = vadd.f32 %v901_v48, %v900_v43  ;;  %v915_v21 = vunpack.c.l.b16 %v907_v12 }
 0xa93   :  { %v903_v63 = vrot.slane %v902_v56, 1 }
 0xa97   :  { %v856_v35 = vpop.permute.xlu0 %855 }
 0xa98   :  { %v873_v42 = vmul.f32 %v856_v35, %v3366_v50 }
 0xa9a   :  { %v877_v49 = vsel %vm251_vm6, %v873_v42, 0.0 }
 0xa9b   :  { %v878_v44 = vrot.slane %v877_v49, 4 }
 0xa9d   :  { %v879_v47 = vadd.f32 %v878_v44, %v877_v49 }
 0xa9f   :  { %v880_v51 = vrot.slane %v879_v47, 2  ;;  %v866_v52 = vpop.permute.xlu0 %865 }
 0xaa0   :  { %v875_v53 = vmul.f32 %v866_v52, %v3382_v57  ;;  %v904_v57 = vadd.f32 %v903_v63, %v902_v56 }
 0xaa1   :  { %v881_v54 = vadd.f32 %v880_v51, %v879_v47 }
 0xaa2   :  { %v891_v55 = vsel %vm251_vm6, %v875_v53, 0.0  ;;  %v909_v16 = vpack.c.bf16 %v904_v57, %v904_v57 }
 0xaa3   :  { %v882_v59 = vrot.slane %v881_v54, 1  ;;  %v892_v60 = vrot.slane %v891_v55, 4 }
 0xaa4   :  { %v917_v1 = vunpack.c.l.b16 %v909_v16 }
 0xaa5   :  { %v893_v50 = vadd.f32 %v892_v60, %v891_v55  ;;  %v883_v0 = vadd.f32 %v882_v59, %v881_v54 }
 0xaa7   :  { %v894_v5 = vrot.slane %v893_v50, 2  ;;  %v940_v6 = vpop.permute.xlu0 %939  ;;  %v906_v9 = vpack.c.bf16 %v883_v0, %v883_v0 }
 0xaa8   :  { %2817 = vmatmul.msk.bf16.vlgmr.msrb.gmra.mxu1 %vm312_vm0, %v940_v6  ;;  %2819 = vmatmul.msk.bf16.vlgmr.msrb.gmra.mxu2 %vm312_vm0, %v940_v6 }
 0xaa9   :  { %v895_v8 = vadd.f32 %v894_v5, %v893_v50  ;;  %1538 = vmatpush.bf16.msrb.mxu1 %v3440_v36  ;;  %1574 = vmatpush.bf16.msrb.mxu2 %v3310_v2  ;;  %v914_v17 = vunpack.c.l.b16 %v906_v9 }
 0xaab   :  { %v896_v11 = vrot.slane %v895_v8, 1  ;;  %v918_v23 = vsel %vm447_vm7, %v915_v21, %v914_v17 }
 0xaad   :  { %v897_v13 = vadd.f32 %v896_v11, %v895_v8  ;;  %1539 = vmatpush.bf16.msrb.mxu1 %v3444_v37  ;;  %1575 = vmatpush.bf16.msrb.mxu2 %v3317_v4 }
 0xaaf   :  { %v908_v18 = vpack.c.bf16 %v897_v13, %v897_v13 }
 0xab1   :  { %v916_v22 = vunpack.c.l.b16 %v908_v18 }
 0xab3   :  { %v919_v3 = vsel %vm449_vm8, %v916_v22, %v918_v23 }
 0xab4   :  { %v920_v2 = vsel %vm451_vm9, %v917_v1, %v919_v3 }
 0xab5   :  { %v921_v24 = vpack.c.b16 %v920_v2, %v920_v2 }
 0xab7   :  { %2816 = vmatmul.msk.bf16.vlgmr.msra.gmra.mxu3 %vm251_vm6, %v921_v24 }
 0xab8   :  { %1517 = vmatpush.bf16.msra.mxu3 %v3451_v38  ;;  %v3592_v38 = vld [vmem:[%s4080_s6 + $0x8] sm:$0xff] }
 0xabc   :  { %1518 = vmatpush.bf16.msra.mxu3 %v3459_v62  ;;  %v3598_v62 = vld [vmem:[%s4080_s6] sm:$0xff] }
 0xac0   :  { %1519 = vmatpush.bf16.msra.mxu3 %v3467_v39 }
 0xac4   :  { %1520 = vmatpush.bf16.msra.mxu3 %v3473_v40 }
 0xb25   :  { %v953_v4 = vpop.f32.mrf.mxu1 }
 0xb2b   :  { %v989_v25 = vpop.f32.mrf.mxu2 }
 0xb2d   :  { %v955_v26 = vpop.f32.mrf.mxu1 }
 0xb33   :  { %v991_v27 = vpop.f32.mrf.mxu2 }
 0xb3a   :  { %v934_v28 = vpop.f32.mrf.mxu3 }
 0xb3b   :  { %v954_v15 = vadd.f32 %v953_v4, %v934_v28 }
 0xb3d   :  { %2915 = vtanh.f32 %v954_v15 }
 0xb42   :  { %v936_v29 = vpop.f32.mrf.mxu3 }
 0xb43   :  { %v2916_v31 = vpop.eup %2915 }
 0xb44   :  { %959 = vst.msk [vmem:[#allocation12 + $0x4] sm:$0xf] %vm664_vm11, %v2916_v31  ;;  %v962_v32 = vpack.c.bf16 %v2916_v31, %v2916_v31 }
 0xb46   :  { %2818 = vmatmul.msk.bf16.vlgmr.msra.gmra.mxu0 %vm312_vm0, %v962_v32 }
 0xb47   :  { %1560 = vmatpush.bf16.msra.mxu0 %v3592_v38 }
 0xb4b   :  { %1561 = vmatpush.bf16.msra.mxu0 %v3598_v62 }
 0xbc3   :  { %v975_v34 = vpop.f32.mrf.mxu0 }
 0xbc4   :  { %v979_v35 = vadd.f32 %v975_v34, %v961_v33 }
 0xbc6   :  { %v993_v41 = vadd.f32 %v989_v25, %v979_v35 }
 0xbc8   :  { %2917 = vtanh.f32 %v993_v41  ;;  %v2820_v49 = vmul.f32 -1.442695, %v993_v41 }
 0xbca   :  { %2919 = vpow2.f32 %v2820_v49 }
 0xbcb   :  { %v977_v42 = vpop.f32.mrf.mxu0 }
 0xbce   :  { %v2918_v43 = vpop.eup %2917 }
 0xbcf   :  { %1016 = vrot.lane.b32.xlu2 %v2918_v43, %s3213_s3 }
 0xbd0   :  { %v2920_v44 = vpop.eup %2919 }
 0xbd1   :  { %v997_v45 = vadd.f32 1.0, %v2920_v44 }
 0xbd3   :  { %2921 = vrcp.f32 %v997_v45  ;;  %v1009_v53 = vand.u32 2147483648, %v997_v45  ;;  %vm1003_vm2 = vweird.f32 %v997_v45  ;;  %v1007_v54 = vand.u32 2147483647, %v997_v45 }
 0xbd5   :  { %v1010_v55 = vor.u32 1.1754944e-38, %v1009_v53  ;;  %vm1008_vm4 = vcmp.eq.f32.partialorder %v1007_v54, 8.507059e+37 }
 0xbd9   :  { %v2922_v47 = vpop.eup %2921 }
 0xbda   :  { %v999_v48 = vmul.f32 %v2922_v47, %v997_v45  ;;  %vm1004_vm1 = vweird.f32 %v2922_v47 }
 0xbdb   :  { %vm1005_vm3 = vmor %vm1003_vm2, %vm1004_vm1 }
 0xbdc   :  { %v1000_v51 = vsub.f32 1.0, %v999_v48 }
 0xbde   :  { %v1001_v52 = vmul.f32 %v2922_v47, %v1000_v51 }
 0xbe0   :  { %v1002_v58 = vadd.f32 %v2922_v47, %v1001_v52 }
 0xbe2   :  { %v1006_v56 = vsel %vm1005_vm3, %v2922_v47, %v1002_v58 }
 0xbe3   :  { %v1011_v60 = vsel %vm1008_vm4, %v1010_v55, %v1006_v56 }
 0xbe4   :  { %v1014_v50 = vmul.f32 %v1011_v60, %v3524_v46 }
 0xc29   :  { %v1017_v59 = vpop.permute.xlu2 %1016 }
 0xc2a   :  { %v1019_v61 = vmul.f32 %v1017_v59, %v1011_v60 }
 0xc2c   :  { %1021 = vrot.lane.b32.xlu0 %v1019_v61, %s3219_s8 }
 0xc9e   :  { %v1022_v63 = vpop.permute.xlu0 %1021 }
 0xc9f   :  { %v3604_v0 = vadd.f32 %v1022_v63, %v1014_v50 }
 0xca1   :  { %2923 = vtanh.f32 %v3604_v0 }
 0xca7   :  { %v2924_v5 = vpop.eup %2923 }
 0xca8   :  { %1027 = vrot.lane.b32.xlu2 %v2924_v5, %s3213_s3 }
 0xd02   :  { %v1028_v6 = vpop.permute.xlu2 %1027 }
 0xd03   :  { %v3608_v7 = vmul.f32 %v1028_v6, %v1011_v60 }
 0xd05   :  { %v1035_v8 = vperm.slane %v3608_v7, 0  ;;  %v1034_v57 = vrot.slane %v3608_v7, 3  ;;  %v1032_v9 = vrot.slane %v3608_v7, 1  ;;  %v1033_v12 = vrot.slane %v3608_v7, 2 }
 0xd07   :  { %1039 = vrot.lane.b32.xlu0 %v1035_v8, %s3219_s8  ;;  %v1038_v46 = vperm.slane %v1034_v57, 0  ;;  %v1036_v11 = vperm.slane %v1032_v9, 0  ;;  %v1037_v13 = vperm.slane %v1033_v12, 0 }
 0xd09   :  { %1045 = vrot.lane.b32.xlu1 %v1038_v46, %s3219_s8  ;;  %1041 = vrot.lane.b32.xlu2 %v1036_v11, %s3219_s8 }
 0xd0f   :  { %1043 = vrot.lane.b32.xlu0 %v1037_v13, %s3219_s8 }
 0xd63   :  { %v1042_v16 = vpop.permute.xlu2 %1041 }
 0xd64   :  { %v1052_v17 = vmul.f32 %v1042_v16, %v3407_v14 }
 0xd66   :  { %v1058_v18 = vsel %vm312_vm0, %v1052_v17, 0.0 }
 0xd67   :  { %1059 = vadd.xlane.f32.xlu0 %v1058_v18 }
 0xd79   :  { %v1040_v21 = vpop.permute.xlu0 %1039 }
 0xd7a   :  { %v1051_v22 = vmul.f32 %v1040_v21, %v3403_v10 }
 0xd7b   :  { %v1046_v23 = vpop.permute.xlu1 %1045 }
 0xd7c   :  { %v1055_v1 = vsel %vm312_vm0, %v1051_v22, 0.0  ;;  %v1054_v3 = vmul.f32 %v1046_v23, %v3413_v20 }
 0xd7d   :  { %1056 = vadd.xlane.f32.xlu2 %v1055_v1 }
 0xd7e   :  { %v1064_v25 = vsel %vm312_vm0, %v1054_v3, 0.0 }
 0xd81   :  { %v1044_v2 = vpop.permute.xlu0 %1043 }
 0xd82   :  { %v1053_v24 = vmul.f32 %v1044_v2, %v3411_v19 }
 0xd84   :  { %v1061_v4 = vsel %vm312_vm0, %v1053_v24, 0.0 }
 0xd85   :  { %1062 = vadd.xlane.f32.xlu1 %v1061_v4  ;;  %1065 = vadd.xlane.f32.xlu2 %v1064_v25 }
 0xdda   :  { %v1060_v27 = vpop.xlane.xlu0 %1059 }
 0xddb   :  { %v1072_v15 = vperm.slane %v1060_v27, %v3419_v30 }
 0xdf0   :  { %v1057_v26 = vpop.xlane.xlu2 %1056 }
 0xdf1   :  { %v1071_v28 = vperm.slane %v1057_v26, %v3419_v30 }
 0xdf3   :  { %v1075_v34 = vsel %vm447_vm7, %v1072_v15, %v1071_v28  ;;  %v1199_v15 = vpack.c.bf16 %v3608_v7, %v3608_v7 }
 0xdf8   :  { %v1063_v29 = vpop.xlane.xlu1 %1062  ;;  %v1066_v31 = vpop.xlane.xlu2 %1065 }
 0xdf9   :  { %v1073_v32 = vperm.slane %v1063_v29, %v3419_v30  ;;  %v1074_v33 = vperm.slane %v1066_v31, %v3419_v30 }
 0xdfb   :  { %v1076_v35 = vsel %vm449_vm8, %v1073_v32, %v1075_v34  ;;  %v3648_v32 = vld [vmem:[%s4075_s1] sm:$0xff]  ;;  %v3654_v34 = vld [vmem:[%s4075_s1 + $0x10] sm:$0xff] }
 0xdfc   :  { %v1077_v41 = vsel %vm451_vm9, %v1074_v33, %v1076_v35 }
 0xdfd   :  { %v1079_v42 = vsel %vm454_vm10, %v1077_v41, -inf }
 0xdfe   :  { %1080 = vmax.xlane.f32.xlu0 %v1079_v42 }
 0xe71   :  { %v1081_v43 = vpop.xlane.xlu0 %1080 }
 0xe72   :  { %v1083_v49 = vperm.slane %v1081_v43, 0  ;;  %v1084_v44 = vperm.slane %v1081_v43, 1  ;;  %v1085_v45 = vperm.slane %v1081_v43, 2  ;;  %v1086_v47 = vperm.slane %v1081_v43, 3 }
 0xe74   :  { %v1091_v48 = vsub.f32 %v1057_v26, %v1083_v49  ;;  %v1092_v51 = vsub.f32 %v1060_v27, %v1084_v44  ;;  %v1093_v52 = vsub.f32 %v1063_v29, %v1085_v45  ;;  %v1094_v56 = vsub.f32 %v1066_v31, %v1086_v47  ;;  %v3662_v49 = vld [vmem:[#allocation9 + $0x8] sm:$0xff]  ;;  %v3666_v47 = vld [vmem:[#allocation9] sm:$0xff] }
 0xe76   :  { %v1095_v58 = vmul.f32 1.442695, %v1091_v48  ;;  %v1097_v53 = vmul.f32 1.442695, %v1092_v51  ;;  %v1099_v54 = vmul.f32 1.442695, %v1093_v52 }
 0xe77   :  { %v1101_v55 = vmul.f32 1.442695, %v1094_v56  ;;  %v3672_v52 = vld [vmem:[%s4075_s1 + $0x8] sm:$0xff] }
 0xe78   :  { %2925 = vpow2.f32 %v1095_v58 }
 0xe79   :  { %2927 = vpow2.f32 %v1097_v53 }
 0xe7a   :  { %2929 = vpow2.f32 %v1099_v54 }
 0xe7b   :  { %2931 = vpow2.f32 %v1101_v55 }
 0xe7e   :  { %v2926_v59 = vpop.eup %2925 }
 0xe7f   :  { %v2928_v60 = vpop.eup %2927  ;;  %1108 = vperm.xlu2 %2875, %v2926_v59  }
 0xe80   :  { %v2930_v61 = vpop.eup %2929  ;;  %1111 = vperm.xlu0 %2873, %v2928_v60  }
 0xe81   :  { %1114 = vperm.xlu1 %2874, %v2930_v61   ;;  %v2932_v50 = vpop.eup %2931 }
 0xe87   :  { %1117 = vperm.xlu2 %2875, %v2932_v50  }
 0xed9   :  { %v1109_v63 = vpop.permute.xlu2 %1108 }
 0xeda   :  { %v1119_v8 = vperm.slane %v1109_v63, %v3419_v30 }
 0xee1   :  { %v1118_v5 = vpop.permute.xlu2 %1117 }
 0xee2   :  { %v1122_v11 = vperm.slane %v1118_v5, %v3419_v30 }
 0xef2   :  { %v1112_v6 = vpop.permute.xlu0 %1111 }
 0xef3   :  { %v1115_v57 = vpop.permute.xlu1 %1114  ;;  %v1120_v9 = vperm.slane %v1112_v6, %v3419_v30 }
 0xef4   :  { %v1121_v46 = vperm.slane %v1115_v57, %v3419_v30 }
 0xef5   :  { %v1123_v12 = vsel %vm447_vm7, %v1120_v9, %v1119_v8 }
 0xef6   :  { %v1124_v13 = vsel %vm449_vm8, %v1121_v46, %v1123_v12 }
 0xef7   :  { %v1125_v16 = vsel %vm451_vm9, %v1122_v11, %v1124_v13 }
 0xef8   :  { %v1127_v17 = vsel %vm454_vm10, %v1125_v16, 0.0 }
 0xef9   :  { %1128 = vadd.xlane.f32.xlu0 %v1127_v17 }
 0xf6c   :  { %v1129_v18 = vpop.xlane.xlu0 %1128 }
 0xf6d   :  { %2933 = vrcp.f32 %v1129_v18 }
 0xf73   :  { %v2934_v21 = vpop.eup %2933 }
 0xf74   :  { %v1131_v22 = vmul.f32 %v2934_v21, %v1129_v18 }
 0xf76   :  { %v1132_v1 = vsub.f32 2.0, %v1131_v22 }
 0xf78   :  { %v1133_v23 = vmul.f32 %v2934_v21, %v1132_v1 }
 0xf7a   :  { %v1136_v3 = vperm.slane %v1133_v23, 1  ;;  %v1135_v2 = vperm.slane %v1133_v23, 0  ;;  %v1138_v25 = vperm.slane %v1133_v23, 3  ;;  %v1137_v26 = vperm.slane %v1133_v23, 2 }
 0xf7c   :  { %v1144_v24 = vmul.f32 %v2928_v60, %v1136_v3  ;;  %v1143_v4 = vmul.f32 %v2926_v59, %v1135_v2  ;;  %v1146_v27 = vmul.f32 %v2932_v50, %v1138_v25  ;;  %v1145_v28 = vmul.f32 %v2930_v61, %v1137_v26  ;;  %v3679_v50 = vld [vmem:[%s4075_s1 + $0x18] sm:$0xff] }
 0xf7e   :  { %1154 = vperm.xlu1 %2874, %v1144_v24   ;;  %1149 = vperm.xlu2 %2875, %v1143_v4  }
 0xf86   :  { %1164 = vperm.xlu1 %2874, %v1146_v27   ;;  %1159 = vperm.xlu2 %2875, %v1145_v28  }
 0xf8e   :  { %1233 = vrot.lane.b32.xlu2 %v1199_v15, %s3219_s8 }
 0xfd8   :  { %v1150_v29 = vpop.permute.xlu2 %1149 }
 0xfd9   :  { %v1167_v33 = vmul.f32 %v3648_v32, %v1150_v29 }
 0xfdb   :  { %v1171_v7 = vsel %vm251_vm6, %v1167_v33, 0.0  ;;  %v3696_v33 = vld [vmem:[%s4084_s10 + $0x10] sm:$0xff] }
 0xfdc   :  { %v1172_v42 = vrot.slane %v1171_v7, 4 }
 0xfde   :  { %v1173_v45 = vadd.f32 %v1172_v42, %v1171_v7 }
 0xfe0   :  { %v1160_v31 = vpop.permute.xlu2 %1159  ;;  %v1174_v58 = vrot.slane %v1173_v45, 2 }
 0xfe1   :  { %v1169_v35 = vmul.f32 %v3654_v34, %v1160_v31  ;;  %v3690_v31 = vld [vmem:[%s4084_s10 + $0x18] sm:$0xff] }
 0xfe2   :  { %v1175_v55 = vadd.f32 %v1174_v58, %v1173_v45 }
 0xfe3   :  { %v1185_v43 = vsel %vm251_vm6, %v1169_v35, 0.0 }
 0xfe4   :  { %v1186_v44 = vrot.slane %v1185_v43, 4  ;;  %v1176_v5 = vrot.slane %v1175_v55, 1 }
 0xfe6   :  { %v1187_v51 = vadd.f32 %v1186_v44, %v1185_v43  ;;  %v1177_v11 = vadd.f32 %v1176_v5, %v1175_v55 }
 0xfe8   :  { %v1234_v41 = vpop.permute.xlu2 %1233  ;;  %v1188_v56 = vrot.slane %v1187_v51, 2  ;;  %v1200_v21 = vpack.c.bf16 %v1177_v11, %v1177_v11 }
 0xfe9   :  { %2822 = vmatmul.msk.bf16.vlgmr.msra.gmra.mxu1 %vm312_vm0, %v1234_v41  ;;  %2824 = vmatmul.msk.bf16.vlgmr.msra.gmra.mxu2 %vm312_vm0, %v1234_v41 }
 0xfea   :  { %1832 = vmatpush.bf16.msra.mxu1 %v3440_v36  ;;  %1868 = vmatpush.bf16.msra.mxu2 %v3662_v49  ;;  %v1189_v61 = vadd.f32 %v1188_v56, %v1187_v51  ;;  %v1208_v2 = vunpack.c.l.b16 %v1200_v21 }
 0xfec   :  { %v1190_v46 = vrot.slane %v1189_v61, 1 }
 0xfee   :  { %1833 = vmatpush.bf16.msra.mxu1 %v3444_v37  ;;  %1869 = vmatpush.bf16.msra.mxu2 %v3666_v47  ;;  %v1191_v18 = vadd.f32 %v1190_v46, %v1189_v61 }
 0xff0   :  { %v1155_v48 = vpop.permute.xlu1 %1154  ;;  %v1202_v3 = vpack.c.bf16 %v1191_v18, %v1191_v18 }
 0xff1   :  { %v1168_v36 = vmul.f32 %v3672_v52, %v1155_v48 }
 0xff2   :  { %v1210_v26 = vunpack.c.l.b16 %v1202_v3 }
 0xff3   :  { %v1178_v53 = vsel %vm251_vm6, %v1168_v36, 0.0 }
 0xff4   :  { %v1179_v54 = vrot.slane %v1178_v53, 4 }
 0xff6   :  { %v1180_v37 = vadd.f32 %v1179_v54, %v1178_v53 }
 0xff8   :  { %v1181_v59 = vrot.slane %v1180_v37, 2  ;;  %v1165_v60 = vpop.permute.xlu1 %1164 }
 0xff9   :  { %v1170_v63 = vmul.f32 %v3679_v50, %v1165_v60 }
 0xffa   :  { %v1182_v6 = vadd.f32 %v1181_v59, %v1180_v37 }
 0xffb   :  { %v1192_v8 = vsel %vm251_vm6, %v1170_v63, 0.0 }
 0xffc   :  { %v1183_v57 = vrot.slane %v1182_v6, 1  ;;  %v1193_v9 = vrot.slane %v1192_v8, 4 }
 0xffe   :  { %v1184_v12 = vadd.f32 %v1183_v57, %v1182_v6  ;;  %v1194_v13 = vadd.f32 %v1193_v9, %v1192_v8 }
0x1000   :  { %v1201_v16 = vpack.c.bf16 %v1184_v12, %v1184_v12  ;;  %v1195_v17 = vrot.slane %v1194_v13, 2 }
0x1002   :  { %v1196_v22 = vadd.f32 %v1195_v17, %v1194_v13  ;;  %v1209_v1 = vunpack.c.l.b16 %v1201_v16 }
0x1004   :  { %v1197_v23 = vrot.slane %v1196_v22, 1  ;;  %v1212_v4 = vsel %vm447_vm7, %v1209_v1, %v1208_v2 }
0x1005   :  { %v1213_v28 = vsel %vm449_vm8, %v1210_v26, %v1212_v4 }
0x1006   :  { %v1198_v24 = vadd.f32 %v1197_v23, %v1196_v22 }
0x1008   :  { %v1203_v25 = vpack.c.bf16 %v1198_v24, %v1198_v24 }
0x100a   :  { %v1211_v27 = vunpack.c.l.b16 %v1203_v25 }
0x100c   :  { %v1214_v15 = vsel %vm451_vm9, %v1211_v27, %v1213_v28 }
0x100d   :  { %v1215_v29 = vpack.c.b16 %v1214_v15, %v1214_v15 }
0x100f   :  { %2821 = vmatmul.msk.bf16.vlgmr.msrb.gmra.mxu3 %vm251_vm6, %v1215_v29 }
0x1010   :  { %1811 = vmatpush.bf16.msrb.mxu3 %v3690_v31 }
0x1014   :  { %1812 = vmatpush.bf16.msrb.mxu3 %v3696_v33 }
0x1018   :  { %1813 = vmatpush.bf16.msrb.mxu3 %v3467_v39  ;;  %v1255_v39 = vld [vmem:[#allocation2 + $0xc] sm:$0xf] }
0x101c   :  { %1814 = vmatpush.bf16.msrb.mxu3 %v3473_v40 }
0x1066   :  { %v1247_v35 = vpop.f32.mrf.mxu1 }
0x106c   :  { %v1283_v7 = vpop.f32.mrf.mxu2 }
0x106e   :  { %v1249_v41 = vpop.f32.mrf.mxu1 }
0x1074   :  { %v1285_v42 = vpop.f32.mrf.mxu2 }
0x1092   :  { %v1228_v43 = vpop.f32.mrf.mxu3 }
0x1093   :  { %v1248_v44 = vadd.f32 %v1247_v35, %v1228_v43 }
0x1095   :  { %2935 = vtanh.f32 %v1248_v44 }
0x109a   :  { %v1230_v45 = vpop.f32.mrf.mxu3 }
0x109b   :  { %v2936_v48 = vpop.eup %2935 }
0x109c   :  { %1253 = vst.msk [vmem:[#allocation12 + $0x8] sm:$0xf] %vm664_vm11, %v2936_v48  ;;  %v1256_v51 = vpack.c.bf16 %v2936_v48, %v2936_v48 }
0x109e   :  { %2823 = vmatmul.msk.bf16.vlgmr.msrb.gmra.mxu0 %vm312_vm0, %v1256_v51 }
0x109f   :  { %1854 = vmatpush.bf16.msrb.mxu0 %v3592_v38 }
0x10a3   :  { %1855 = vmatpush.bf16.msrb.mxu0 %v3598_v62 }
0x111b   :  { %v1269_v40 = vpop.f32.mrf.mxu0 }
0x111c   :  { %v1273_v36 = vadd.f32 %v1269_v40, %v1255_v39 }
0x111e   :  { %v1287_v58 = vadd.f32 %v1283_v7, %v1273_v36 }
0x1120   :  { %2937 = vtanh.f32 %v1287_v58  ;;  %v2825_v56 = vmul.f32 -1.442695, %v1287_v58 }
0x1122   :  { %2939 = vpow2.f32 %v2825_v56 }
0x1123   :  { %v1271_v53 = vpop.f32.mrf.mxu0 }
0x1126   :  { %v2938_v54 = vpop.eup %2937 }
0x1127   :  { %1310 = vrot.lane.b32.xlu1 %v2938_v54, %s3213_s3 }
0x1128   :  { %v2940_v55 = vpop.eup %2939 }
0x1129   :  { %v1291_v37 = vadd.f32 1.0, %v2940_v55 }
0x112b   :  { %2941 = vrcp.f32 %v1291_v37  ;;  %v1303_v6 = vand.u32 2147483648, %v1291_v37  ;;  %vm1297_vm12 = vweird.f32 %v1291_v37  ;;  %v1301_v8 = vand.u32 2147483647, %v1291_v37 }
0x112d   :  { %v1304_v9 = vor.u32 1.1754944e-38, %v1303_v6  ;;  %vm1302_vm14 = vcmp.eq.f32.partialorder %v1301_v8, 8.507059e+37 }
0x1131   :  { %v2942_v59 = vpop.eup %2941 }
0x1132   :  { %v1293_v60 = vmul.f32 %v2942_v59, %v1291_v37  ;;  %vm1298_vm5 = vweird.f32 %v2942_v59 }
0x1133   :  { %vm1299_vm13 = vmor %vm1297_vm12, %vm1298_vm5 }
0x1134   :  { %v1294_v61 = vsub.f32 1.0, %v1293_v60 }
0x1136   :  { %v1295_v63 = vmul.f32 %v2942_v59, %v1294_v61 }
0x1138   :  { %v1296_v5 = vadd.f32 %v2942_v59, %v1295_v63 }
0x113a   :  { %v1300_v57 = vsel %vm1299_vm13, %v2942_v59, %v1296_v5 }
0x113b   :  { %v1305_v11 = vsel %vm1302_vm14, %v1304_v9, %v1300_v57 }
0x113c   :  { %v1308_v13 = vmul.f32 %v1305_v11, %v3604_v0 }
0x1199   :  { %v1311_v46 = vpop.permute.xlu1 %1310 }
0x119a   :  { %v1313_v12 = vmul.f32 %v1311_v46, %v1305_v11 }
0x119c   :  { %1315 = vrot.lane.b32.xlu2 %v1313_v12, %s3219_s8 }
0x11f6   :  { %v1316_v16 = vpop.permute.xlu2 %1315 }
0x11f7   :  { %v3708_v17 = vadd.f32 %v1316_v16, %v1308_v13 }
0x11f9   :  { %2943 = vtanh.f32 %v3708_v17 }
0x11ff   :  { %v2944_v18 = vpop.eup %2943 }
0x1200   :  { %1321 = vrot.lane.b32.xlu1 %v2944_v18, %s3213_s3 }
0x1272   :  { %v1322_v21 = vpop.permute.xlu1 %1321 }
0x1273   :  { %v3712_v22 = vmul.f32 %v1322_v21, %v1305_v11 }
0x1275   :  { %v1329_v1 = vperm.slane %v3712_v22, 0  ;;  %v1327_v23 = vrot.slane %v3712_v22, 2  ;;  %v1326_v3 = vrot.slane %v3712_v22, 1  ;;  %v1328_v24 = vrot.slane %v3712_v22, 3 }
0x1277   :  { %1333 = vrot.lane.b32.xlu2 %v1329_v1, %s3219_s8  ;;  %v1331_v0 = vperm.slane %v1327_v23, 0  ;;  %v1330_v2 = vperm.slane %v1326_v3, 0  ;;  %v1332_v4 = vperm.slane %v1328_v24, 0 }
0x1279   :  { %1337 = vrot.lane.b32.xlu1 %v1331_v0, %s3219_s8  ;;  %1335 = vrot.lane.b32.xlu0 %v1330_v2, %s3219_s8 }
0x127f   :  { %1339 = vrot.lane.b32.xlu2 %v1332_v4, %s3219_s8 }
0x12d1   :  { %v1334_v25 = vpop.permute.xlu2 %1333 }
0x12d2   :  { %v1345_v26 = vmul.f32 %v1334_v25, %v3403_v10 }
0x12d4   :  { %v1349_v27 = vsel %vm312_vm0, %v1345_v26, 0.0 }
0x12d5   :  { %1350 = vadd.xlane.f32.xlu1 %v1349_v27 }
0x12d9   :  { %v1340_v42 = vpop.permute.xlu2 %1339 }
0x12da   :  { %v1348_v43 = vmul.f32 %v1340_v42, %v3413_v20 }
0x12dc   :  { %v1358_v44 = vsel %vm312_vm0, %v1348_v43, 0.0 }
0x12eb   :  { %v1338_v28 = vpop.permute.xlu1 %1337  ;;  %v1336_v15 = vpop.permute.xlu0 %1335 }
0x12ec   :  { %v1347_v29 = vmul.f32 %v1338_v28, %v3411_v19  ;;  %v1346_v35 = vmul.f32 %v1336_v15, %v3407_v14 }
0x12ee   :  { %v1355_v7 = vsel %vm312_vm0, %v1347_v29, 0.0  ;;  %v1352_v41 = vsel %vm312_vm0, %v1346_v35, 0.0 }
0x12ef   :  { %1356 = vadd.xlane.f32.xlu0 %v1355_v7  ;;  %1353 = vadd.xlane.f32.xlu2 %v1352_v41 }
0x12f7   :  { %1359 = vadd.xlane.f32.xlu2 %v1358_v44 }
0x1348   :  { %v1351_v48 = vpop.xlane.xlu1 %1350 }
0x1349   :  { %v1365_v40 = vperm.slane %v1351_v48, %v3419_v30 }
0x1362   :  { %v1354_v45 = vpop.xlane.xlu2 %1353  ;;  %v1357_v39 = vpop.xlane.xlu0 %1356 }
0x1363   :  { %v1366_v51 = vperm.slane %v1354_v45, %v3419_v30  ;;  %v1367_v36 = vperm.slane %v1357_v39, %v3419_v30 }
0x1365   :  { %v1369_v58 = vsel %vm447_vm7, %v1366_v51, %v1365_v40 }
0x1366   :  { %v1370_v56 = vsel %vm449_vm8, %v1367_v36, %v1369_v58 }
0x136a   :  { %v1360_v53 = vpop.xlane.xlu2 %1359 }
0x136b   :  { %v1368_v54 = vperm.slane %v1360_v53, %v3419_v30 }
0x136d   :  { %v1371_v55 = vsel %vm451_vm9, %v1368_v54, %v1370_v56 }
0x136e   :  { %v1373_v37 = vsel %vm454_vm10, %v1371_v55, -inf }
0x136f   :  { %1374 = vmax.xlane.f32.xlu1 %v1373_v37 }
0x13e2   :  { %v1375_v59 = vpop.xlane.xlu1 %1374 }
0x13e3   :  { %v1377_v60 = vperm.slane %v1375_v59, 0  ;;  %v1378_v61 = vperm.slane %v1375_v59, 1  ;;  %v1379_v63 = vperm.slane %v1375_v59, 2  ;;  %v1380_v57 = vperm.slane %v1375_v59, 3 }
0x13e5   :  { %v1385_v5 = vsub.f32 %v1351_v48, %v1377_v60  ;;  %v1386_v6 = vsub.f32 %v1354_v45, %v1378_v61  ;;  %v1387_v8 = vsub.f32 %v1357_v39, %v1379_v63  ;;  %v1388_v12 = vsub.f32 %v1360_v53, %v1380_v57 }
0x13e6   :  { %v1493_v53 = vpack.c.bf16 %v3712_v22, %v3712_v22 }
0x13e7   :  { %v1389_v9 = vmul.f32 1.442695, %v1385_v5  ;;  %v1391_v46 = vmul.f32 1.442695, %v1386_v6  ;;  %v1393_v11 = vmul.f32 1.442695, %v1387_v8 }
0x13e8   :  { %v1395_v13 = vmul.f32 1.442695, %v1388_v12 }
0x13e9   :  { %2945 = vpow2.f32 %v1389_v9 }
0x13ea   :  { %2947 = vpow2.f32 %v1391_v46 }
0x13eb   :  { %2949 = vpow2.f32 %v1393_v11 }
0x13ec   :  { %2951 = vpow2.f32 %v1395_v13 }
0x13ef   :  { %v2946_v16 = vpop.eup %2945 }
0x13f0   :  { %v2948_v18 = vpop.eup %2947  ;;  %1402 = vperm.xlu2 %2875, %v2946_v16  }
0x13f1   :  { %v2950_v21 = vpop.eup %2949  ;;  %1405 = vperm.xlu0 %2873, %v2948_v18  }
0x13f2   :  { %1408 = vperm.xlu1 %2874, %v2950_v21   ;;  %v2952_v1 = vpop.eup %2951 }
0x13f9   :  { %1411 = vperm.xlu0 %2873, %v2952_v1  }
0x144a   :  { %v1403_v3 = vpop.permute.xlu2 %1402 }
0x144b   :  { %v1413_v24 = vperm.slane %v1403_v3, %v3419_v30 }
0x1463   :  { %v1406_v23 = vpop.permute.xlu0 %1405 }
0x1464   :  { %v1409_v0 = vpop.permute.xlu1 %1408  ;;  %v1414_v2 = vperm.slane %v1406_v23, %v3419_v30 }
0x1465   :  { %v1415_v4 = vperm.slane %v1409_v0, %v3419_v30 }
0x1466   :  { %v1417_v25 = vsel %vm447_vm7, %v1414_v2, %v1413_v24 }
0x1467   :  { %v1418_v28 = vsel %vm449_vm8, %v1415_v4, %v1417_v25 }
0x146b   :  { %v1412_v26 = vpop.permute.xlu0 %1411 }
0x146c   :  { %v1416_v27 = vperm.slane %v1412_v26, %v3419_v30 }
0x146e   :  { %v1419_v15 = vsel %vm451_vm9, %v1416_v27, %v1418_v28 }
0x146f   :  { %v1421_v29 = vsel %vm454_vm10, %v1419_v15, 0.0 }
0x1470   :  { %1422 = vadd.xlane.f32.xlu2 %v1421_v29  ;;  %v3759_v29 = vld [vmem:[#allocation11 + $0x8] sm:$0xff] }
0x14e3   :  { %v1423_v35 = vpop.xlane.xlu2 %1422 }
0x14e4   :  { %2953 = vrcp.f32 %v1423_v35 }
0x14ea   :  { %v2954_v7 = vpop.eup %2953 }
0x14eb   :  { %v1425_v41 = vmul.f32 %v2954_v7, %v1423_v35 }
0x14ed   :  { %v1426_v42 = vsub.f32 2.0, %v1425_v41 }
0x14ef   :  { %v1427_v43 = vmul.f32 %v2954_v7, %v1426_v42 }
0x14f1   :  { %v1430_v44 = vperm.slane %v1427_v43, 1  ;;  %v1429_v45 = vperm.slane %v1427_v43, 0  ;;  %v1432_v39 = vperm.slane %v1427_v43, 3  ;;  %v1431_v40 = vperm.slane %v1427_v43, 2 }
0x14f3   :  { %v1438_v48 = vmul.f32 %v2948_v18, %v1430_v44  ;;  %v1437_v51 = vmul.f32 %v2946_v16, %v1429_v45  ;;  %v1440_v36 = vmul.f32 %v2952_v1, %v1432_v39  ;;  %v1439_v58 = vmul.f32 %v2950_v21, %v1431_v40  ;;  %v3763_v45 = vld [vmem:[#allocation11] sm:$0xff] }
0x14f5   :  { %1448 = vperm.xlu0 %2873, %v1438_v48   ;;  %1443 = vperm.xlu1 %2874, %v1437_v51  }
0x14fd   :  { %1458 = vperm.xlu0 %2873, %v1440_v36   ;;  %1453 = vperm.xlu1 %2874, %v1439_v58  }
0x1505   :  { %1527 = vrot.lane.b32.xlu1 %v1493_v53, %s3219_s8 }
0x1567   :  { %v1449_v54 = vpop.permute.xlu0 %1448  ;;  %v1444_v56 = vpop.permute.xlu1 %1443 }
0x1568   :  { %v1462_v55 = vmul.f32 %v3672_v52, %v1449_v54  ;;  %v1461_v37 = vmul.f32 %v3648_v32, %v1444_v56 }
0x156a   :  { %v1472_v59 = vsel %vm251_vm6, %v1462_v55, 0.0  ;;  %v1465_v60 = vsel %vm251_vm6, %v1461_v37, 0.0  ;;  %v3776_v37 = vld [vmem:[%s4084_s10 + $0x8] sm:$0xff] }
0x156b   :  { %v1473_v61 = vrot.slane %v1472_v59, 4  ;;  %v1466_v63 = vrot.slane %v1465_v60, 4 }
0x156d   :  { %v1474_v5 = vadd.f32 %v1473_v61, %v1472_v59  ;;  %v1467_v6 = vadd.f32 %v1466_v63, %v1465_v60  ;;  %v3782_v59 = vld [vmem:[%s4084_s10] sm:$0xff] }
0x156f   :  { %v1475_v8 = vrot.slane %v1474_v5, 2  ;;  %v1468_v57 = vrot.slane %v1467_v6, 2  ;;  %v1459_v9 = vpop.permute.xlu0 %1458  ;;  %v1454_v22 = vpop.permute.xlu1 %1453 }
0x1570   :  { %v1464_v46 = vmul.f32 %v3679_v50, %v1459_v9  ;;  %v1463_v11 = vmul.f32 %v3654_v34, %v1454_v22 }
0x1571   :  { %v1476_v12 = vadd.f32 %v1475_v8, %v1474_v5  ;;  %v1469_v13 = vadd.f32 %v1468_v57, %v1467_v6 }
0x1572   :  { %v1486_v16 = vsel %vm251_vm6, %v1464_v46, 0.0  ;;  %v1479_v18 = vsel %vm251_vm6, %v1463_v11, 0.0  ;;  %v1549_v46 = vld [vmem:[#allocation2 + $0x10] sm:$0xf] }
0x1573   :  { %v1477_v21 = vrot.slane %v1476_v12, 1  ;;  %v1470_v1 = vrot.slane %v1469_v13, 1  ;;  %v1487_v23 = vrot.slane %v1486_v16, 4  ;;  %v1480_v3 = vrot.slane %v1479_v18, 4 }
0x1575   :  { %v1488_v0 = vadd.f32 %v1487_v23, %v1486_v16  ;;  %v1481_v2 = vadd.f32 %v1480_v3, %v1479_v18  ;;  %v1478_v24 = vadd.f32 %v1477_v21, %v1476_v12  ;;  %v1471_v4 = vadd.f32 %v1470_v1, %v1469_v13 }
0x1577   :  { %v1489_v25 = vrot.slane %v1488_v0, 2  ;;  %v1482_v26 = vrot.slane %v1481_v2, 2  ;;  %v1528_v27 = vpop.permute.xlu1 %1527  ;;  %v1495_v35 = vpack.c.bf16 %v1478_v24, %v1478_v24  ;;  %v1494_v7 = vpack.c.bf16 %v1471_v4, %v1471_v4 }
0x1578   :  { %2827 = vmatmul.msk.bf16.vlgmr.msrb.gmra.mxu1 %vm312_vm0, %v1528_v27  ;;  %2829 = vmatmul.msk.bf16.vlgmr.msrb.gmra.mxu2 %vm312_vm0, %v1528_v27 }
0x1579   :  { %v1490_v28 = vadd.f32 %v1489_v25, %v1488_v0  ;;  %v1483_v15 = vadd.f32 %v1482_v26, %v1481_v2  ;;  %2126 = vmatpush.bf16.msrb.mxu1 %v3759_v29  ;;  %2162 = vmatpush.bf16.msrb.mxu2 %v3662_v49  ;;  %v1503_v48 = vunpack.c.l.b16 %v1495_v35  ;;  %v1502_v51 = vunpack.c.l.b16 %v1494_v7 }
0x157b   :  { %v1491_v41 = vrot.slane %v1490_v28, 1  ;;  %v1484_v42 = vrot.slane %v1483_v15, 1  ;;  %v1506_v53 = vsel %vm447_vm7, %v1503_v48, %v1502_v51 }
0x157d   :  { %v1492_v43 = vadd.f32 %v1491_v41, %v1490_v28  ;;  %v1485_v44 = vadd.f32 %v1484_v42, %v1483_v15  ;;  %2127 = vmatpush.bf16.msrb.mxu1 %v3763_v45  ;;  %2163 = vmatpush.bf16.msrb.mxu2 %v3666_v47 }
0x157f   :  { %v1497_v39 = vpack.c.bf16 %v1492_v43, %v1492_v43  ;;  %v1496_v40 = vpack.c.bf16 %v1485_v44, %v1485_v44 }
0x1581   :  { %v1505_v36 = vunpack.c.l.b16 %v1497_v39  ;;  %v1504_v58 = vunpack.c.l.b16 %v1496_v40 }
0x1583   :  { %v1507_v54 = vsel %vm449_vm8, %v1504_v58, %v1506_v53 }
0x1584   :  { %v1508_v56 = vsel %vm451_vm9, %v1505_v36, %v1507_v54 }
0x1585   :  { %v1509_v55 = vpack.c.b16 %v1508_v56, %v1508_v56 }
0x1587   :  { %2826 = vmatmul.msk.bf16.vlgmr.msra.gmra.mxu3 %vm251_vm6, %v1509_v55 }
0x1588   :  { %2105 = vmatpush.bf16.msra.mxu3 %v3690_v31 }
0x158c   :  { %2106 = vmatpush.bf16.msra.mxu3 %v3696_v33 }
0x1590   :  { %2107 = vmatpush.bf16.msra.mxu3 %v3776_v37 }
0x1594   :  { %2108 = vmatpush.bf16.msra.mxu3 %v3782_v59 }
0x15f5   :  { %v1541_v60 = vpop.f32.mrf.mxu1 }
0x15fb   :  { %v1577_v61 = vpop.f32.mrf.mxu2 }
0x15fd   :  { %v1543_v63 = vpop.f32.mrf.mxu1 }
0x1603   :  { %v1579_v5 = vpop.f32.mrf.mxu2 }
0x160a   :  { %v1522_v6 = vpop.f32.mrf.mxu3 }
0x160b   :  { %v1542_v8 = vadd.f32 %v1541_v60, %v1522_v6 }
0x160d   :  { %2955 = vtanh.f32 %v1542_v8 }
0x1612   :  { %v1524_v57 = vpop.f32.mrf.mxu3 }
0x1613   :  { %v2956_v9 = vpop.eup %2955 }
0x1614   :  { %1547 = vst.msk [vmem:[#allocation12 + $0xc] sm:$0xf] %vm664_vm11, %v2956_v9  ;;  %v1550_v22 = vpack.c.bf16 %v2956_v9, %v2956_v9 }
0x1616   :  { %2828 = vmatmul.msk.bf16.vlgmr.msra.gmra.mxu0 %vm312_vm0, %v1550_v22 }
0x1617   :  { %2148 = vmatpush.bf16.msra.mxu0 %v3592_v38 }
0x161b   :  { %2149 = vmatpush.bf16.msra.mxu0 %v3598_v62 }
0x1693   :  { %v1563_v11 = vpop.f32.mrf.mxu0 }
0x1694   :  { %v1567_v12 = vadd.f32 %v1563_v11, %v1549_v46 }
0x1696   :  { %v1581_v13 = vadd.f32 %v1577_v61, %v1567_v12 }
0x1698   :  { %2957 = vtanh.f32 %v1581_v13  ;;  %v2830_v21 = vmul.f32 -1.442695, %v1581_v13 }
0x169a   :  { %2959 = vpow2.f32 %v2830_v21 }
0x169b   :  { %v1565_v16 = vpop.f32.mrf.mxu0 }
0x169e   :  { %v2958_v18 = vpop.eup %2957 }
0x169f   :  { %1604 = vrot.lane.b32.xlu0 %v2958_v18, %s3213_s3 }
0x16a0   :  { %v2960_v1 = vpop.eup %2959 }
0x16a1   :  { %v1585_v23 = vadd.f32 1.0, %v2960_v1 }
0x16a3   :  { %2961 = vrcp.f32 %v1585_v23  ;;  %v1597_v62 = vand.u32 2147483648, %v1585_v23  ;;  %vm1591_vm1 = vweird.f32 %v1585_v23  ;;  %v1595_v4 = vand.u32 2147483647, %v1585_v23 }
0x16a5   :  { %v1598_v26 = vor.u32 1.1754944e-38, %v1597_v62  ;;  %vm1596_vm3 = vcmp.eq.f32.partialorder %v1595_v4, 8.507059e+37 }
0x16a9   :  { %v2962_v3 = vpop.eup %2961 }
0x16aa   :  { %v1587_v0 = vmul.f32 %v2962_v3, %v1585_v23  ;;  %vm1592_vm15 = vweird.f32 %v2962_v3 }
0x16ab   :  { %vm1593_vm2 = vmor %vm1591_vm1, %vm1592_vm15 }
0x16ac   :  { %v1588_v2 = vsub.f32 1.0, %v1587_v0 }
0x16ae   :  { %v1589_v38 = vmul.f32 %v2962_v3, %v1588_v2 }
0x16b0   :  { %v1590_v24 = vadd.f32 %v2962_v3, %v1589_v38 }
0x16b2   :  { %v1594_v25 = vsel %vm1593_vm2, %v2962_v3, %v1590_v24 }
0x16b3   :  { %v1599_v28 = vsel %vm1596_vm3, %v1598_v26, %v1594_v25 }
0x16b4   :  { %v1602_v35 = vmul.f32 %v1599_v28, %v3708_v17 }
0x1711   :  { %v1605_v27 = vpop.permute.xlu0 %1604 }
0x1712   :  { %v1607_v15 = vmul.f32 %v1605_v27, %v1599_v28 }
0x1714   :  { %1609 = vrot.lane.b32.xlu1 %v1607_v15, %s3219_s8 }
0x1786   :  { %v1610_v7 = vpop.permute.xlu1 %1609 }
0x1787   :  { %v3792_v41 = vadd.f32 %v1610_v7, %v1602_v35 }
0x1789   :  { %2963 = vtanh.f32 %v3792_v41 }
0x178f   :  { %v2964_v42 = vpop.eup %2963 }
0x1790   :  { %1615 = vrot.lane.b32.xlu0 %v2964_v42, %s3213_s3 }
0x1802   :  { %v1616_v43 = vpop.permute.xlu0 %1615 }
0x1803   :  { %v3796_v44 = vmul.f32 %v1616_v43, %v1599_v28 }
0x1805   :  { %v1623_v48 = vperm.slane %v3796_v44, 0  ;;  %v1621_v51 = vrot.slane %v3796_v44, 2  ;;  %v1620_v39 = vrot.slane %v3796_v44, 1  ;;  %v1622_v36 = vrot.slane %v3796_v44, 3 }
0x1807   :  { %1627 = vrot.lane.b32.xlu1 %v1623_v48, %s3219_s8  ;;  %v1625_v17 = vperm.slane %v1621_v51, 0  ;;  %v1624_v40 = vperm.slane %v1620_v39, 0  ;;  %v1626_v58 = vperm.slane %v1622_v36, 0 }
0x1809   :  { %1631 = vrot.lane.b32.xlu2 %v1625_v17, %s3219_s8  ;;  %1629 = vrot.lane.b32.xlu0 %v1624_v40, %s3219_s8 }
0x180f   :  { %1633 = vrot.lane.b32.xlu1 %v1626_v58, %s3219_s8 }
0x1863   :  { %v1632_v53 = vpop.permute.xlu2 %1631 }
0x1864   :  { %v1641_v54 = vmul.f32 %v1632_v53, %v3411_v19 }
0x1866   :  { %v1649_v56 = vsel %vm312_vm0, %v1641_v54, 0.0 }
0x1867   :  { %1650 = vadd.xlane.f32.xlu2 %v1649_v56 }
0x1879   :  { %v1628_v55 = vpop.permute.xlu1 %1627 }
0x187a   :  { %v1639_v60 = vmul.f32 %v1628_v55, %v3403_v10 }
0x187b   :  { %v1630_v61 = vpop.permute.xlu0 %1629 }
0x187c   :  { %v1640_v63 = vmul.f32 %v1630_v61, %v3407_v14  ;;  %v1643_v5 = vsel %vm312_vm0, %v1639_v60, 0.0 }
0x187d   :  { %1644 = vadd.xlane.f32.xlu0 %v1643_v5 }
0x187e   :  { %v1646_v6 = vsel %vm312_vm0, %v1640_v63, 0.0 }
0x187f   :  { %1647 = vadd.xlane.f32.xlu1 %v1646_v6 }
0x1881   :  { %v1634_v8 = vpop.permute.xlu1 %1633 }
0x1882   :  { %v1642_v57 = vmul.f32 %v1634_v8, %v3413_v20 }
0x1884   :  { %v1652_v9 = vsel %vm312_vm0, %v1642_v57, 0.0 }
0x1885   :  { %1653 = vadd.xlane.f32.xlu0 %v1652_v9 }
0x18da   :  { %v1651_v12 = vpop.xlane.xlu2 %1650 }
0x18db   :  { %v1661_v18 = vperm.slane %v1651_v12, %v3419_v30 }
0x18f0   :  { %v1645_v22 = vpop.xlane.xlu0 %1644 }
0x18f1   :  { %v1659_v13 = vperm.slane %v1645_v22, %v3419_v30 }
0x18f2   :  { %v1648_v46 = vpop.xlane.xlu1 %1647 }
0x18f3   :  { %v1660_v11 = vperm.slane %v1648_v46, %v3419_v30 }
0x18f5   :  { %v1663_v16 = vsel %vm447_vm7, %v1660_v11, %v1659_v13 }
0x18f6   :  { %v1664_v23 = vsel %vm449_vm8, %v1661_v18, %v1663_v16 }
0x18f8   :  { %v1654_v21 = vpop.xlane.xlu0 %1653 }
0x18f9   :  { %v1662_v1 = vperm.slane %v1654_v21, %v3419_v30 }
0x18fb   :  { %v1665_v3 = vsel %vm451_vm9, %v1662_v1, %v1664_v23  ;;  %v1787_v23 = vpack.c.bf16 %v3796_v44, %v3796_v44 }
0x18fc   :  { %v1667_v0 = vsel %vm454_vm10, %v1665_v3, -inf }
0x18fd   :  { %1668 = vmax.xlane.f32.xlu1 %v1667_v0 }
0x1970   :  { %v1669_v2 = vpop.xlane.xlu1 %1668 }
0x1971   :  { %v1671_v38 = vperm.slane %v1669_v2, 0  ;;  %v1672_v24 = vperm.slane %v1669_v2, 1  ;;  %v1673_v62 = vperm.slane %v1669_v2, 2  ;;  %v1674_v4 = vperm.slane %v1669_v2, 3 }
0x1973   :  { %v1679_v25 = vsub.f32 %v1645_v22, %v1671_v38  ;;  %v1680_v26 = vsub.f32 %v1648_v46, %v1672_v24  ;;  %v1681_v27 = vsub.f32 %v1651_v12, %v1673_v62  ;;  %v1682_v7 = vsub.f32 %v1654_v21, %v1674_v4 }
0x1975   :  { %v1683_v28 = vmul.f32 1.442695, %v1679_v25  ;;  %v1685_v15 = vmul.f32 1.442695, %v1680_v26  ;;  %v1687_v35 = vmul.f32 1.442695, %v1681_v27 }
0x1976   :  { %v1689_v42 = vmul.f32 1.442695, %v1682_v7 }
0x1977   :  { %2965 = vpow2.f32 %v1683_v28 }
0x1978   :  { %2967 = vpow2.f32 %v1685_v15 }
0x1979   :  { %2969 = vpow2.f32 %v1687_v35 }
0x197a   :  { %2971 = vpow2.f32 %v1689_v42 }
0x197d   :  { %v2966_v43 = vpop.eup %2965 }
0x197e   :  { %v2968_v48 = vpop.eup %2967  ;;  %1696 = vperm.xlu0 %2873, %v2966_v43  }
0x197f   :  { %v2970_v51 = vpop.eup %2969  ;;  %1699 = vperm.xlu1 %2874, %v2968_v48  }
0x1980   :  { %1702 = vperm.xlu2 %2875, %v2970_v51   ;;  %v2972_v39 = vpop.eup %2971 }
0x1986   :  { %1705 = vperm.xlu0 %2873, %v2972_v39  }
0x19da   :  { %v1703_v53 = vpop.permute.xlu2 %1702 }
0x19db   :  { %v1709_v56 = vperm.slane %v1703_v53, %v3419_v30 }
0x19f0   :  { %v1697_v17 = vpop.permute.xlu0 %1696 }
0x19f1   :  { %v1700_v40 = vpop.permute.xlu1 %1699  ;;  %v1707_v58 = vperm.slane %v1697_v17, %v3419_v30 }
0x19f2   :  { %v1708_v36 = vperm.slane %v1700_v40, %v3419_v30 }
0x19f4   :  { %v1711_v54 = vsel %vm447_vm7, %v1708_v36, %v1707_v58 }
0x19f5   :  { %v1712_v61 = vsel %vm449_vm8, %v1709_v56, %v1711_v54 }
0x19f8   :  { %v1706_v55 = vpop.permute.xlu0 %1705 }
0x19f9   :  { %v1710_v60 = vperm.slane %v1706_v55, %v3419_v30 }
0x19fb   :  { %v1713_v63 = vsel %vm451_vm9, %v1710_v60, %v1712_v61 }
0x19fc   :  { %v1715_v5 = vsel %vm454_vm10, %v1713_v63, 0.0 }
0x19fd   :  { %1716 = vadd.xlane.f32.xlu0 %v1715_v5 }
0x1a70   :  { %v1717_v6 = vpop.xlane.xlu0 %1716 }
0x1a71   :  { %2973 = vrcp.f32 %v1717_v6 }
0x1a77   :  { %v2974_v8 = vpop.eup %2973 }
0x1a78   :  { %v1719_v57 = vmul.f32 %v2974_v8, %v1717_v6 }
0x1a7a   :  { %v1720_v9 = vsub.f32 2.0, %v1719_v57 }
0x1a7c   :  { %v1721_v22 = vmul.f32 %v2974_v8, %v1720_v9 }
0x1a7e   :  { %v1724_v46 = vperm.slane %v1721_v22, 1  ;;  %v1723_v11 = vperm.slane %v1721_v22, 0  ;;  %v1726_v16 = vperm.slane %v1721_v22, 3  ;;  %v1725_v18 = vperm.slane %v1721_v22, 2 }
0x1a80   :  { %v1732_v12 = vmul.f32 %v2968_v48, %v1724_v46  ;;  %v1731_v13 = vmul.f32 %v2966_v43, %v1723_v11  ;;  %v1734_v21 = vmul.f32 %v2972_v39, %v1726_v16  ;;  %v1733_v1 = vmul.f32 %v2970_v51, %v1725_v18 }
0x1a82   :  { %1742 = vperm.xlu2 %2875, %v1732_v12   ;;  %1737 = vperm.xlu1 %2874, %v1731_v13  }
0x1a8a   :  { %1752 = vperm.xlu2 %2875, %v1734_v21   ;;  %1747 = vperm.xlu1 %2874, %v1733_v1  }
0x1a92   :  { %1821 = vrot.lane.b32.xlu1 %v1787_v23, %s3219_s8 }
0x1adc   :  { %v1743_v3 = vpop.permute.xlu2 %1742 }
0x1add   :  { %v1756_v2 = vmul.f32 %v3672_v52, %v1743_v3 }
0x1adf   :  { %v1766_v24 = vsel %vm251_vm6, %v1756_v2, 0.0 }
0x1ae0   :  { %v1767_v4 = vrot.slane %v1766_v24, 4 }
0x1ae2   :  { %v1768_v27 = vadd.f32 %v1767_v4, %v1766_v24  ;;  %v1843_v4 = vld [vmem:[#allocation2 + $0x14] sm:$0xf] }
0x1ae4   :  { %v1753_v0 = vpop.permute.xlu2 %1752  ;;  %v1769_v7 = vrot.slane %v1768_v27, 2 }
0x1ae5   :  { %v1758_v38 = vmul.f32 %v3679_v50, %v1753_v0 }
0x1ae6   :  { %v1770_v50 = vadd.f32 %v1769_v7, %v1768_v27 }
0x1ae7   :  { %v1780_v62 = vsel %vm251_vm6, %v1758_v38, 0.0 }
0x1ae8   :  { %v1781_v25 = vrot.slane %v1780_v62, 4  ;;  %v1771_v53 = vrot.slane %v1770_v50, 1 }
0x1aea   :  { %v1782_v15 = vadd.f32 %v1781_v25, %v1780_v62  ;;  %v1772_v61 = vadd.f32 %v1771_v53, %v1770_v50 }
0x1aec   :  { %v1783_v43 = vrot.slane %v1782_v15, 2  ;;  %v1789_v8 = vpack.c.bf16 %v1772_v61, %v1772_v61 }
0x1aee   :  { %v1784_v17 = vadd.f32 %v1783_v43, %v1782_v15  ;;  %v1797_v11 = vunpack.c.l.b16 %v1789_v8 }
0x1af0   :  { %v1785_v54 = vrot.slane %v1784_v17, 1 }
0x1af4   :  { %v1738_v26 = vpop.permute.xlu1 %1737 }
0x1af5   :  { %v1755_v28 = vmul.f32 %v3648_v32, %v1738_v26 }
0x1af7   :  { %v1759_v44 = vsel %vm251_vm6, %v1755_v28, 0.0 }
0x1af8   :  { %v1760_v35 = vrot.slane %v1759_v44, 4 }
0x1afa   :  { %v1761_v42 = vadd.f32 %v1760_v35, %v1759_v44 }
0x1afc   :  { %v1762_v52 = vrot.slane %v1761_v42, 2  ;;  %v1748_v48 = vpop.permute.xlu1 %1747 }
0x1afd   :  { %v1757_v51 = vmul.f32 %v3654_v34, %v1748_v48  ;;  %v1786_v34 = vadd.f32 %v1785_v54, %v1784_v17 }
0x1afe   :  { %v1763_v39 = vadd.f32 %v1762_v52, %v1761_v42 }
0x1aff   :  { %v1773_v40 = vsel %vm251_vm6, %v1757_v51, 0.0  ;;  %v1791_v9 = vpack.c.bf16 %v1786_v34, %v1786_v34 }
0x1b00   :  { %v1764_v36 = vrot.slane %v1763_v39, 1  ;;  %v1774_v58 = vrot.slane %v1773_v40, 4 }
0x1b01   :  { %v1799_v13 = vunpack.c.l.b16 %v1791_v9 }
0x1b02   :  { %v1775_v32 = vadd.f32 %v1774_v58, %v1773_v40  ;;  %v1765_v56 = vadd.f32 %v1764_v36, %v1763_v39 }
0x1b04   :  { %v1776_v55 = vrot.slane %v1775_v32, 2  ;;  %v1822_v60 = vpop.permute.xlu1 %1821  ;;  %v1788_v5 = vpack.c.bf16 %v1765_v56, %v1765_v56 }
0x1b05   :  { %2832 = vmatmul.msk.bf16.vlgmr.msra.gmra.mxu1 %vm312_vm0, %v1822_v60  ;;  %2834 = vmatmul.msk.bf16.vlgmr.msra.gmra.mxu2 %vm312_vm0, %v1822_v60 }
0x1b06   :  { %v1777_v63 = vadd.f32 %v1776_v55, %v1775_v32  ;;  %2420 = vmatpush.bf16.msra.mxu1 %v3759_v29  ;;  %2456 = vmatpush.bf16.msra.mxu2 %v3662_v49  ;;  %v1796_v22 = vunpack.c.l.b16 %v1788_v5 }
0x1b08   :  { %v1778_v6 = vrot.slane %v1777_v63, 1  ;;  %v1800_v16 = vsel %vm447_vm7, %v1797_v11, %v1796_v22 }
0x1b0a   :  { %v1779_v57 = vadd.f32 %v1778_v6, %v1777_v63  ;;  %2421 = vmatpush.bf16.msra.mxu1 %v3763_v45  ;;  %2457 = vmatpush.bf16.msra.mxu2 %v3666_v47 }
0x1b0c   :  { %v1790_v46 = vpack.c.bf16 %v1779_v57, %v1779_v57 }
0x1b0e   :  { %v1798_v12 = vunpack.c.l.b16 %v1790_v46 }
0x1b10   :  { %v1801_v18 = vsel %vm449_vm8, %v1798_v12, %v1800_v16 }
0x1b11   :  { %v1802_v49 = vsel %vm451_vm9, %v1799_v13, %v1801_v18 }
0x1b12   :  { %v1803_v21 = vpack.c.b16 %v1802_v49, %v1802_v49 }
0x1b14   :  { %2831 = vmatmul.msk.bf16.vlgmr.msrb.gmra.mxu3 %vm251_vm6, %v1803_v21 }
0x1b15   :  { %2399 = vmatpush.bf16.msrb.mxu3 %v3690_v31  ;;  %v3051_v31 = vld [vmem:[%s4080_s6 + $0x8] sm:$0xff] }
0x1b19   :  { %2400 = vmatpush.bf16.msrb.mxu3 %v3696_v33  ;;  %v3052_v33 = vld [vmem:[%s4080_s6] sm:$0xff] }
0x1b1d   :  { %2401 = vmatpush.bf16.msrb.mxu3 %v3776_v37 }
0x1b21   :  { %2402 = vmatpush.bf16.msrb.mxu3 %v3782_v59 }
0x1b82   :  { %v1835_v47 = vpop.f32.mrf.mxu1 }
0x1b88   :  { %v1871_v1 = vpop.f32.mrf.mxu2 }
0x1b8a   :  { %v1837_v23 = vpop.f32.mrf.mxu1 }
0x1b90   :  { %v1873_v3 = vpop.f32.mrf.mxu2 }
0x1b97   :  { %v1816_v0 = vpop.f32.mrf.mxu3 }
0x1b98   :  { %v1836_v2 = vadd.f32 %v1835_v47, %v1816_v0 }
0x1b9a   :  { %2975 = vtanh.f32 %v1836_v2 }
0x1b9f   :  { %v1818_v38 = vpop.f32.mrf.mxu3 }
0x1ba0   :  { %v2976_v24 = vpop.eup %2975 }
0x1ba1   :  { %1841 = vst.msk [vmem:[#allocation12 + $0x10] sm:$0xf] %vm664_vm11, %v2976_v24  ;;  %v1844_v62 = vpack.c.bf16 %v2976_v24, %v2976_v24 }
0x1ba3   :  { %2833 = vmatmul.msk.bf16.vlgmr.msrb.gmra.mxu0 %vm312_vm0, %v1844_v62 }
0x1ba4   :  { %2442 = vmatpush.bf16.msrb.mxu0 %v3051_v31 }
0x1ba8   :  { %2443 = vmatpush.bf16.msrb.mxu0 %v3052_v33 }
0x1c20   :  { %v1857_v25 = vpop.f32.mrf.mxu0 }
0x1c21   :  { %v1861_v26 = vadd.f32 %v1857_v25, %v1843_v4 }
0x1c23   :  { %v1875_v27 = vadd.f32 %v1871_v1, %v1861_v26 }
0x1c25   :  { %2977 = vtanh.f32 %v1875_v27  ;;  %v2835_v44 = vmul.f32 -1.442695, %v1875_v27 }
0x1c27   :  { %2979 = vpow2.f32 %v2835_v44 }
0x1c28   :  { %v1859_v28 = vpop.f32.mrf.mxu0 }
0x1c2b   :  { %v2978_v15 = vpop.eup %2977 }
0x1c2c   :  { %1898 = vrot.lane.b32.xlu2 %v2978_v15, %s3213_s3 }
0x1c2d   :  { %v2980_v35 = vpop.eup %2979 }
0x1c2e   :  { %v1879_v7 = vadd.f32 1.0, %v2980_v35 }
0x1c30   :  { %2981 = vrcp.f32 %v1879_v7  ;;  %v1891_v51 = vand.u32 2147483648, %v1879_v7  ;;  %vm1885_vm5 = vweird.f32 %v1879_v7  ;;  %v1889_v39 = vand.u32 2147483647, %v1879_v7 }
0x1c32   :  { %v1892_v40 = vor.u32 1.1754944e-38, %v1891_v51  ;;  %vm1890_vm13 = vcmp.eq.f32.partialorder %v1889_v39, 8.507059e+37 }
0x1c36   :  { %v2982_v42 = vpop.eup %2981 }
0x1c37   :  { %v1881_v43 = vmul.f32 %v2982_v42, %v1879_v7  ;;  %vm1886_vm4 = vweird.f32 %v2982_v42 }
0x1c38   :  { %vm1887_vm12 = vmor %vm1885_vm5, %vm1886_vm4 }
0x1c39   :  { %v1882_v52 = vsub.f32 1.0, %v1881_v43 }
0x1c3b   :  { %v1883_v48 = vmul.f32 %v2982_v42, %v1882_v52 }
0x1c3d   :  { %v1884_v50 = vadd.f32 %v2982_v42, %v1883_v48 }
0x1c3f   :  { %v1888_v17 = vsel %vm1887_vm12, %v2982_v42, %v1884_v50 }
0x1c40   :  { %v1893_v58 = vsel %vm1890_vm13, %v1892_v40, %v1888_v17 }
0x1c41   :  { %v1896_v32 = vmul.f32 %v1893_v58, %v3792_v41 }
0x1c86   :  { %v1899_v36 = vpop.permute.xlu2 %1898 }
0x1c87   :  { %v1901_v53 = vmul.f32 %v1899_v36, %v1893_v58 }
0x1c89   :  { %1903 = vrot.lane.b32.xlu1 %v1901_v53, %s3219_s8 }
0x1cfb   :  { %v1904_v54 = vpop.permute.xlu1 %1903 }
0x1cfc   :  { %v3866_v56 = vadd.f32 %v1904_v54, %v1896_v32 }
0x1cfe   :  { %2983 = vtanh.f32 %v3866_v56 }
0x1d04   :  { %v2984_v55 = vpop.eup %2983 }
0x1d05   :  { %1909 = vrot.lane.b32.xlu2 %v2984_v55, %s3213_s3 }
0x1d5f   :  { %v1910_v60 = vpop.permute.xlu2 %1909 }
0x1d60   :  { %v3870_v61 = vmul.f32 %v1910_v60, %v1893_v58 }
0x1d62   :  { %v1917_v63 = vperm.slane %v3870_v61, 0  ;;  %v1915_v34 = vrot.slane %v3870_v61, 2  ;;  %v1914_v5 = vrot.slane %v3870_v61, 1  ;;  %v1916_v8 = vrot.slane %v3870_v61, 3 }
0x1d64   :  { %1921 = vrot.lane.b32.xlu1 %v1917_v63, %s3219_s8  ;;  %v1919_v41 = vperm.slane %v1915_v34, 0  ;;  %v1918_v6 = vperm.slane %v1914_v5, 0  ;;  %v1920_v57 = vperm.slane %v1916_v8, 0 }
0x1d66   :  { %1925 = vrot.lane.b32.xlu0 %v1919_v41, %s3219_s8  ;;  %1923 = vrot.lane.b32.xlu2 %v1918_v6, %s3219_s8 }
0x1d6c   :  { %1927 = vrot.lane.b32.xlu1 %v1920_v57, %s3219_s8 }
0x1dc0   :  { %v1924_v9 = vpop.permute.xlu2 %1923 }
0x1dc1   :  { %v1934_v22 = vmul.f32 %v1924_v9, %v3407_v14 }
0x1dc3   :  { %v1940_v46 = vsel %vm312_vm0, %v1934_v22, 0.0 }
0x1dc4   :  { %1941 = vadd.xlane.f32.xlu1 %v1940_v46 }
0x1dd6   :  { %v1922_v11 = vpop.permute.xlu1 %1921 }
0x1dd7   :  { %v1933_v12 = vmul.f32 %v1922_v11, %v3403_v10 }
0x1dd8   :  { %v1926_v13 = vpop.permute.xlu0 %1925 }
0x1dd9   :  { %v1935_v16 = vmul.f32 %v1926_v13, %v3411_v19  ;;  %v1937_v18 = vsel %vm312_vm0, %v1933_v12, 0.0 }
0x1dda   :  { %1938 = vadd.xlane.f32.xlu2 %v1937_v18 }
0x1ddb   :  { %v1943_v49 = vsel %vm312_vm0, %v1935_v16, 0.0 }
0x1ddc   :  { %1944 = vadd.xlane.f32.xlu0 %v1943_v49 }
0x1dde   :  { %v1928_v21 = vpop.permute.xlu1 %1927 }
0x1ddf   :  { %v1936_v47 = vmul.f32 %v1928_v21, %v3413_v20 }
0x1de1   :  { %v1946_v1 = vsel %vm312_vm0, %v1936_v47, 0.0 }
0x1de2   :  { %1947 = vadd.xlane.f32.xlu2 %v1946_v1 }
0x1e37   :  { %v1942_v3 = vpop.xlane.xlu1 %1941 }
0x1e38   :  { %v1954_v38 = vperm.slane %v1942_v3, %v3419_v30 }
0x1e4d   :  { %v1939_v23 = vpop.xlane.xlu2 %1938 }
0x1e4e   :  { %v1953_v0 = vperm.slane %v1939_v23, %v3419_v30 }
0x1e4f   :  { %v1945_v2 = vpop.xlane.xlu0 %1944 }
0x1e50   :  { %v1955_v24 = vperm.slane %v1945_v2, %v3419_v30  ;;  %v1957_v62 = vsel %vm447_vm7, %v1954_v38, %v1953_v0  ;;  %v3910_v38 = vld [vmem:[%s4075_s1 + $0x8] sm:$0xff] }
0x1e52   :  { %v1958_v4 = vsel %vm449_vm8, %v1955_v24, %v1957_v62  ;;  %v3916_v62 = vld [vmem:[%s4075_s1 + $0x18] sm:$0xff] }
0x1e55   :  { %v1948_v31 = vpop.xlane.xlu2 %1947 }
0x1e56   :  { %v1956_v33 = vperm.slane %v1948_v31, %v3419_v30 }
0x1e58   :  { %v1959_v25 = vsel %vm451_vm9, %v1956_v33, %v1958_v4 }
0x1e59   :  { %v1961_v26 = vsel %vm454_vm10, %v1959_v25, -inf }
0x1e5a   :  { %1962 = vmax.xlane.f32.xlu1 %v1961_v26 }
0x1ecd   :  { %v1963_v27 = vpop.xlane.xlu1 %1962 }
0x1ece   :  { %v1965_v28 = vperm.slane %v1963_v27, 0  ;;  %v1966_v15 = vperm.slane %v1963_v27, 1  ;;  %v1967_v44 = vperm.slane %v1963_v27, 2  ;;  %v1968_v35 = vperm.slane %v1963_v27, 3 }
0x1ed0   :  { %v1973_v7 = vsub.f32 %v1939_v23, %v1965_v28  ;;  %v1974_v42 = vsub.f32 %v1942_v3, %v1966_v15  ;;  %v1975_v43 = vsub.f32 %v1945_v2, %v1967_v44  ;;  %v1976_v51 = vsub.f32 %v1948_v31, %v1968_v35  ;;  %v3924_v28 = vld [vmem:[%s4075_s1] sm:$0xff] }
0x1ed1   :  { %v2081_v3 = vpack.c.bf16 %v3870_v61, %v3870_v61 }
0x1ed2   :  { %v1977_v52 = vmul.f32 1.442695, %v1973_v7  ;;  %v1979_v48 = vmul.f32 1.442695, %v1974_v42  ;;  %v1981_v50 = vmul.f32 1.442695, %v1975_v43 }
0x1ed3   :  { %v1983_v39 = vmul.f32 1.442695, %v1976_v51 }
0x1ed4   :  { %2985 = vpow2.f32 %v1977_v52 }
0x1ed5   :  { %2987 = vpow2.f32 %v1979_v48 }
0x1ed6   :  { %2989 = vpow2.f32 %v1981_v50 }
0x1ed7   :  { %2991 = vpow2.f32 %v1983_v39  ;;  %v3931_v39 = vld [vmem:[%s4075_s1 + $0x10] sm:$0xff] }
0x1eda   :  { %v2986_v17 = vpop.eup %2985 }
0x1edb   :  { %v2988_v40 = vpop.eup %2987  ;;  %1990 = vperm.xlu2 %2875, %v2986_v17  }
0x1edc   :  { %v2990_v36 = vpop.eup %2989  ;;  %1993 = vperm.xlu1 %2874, %v2988_v40  }
0x1edd   :  { %1996 = vperm.xlu0 %2873, %v2990_v36   ;;  %v2992_v58 = vpop.eup %2991 }
0x1ee3   :  { %1999 = vperm.xlu2 %2875, %v2992_v58  }
0x1f35   :  { %v1991_v53 = vpop.permute.xlu2 %1990 }
0x1f36   :  { %v2001_v55 = vperm.slane %v1991_v53, %v3419_v30 }
0x1f3d   :  { %v2000_v32 = vpop.permute.xlu2 %1999 }
0x1f3e   :  { %v2004_v5 = vperm.slane %v2000_v32, %v3419_v30 }
0x1f4e   :  { %v1994_v54 = vpop.permute.xlu1 %1993 }
0x1f4f   :  { %v1997_v60 = vpop.permute.xlu0 %1996  ;;  %v2002_v63 = vperm.slane %v1994_v54, %v3419_v30 }
0x1f50   :  { %v2003_v34 = vperm.slane %v1997_v60, %v3419_v30 }
0x1f51   :  { %v2005_v41 = vsel %vm447_vm7, %v2002_v63, %v2001_v55 }
0x1f52   :  { %v2006_v6 = vsel %vm449_vm8, %v2003_v34, %v2005_v41 }
0x1f53   :  { %v2007_v8 = vsel %vm451_vm9, %v2004_v5, %v2006_v6 }
0x1f54   :  { %v2009_v57 = vsel %vm454_vm10, %v2007_v8, 0.0 }
0x1f55   :  { %2010 = vadd.xlane.f32.xlu0 %v2009_v57 }
0x1fc8   :  { %v2011_v9 = vpop.xlane.xlu0 %2010 }
0x1fc9   :  { %2993 = vrcp.f32 %v2011_v9 }
0x1fcf   :  { %v2994_v22 = vpop.eup %2993 }
0x1fd0   :  { %v2013_v46 = vmul.f32 %v2994_v22, %v2011_v9 }
0x1fd2   :  { %v2014_v11 = vsub.f32 2.0, %v2013_v46 }
0x1fd4   :  { %v2015_v12 = vmul.f32 %v2994_v22, %v2014_v11 }
0x1fd6   :  { %v2018_v13 = vperm.slane %v2015_v12, 1  ;;  %v2017_v16 = vperm.slane %v2015_v12, 0  ;;  %v2020_v21 = vperm.slane %v2015_v12, 3  ;;  %v2019_v47 = vperm.slane %v2015_v12, 2 }
0x1fd8   :  { %v2026_v18 = vmul.f32 %v2988_v40, %v2018_v13  ;;  %v2025_v49 = vmul.f32 %v2986_v17, %v2017_v16  ;;  %v2028_v1 = vmul.f32 %v2992_v58, %v2020_v21  ;;  %v2027_v23 = vmul.f32 %v2990_v36, %v2019_v47 }
0x1fda   :  { %2036 = vperm.xlu2 %2875, %v2026_v18   ;;  %2031 = vperm.xlu1 %2874, %v2025_v49  }
0x1fe2   :  { %2046 = vperm.xlu2 %2875, %v2028_v1   ;;  %2041 = vperm.xlu1 %2874, %v2027_v23   ;;  %v3057_v23 = vld [vmem:[%s4084_s10 + $0x18] sm:$0xff] }
0x1fea   :  { %2115 = vrot.lane.b32.xlu1 %v2081_v3, %s3219_s8 }
0x2034   :  { %v2037_v0 = vpop.permute.xlu2 %2036 }
0x2035   :  { %v2050_v24 = vmul.f32 %v3910_v38, %v2037_v0 }
0x2037   :  { %v2060_v61 = vsel %vm251_vm6, %v2050_v24, 0.0 }
0x2038   :  { %v2061_v4 = vrot.slane %v2060_v61, 4 }
0x203a   :  { %v2062_v27 = vadd.f32 %v2061_v4, %v2060_v61 }
0x203c   :  { %v2047_v2 = vpop.permute.xlu2 %2046  ;;  %v2063_v42 = vrot.slane %v2062_v27, 2 }
0x203d   :  { %v2052_v31 = vmul.f32 %v3916_v62, %v2047_v2 }
0x203e   :  { %v2064_v51 = vadd.f32 %v2063_v42, %v2062_v27 }
0x203f   :  { %v2074_v33 = vsel %vm251_vm6, %v2052_v31, 0.0 }
0x2040   :  { %v2075_v25 = vrot.slane %v2074_v33, 4  ;;  %v2065_v54 = vrot.slane %v2064_v51, 1 }
0x2042   :  { %v2076_v44 = vadd.f32 %v2075_v25, %v2074_v33  ;;  %v2066_v41 = vadd.f32 %v2065_v54, %v2064_v51 }
0x2044   :  { %v2077_v52 = vrot.slane %v2076_v44, 2  ;;  %v2083_v22 = vpack.c.bf16 %v2066_v41, %v2066_v41 }
0x2046   :  { %v2078_v36 = vadd.f32 %v2077_v52, %v2076_v44  ;;  %v2091_v16 = vunpack.c.l.b16 %v2083_v22 }
0x2048   :  { %v2079_v60 = vrot.slane %v2078_v36, 1 }
0x204a   :  { %v2080_v8 = vadd.f32 %v2079_v60, %v2078_v36 }
0x204c   :  { %v2032_v26 = vpop.permute.xlu1 %2031  ;;  %v2085_v11 = vpack.c.bf16 %v2080_v8, %v2080_v8 }
0x204d   :  { %v2049_v15 = vmul.f32 %v3924_v28, %v2032_v26  ;;  %v2137_v26 = vld [vmem:[#allocation2 + $0x18] sm:$0xf] }
0x204e   :  { %v2093_v49 = vunpack.c.l.b16 %v2085_v11 }
0x204f   :  { %v2053_v35 = vsel %vm251_vm6, %v2049_v15, 0.0 }
0x2050   :  { %v2054_v7 = vrot.slane %v2053_v35, 4 }
0x2052   :  { %v2055_v43 = vadd.f32 %v2054_v7, %v2053_v35 }
0x2054   :  { %v2056_v48 = vrot.slane %v2055_v43, 2  ;;  %v2042_v50 = vpop.permute.xlu1 %2041 }
0x2055   :  { %v2051_v17 = vmul.f32 %v3931_v39, %v2042_v50 }
0x2056   :  { %v2057_v40 = vadd.f32 %v2056_v48, %v2055_v43 }
0x2057   :  { %v2067_v58 = vsel %vm251_vm6, %v2051_v17, 0.0 }
0x2058   :  { %v2058_v53 = vrot.slane %v2057_v40, 1  ;;  %v2068_v32 = vrot.slane %v2067_v58, 4 }
0x205a   :  { %v2069_v55 = vadd.f32 %v2068_v32, %v2067_v58  ;;  %v2059_v63 = vadd.f32 %v2058_v53, %v2057_v40 }
0x205c   :  { %v2070_v34 = vrot.slane %v2069_v55, 2  ;;  %v2116_v5 = vpop.permute.xlu1 %2115  ;;  %v2082_v57 = vpack.c.bf16 %v2059_v63, %v2059_v63 }
0x205d   :  { %2837 = vmatmul.msk.bf16.vlgmr.msrb.gmra.mxu1 %vm312_vm0, %v2116_v5  ;;  %2839 = vmatmul.msk.bf16.vlgmr.msrb.gmra.mxu2 %vm312_vm0, %v2116_v5 }
0x205e   :  { %v2071_v6 = vadd.f32 %v2070_v34, %v2069_v55  ;;  %2714 = vmatpush.bf16.msrb.mxu1 %v3759_v29  ;;  %v2090_v12 = vunpack.c.l.b16 %v2082_v57 }
0x2060   :  { %v2072_v9 = vrot.slane %v2071_v6, 1  ;;  %v2094_v21 = vsel %vm447_vm7, %v2091_v16, %v2090_v12 }
0x2062   :  { %v2073_v46 = vadd.f32 %v2072_v9, %v2071_v6  ;;  %2715 = vmatpush.bf16.msrb.mxu1 %v3763_v45  ;;  %v3058_v45 = vld [vmem:[%s4084_s10 + $0x10] sm:$0xff]  ;;  %s3220_s10 = smov [#allocation12]  }
0x2064   :  { %v2084_v13 = vpack.c.bf16 %v2073_v46, %v2073_v46 }
0x2066   :  { %v2092_v18 = vunpack.c.l.b16 %v2084_v13 }
0x2068   :  { %v2095_v47 = vsel %vm449_vm8, %v2092_v18, %v2094_v21 }
0x2069   :  { %v2096_v1 = vsel %vm451_vm9, %v2093_v49, %v2095_v47 }
0x206a   :  { %v2097_v29 = vpack.c.b16 %v2096_v1, %v2096_v1 }
0x206c   :  { %2836 = vmatmul.msk.bf16.vlgmr.msra.gmra.mxu3 %vm251_vm6, %v2097_v29 }
0x206d   :  { %2693 = vmatpush.bf16.msra.mxu3 %v3057_v23 }
0x2071   :  { %2694 = vmatpush.bf16.msra.mxu3 %v3058_v45 }
0x2075   :  { %2695 = vmatpush.bf16.msra.mxu3 %v3776_v37 }
0x2079   :  { %2696 = vmatpush.bf16.msra.mxu3 %v3782_v59 }
0x20da   :  { %v2129_v3 = vpop.f32.mrf.mxu1 }
0x20e0   :  { %v2165_v0 = vpop.f32.mrf.mxu2 }
0x20e2   :  { %v2131_v2 = vpop.f32.mrf.mxu1 }
0x20e8   :  { %v2167_v24 = vpop.f32.mrf.mxu2 }
0x20ef   :  { %v2110_v31 = vpop.f32.mrf.mxu3 }
0x20f0   :  { %v2130_v61 = vadd.f32 %v2129_v3, %v2110_v31 }
0x20f2   :  { %2995 = vtanh.f32 %v2130_v61 }
0x20f7   :  { %v2112_v33 = vpop.f32.mrf.mxu3 }
0x20f8   :  { %v2996_v4 = vpop.eup %2995 }
0x20f9   :  { %2135 = vst.msk [vmem:[#allocation12 + $0x14] sm:$0xf] %vm664_vm11, %v2996_v4  ;;  %v2138_v25 = vpack.c.bf16 %v2996_v4, %v2996_v4 }
0x20fb   :  { %2838 = vmatmul.msk.bf16.vlgmr.msra.gmra.mxu0 %vm312_vm0, %v2138_v25 }
0x2178   :  { %v2151_v27 = vpop.f32.mrf.mxu0 }
0x2179   :  { %v2155_v15 = vadd.f32 %v2151_v27, %v2137_v26 }
0x217b   :  { %v2169_v37 = vadd.f32 %v2165_v0, %v2155_v15 }
0x217d   :  { %2997 = vtanh.f32 %v2169_v37  ;;  %v2840_v35 = vmul.f32 -1.442695, %v2169_v37 }
0x217f   :  { %2999 = vpow2.f32 %v2840_v35 }
0x2180   :  { %v2153_v59 = vpop.f32.mrf.mxu0 }
0x2183   :  { %v2998_v44 = vpop.eup %2997 }
0x2184   :  { %2192 = vrot.lane.b32.xlu2 %v2998_v44, %s3213_s3 }
0x2185   :  { %v3000_v7 = vpop.eup %2999 }
0x2186   :  { %v2173_v42 = vadd.f32 1.0, %v3000_v7 }
0x2188   :  { %3001 = vrcp.f32 %v2173_v42  ;;  %v2185_v17 = vand.u32 2147483648, %v2173_v42  ;;  %vm2179_vm15 = vweird.f32 %v2173_v42  ;;  %v2183_v40 = vand.u32 2147483647, %v2173_v42 }
0x218a   :  { %v2186_v58 = vor.u32 1.1754944e-38, %v2185_v17  ;;  %vm2184_vm2 = vcmp.eq.f32.partialorder %v2183_v40, 8.507059e+37 }
0x218e   :  { %v3002_v43 = vpop.eup %3001 }
0x218f   :  { %v2175_v52 = vmul.f32 %v3002_v43, %v2173_v42  ;;  %vm2180_vm14 = vweird.f32 %v3002_v43 }
0x2190   :  { %vm2181_vm1 = vmor %vm2179_vm15, %vm2180_vm14 }
0x2191   :  { %v2176_v48 = vsub.f32 1.0, %v2175_v52 }
0x2193   :  { %v2177_v50 = vmul.f32 %v3002_v43, %v2176_v48 }
0x2195   :  { %v2178_v51 = vadd.f32 %v3002_v43, %v2177_v50 }
0x2197   :  { %v2182_v36 = vsel %vm2181_vm1, %v3002_v43, %v2178_v51 }
0x2198   :  { %v2187_v32 = vsel %vm2184_vm2, %v2186_v58, %v2182_v36 }
0x2199   :  { %v2190_v55 = vmul.f32 %v2187_v32, %v3866_v56 }
0x21de   :  { %v2193_v53 = vpop.permute.xlu2 %2192 }
0x21df   :  { %v2195_v54 = vmul.f32 %v2193_v53, %v2187_v32 }
0x21e1   :  { %2197 = vrot.lane.b32.xlu1 %v2195_v54, %s3219_s8 }
0x2253   :  { %v2198_v60 = vpop.permute.xlu1 %2197 }
0x2254   :  { %v3956_v63 = vadd.f32 %v2198_v60, %v2190_v55 }
0x2256   :  { %3003 = vtanh.f32 %v3956_v63 }
0x225c   :  { %v3004_v34 = vpop.eup %3003 }
0x225d   :  { %2203 = vrot.lane.b32.xlu2 %v3004_v34, %s3213_s3 }
0x22b7   :  { %v2204_v5 = vpop.permute.xlu2 %2203 }
0x22b8   :  { %v3960_v41 = vmul.f32 %v2204_v5, %v2187_v32 }
0x22ba   :  { %v2211_v6 = vperm.slane %v3960_v41, 0  ;;  %v2210_v8 = vrot.slane %v3960_v41, 3  ;;  %v2208_v57 = vrot.slane %v3960_v41, 1  ;;  %v2209_v22 = vrot.slane %v3960_v41, 2 }
0x22bc   :  { %2215 = vrot.lane.b32.xlu1 %v2211_v6, %s3219_s8  ;;  %v2214_v56 = vperm.slane %v2210_v8, 0  ;;  %v2212_v9 = vperm.slane %v2208_v57, 0  ;;  %v2213_v46 = vperm.slane %v2209_v22, 0 }
0x22be   :  { %2221 = vrot.lane.b32.xlu0 %v2214_v56, %s3219_s8  ;;  %2217 = vrot.lane.b32.xlu2 %v2212_v9, %s3219_s8 }
0x22c4   :  { %2219 = vrot.lane.b32.xlu1 %v2213_v46, %s3219_s8 }
0x2318   :  { %v2218_v11 = vpop.permute.xlu2 %2217 }
0x2319   :  { %v2228_v12 = vmul.f32 %v2218_v11, %v3407_v14 }
0x231b   :  { %v2234_v13 = vsel %vm312_vm0, %v2228_v12, 0.0 }
0x231c   :  { %2235 = vadd.xlane.f32.xlu1 %v2234_v13 }
0x232e   :  { %v2216_v16 = vpop.permute.xlu1 %2215 }
0x232f   :  { %v2227_v18 = vmul.f32 %v2216_v16, %v3403_v10 }
0x2330   :  { %v2222_v21 = vpop.permute.xlu0 %2221 }
0x2331   :  { %v2231_v49 = vsel %vm312_vm0, %v2227_v18, 0.0  ;;  %v2230_v47 = vmul.f32 %v2222_v21, %v3413_v20 }
0x2332   :  { %2232 = vadd.xlane.f32.xlu2 %v2231_v49 }
0x2333   :  { %v2240_v45 = vsel %vm312_vm0, %v2230_v47, 0.0 }
0x2336   :  { %v2220_v1 = vpop.permute.xlu1 %2219 }
0x2337   :  { %v2229_v29 = vmul.f32 %v2220_v1, %v3411_v19 }
0x2339   :  { %v2237_v23 = vsel %vm312_vm0, %v2229_v29, 0.0 }
0x233a   :  { %2238 = vadd.xlane.f32.xlu0 %v2237_v23  ;;  %2241 = vadd.xlane.f32.xlu2 %v2240_v45 }
0x238f   :  { %v2236_v0 = vpop.xlane.xlu1 %2235 }
0x2390   :  { %v2248_v24 = vperm.slane %v2236_v0, %v3419_v30 }
0x23a5   :  { %v2233_v3 = vpop.xlane.xlu2 %2232 }
0x23a6   :  { %v2247_v2 = vperm.slane %v2233_v3, %v3419_v30 }
0x23a8   :  { %v2251_v25 = vsel %vm447_vm7, %v2248_v24, %v2247_v2 }
0x23ad   :  { %v2239_v31 = vpop.xlane.xlu0 %2238  ;;  %v2242_v61 = vpop.xlane.xlu2 %2241 }
0x23ae   :  { %v2249_v33 = vperm.slane %v2239_v31, %v3419_v30  ;;  %v2250_v4 = vperm.slane %v2242_v61, %v3419_v30 }
0x23b0   :  { %v2252_v26 = vsel %vm449_vm8, %v2249_v33, %v2251_v25 }
0x23b1   :  { %v2253_v27 = vsel %vm451_vm9, %v2250_v4, %v2252_v26 }
0x23b2   :  { %v2255_v15 = vsel %vm454_vm10, %v2253_v27, -inf }
0x23b3   :  { %2256 = vmax.xlane.f32.xlu1 %v2255_v15 }
0x2426   :  { %v2257_v37 = vpop.xlane.xlu1 %2256 }
0x2427   :  { %v2259_v59 = vperm.slane %v2257_v37, 0  ;;  %v2260_v44 = vperm.slane %v2257_v37, 1  ;;  %v2261_v35 = vperm.slane %v2257_v37, 2  ;;  %v2262_v7 = vperm.slane %v2257_v37, 3 }
0x2429   :  { %v2267_v42 = vsub.f32 %v2233_v3, %v2259_v59  ;;  %v2268_v43 = vsub.f32 %v2236_v0, %v2260_v44  ;;  %v2269_v52 = vsub.f32 %v2239_v31, %v2261_v35  ;;  %v2270_v17 = vsub.f32 %v2242_v61, %v2262_v7 }
0x242a   :  { %v2375_v0 = vpack.c.bf16 %v3960_v41, %v3960_v41 }
0x242b   :  { %v2271_v48 = vmul.f32 1.442695, %v2267_v42  ;;  %v2273_v50 = vmul.f32 1.442695, %v2268_v43  ;;  %v2275_v51 = vmul.f32 1.442695, %v2269_v52 }
0x242c   :  { %v2277_v40 = vmul.f32 1.442695, %v2270_v17 }
0x242d   :  { %3005 = vpow2.f32 %v2271_v48 }
0x242e   :  { %3007 = vpow2.f32 %v2273_v50 }
0x242f   :  { %3009 = vpow2.f32 %v2275_v51 }
0x2430   :  { %3011 = vpow2.f32 %v2277_v40 }
0x2433   :  { %v3006_v36 = vpop.eup %3005 }
0x2434   :  { %v3008_v58 = vpop.eup %3007  ;;  %2284 = vperm.xlu2 %2875, %v3006_v36  }
0x2435   :  { %v3010_v53 = vpop.eup %3009  ;;  %2287 = vperm.xlu1 %2874, %v3008_v58  }
0x2436   :  { %2290 = vperm.xlu0 %2873, %v3010_v53   ;;  %v3012_v32 = vpop.eup %3011 }
0x243c   :  { %2293 = vperm.xlu2 %2875, %v3012_v32  }
0x248e   :  { %v2285_v54 = vpop.permute.xlu2 %2284 }
0x248f   :  { %v2295_v34 = vperm.slane %v2285_v54, %v3419_v30 }
0x2496   :  { %v2294_v55 = vpop.permute.xlu2 %2293 }
0x2497   :  { %v2298_v57 = vperm.slane %v2294_v55, %v3419_v30 }
0x24a7   :  { %v2288_v60 = vpop.permute.xlu1 %2287 }
0x24a8   :  { %v2291_v5 = vpop.permute.xlu0 %2290  ;;  %v2296_v6 = vperm.slane %v2288_v60, %v3419_v30 }
0x24a9   :  { %v2297_v8 = vperm.slane %v2291_v5, %v3419_v30 }
0x24aa   :  { %v2299_v56 = vsel %vm447_vm7, %v2296_v6, %v2295_v34 }
0x24ab   :  { %v2300_v9 = vsel %vm449_vm8, %v2297_v8, %v2299_v56 }
0x24ac   :  { %v2301_v22 = vsel %vm451_vm9, %v2298_v57, %v2300_v9 }
0x24ad   :  { %v2303_v46 = vsel %vm454_vm10, %v2301_v22, 0.0 }
0x24ae   :  { %2304 = vadd.xlane.f32.xlu0 %v2303_v46 }
0x2521   :  { %v2305_v11 = vpop.xlane.xlu0 %2304 }
0x2522   :  { %3013 = vrcp.f32 %v2305_v11 }
0x2528   :  { %v3014_v12 = vpop.eup %3013 }
0x2529   :  { %v2307_v13 = vmul.f32 %v3014_v12, %v2305_v11 }
0x252b   :  { %v2308_v16 = vsub.f32 2.0, %v2307_v13 }
0x252d   :  { %v2309_v18 = vmul.f32 %v3014_v12, %v2308_v16 }
0x252f   :  { %v2312_v49 = vperm.slane %v2309_v18, 1  ;;  %v2311_v21 = vperm.slane %v2309_v18, 0  ;;  %v2314_v29 = vperm.slane %v2309_v18, 3  ;;  %v2313_v23 = vperm.slane %v2309_v18, 2 }
0x2531   :  { %v2320_v47 = vmul.f32 %v3008_v58, %v2312_v49  ;;  %v2319_v1 = vmul.f32 %v3006_v36, %v2311_v21  ;;  %v2322_v45 = vmul.f32 %v3012_v32, %v2314_v29  ;;  %v2321_v3 = vmul.f32 %v3010_v53, %v2313_v23 }
0x2533   :  { %2330 = vperm.xlu2 %2875, %v2320_v47   ;;  %2325 = vperm.xlu1 %2874, %v2319_v1  }
0x253b   :  { %2340 = vperm.xlu2 %2875, %v2322_v45   ;;  %2335 = vperm.xlu1 %2874, %v2321_v3  }
0x2543   :  { %2409 = vrot.lane.b32.xlu1 %v2375_v0, %s3219_s8 }
0x258d   :  { %v2331_v2 = vpop.permute.xlu2 %2330 }
0x258e   :  { %v2344_v31 = vmul.f32 %v3910_v38, %v2331_v2 }
0x2590   :  { %v2354_v33 = vsel %vm251_vm6, %v2344_v31, 0.0 }
0x2591   :  { %v2355_v25 = vrot.slane %v2354_v33, 4 }
0x2593   :  { %v2356_v15 = vadd.f32 %v2355_v25, %v2354_v33  ;;  %v2431_v33 = vld [vmem:[#allocation2 + $0x1c] sm:$0xf] }
0x2595   :  { %v2341_v24 = vpop.permute.xlu2 %2340  ;;  %v2357_v35 = vrot.slane %v2356_v15, 2 }
0x2596   :  { %v2346_v61 = vmul.f32 %v3916_v62, %v2341_v24 }
0x2597   :  { %v2358_v48 = vadd.f32 %v2357_v35, %v2356_v15 }
0x2598   :  { %v2368_v4 = vsel %vm251_vm6, %v2346_v61, 0.0 }
0x2599   :  { %v2369_v26 = vrot.slane %v2368_v4, 4  ;;  %v2359_v53 = vrot.slane %v2358_v48, 1 }
0x259b   :  { %v2370_v59 = vadd.f32 %v2369_v26, %v2368_v4  ;;  %v2360_v5 = vadd.f32 %v2359_v53, %v2358_v48 }
0x259d   :  { %v2371_v42 = vrot.slane %v2370_v59, 2  ;;  %v2377_v9 = vpack.c.bf16 %v2360_v5, %v2360_v5 }
0x259f   :  { %v2372_v17 = vadd.f32 %v2371_v42, %v2370_v59  ;;  %v2385_v13 = vunpack.c.l.b16 %v2377_v9 }
0x25a1   :  { %v2373_v54 = vrot.slane %v2372_v17, 1 }
0x25a3   :  { %v2374_v8 = vadd.f32 %v2373_v54, %v2372_v17 }
0x25a5   :  { %v2326_v27 = vpop.permute.xlu1 %2325  ;;  %v2379_v46 = vpack.c.bf16 %v2374_v8, %v2374_v8 }
0x25a6   :  { %v2343_v37 = vmul.f32 %v3924_v28, %v2326_v27 }
0x25a7   :  { %v2387_v18 = vunpack.c.l.b16 %v2379_v46 }
0x25a8   :  { %v2347_v41 = vsel %vm251_vm6, %v2343_v37, 0.0 }
0x25a9   :  { %v2348_v44 = vrot.slane %v2347_v41, 4 }
0x25ab   :  { %v2349_v7 = vadd.f32 %v2348_v44, %v2347_v41 }
0x25ad   :  { %v2350_v43 = vrot.slane %v2349_v7, 2  ;;  %v2336_v52 = vpop.permute.xlu1 %2335 }
0x25ae   :  { %v2345_v50 = vmul.f32 %v3931_v39, %v2336_v52 }
0x25af   :  { %v2351_v51 = vadd.f32 %v2350_v43, %v2349_v7 }
0x25b0   :  { %v2361_v40 = vsel %vm251_vm6, %v2345_v50, 0.0 }
0x25b1   :  { %v2352_v36 = vrot.slane %v2351_v51, 1  ;;  %v2362_v58 = vrot.slane %v2361_v40, 4 }
0x25b3   :  { %v2363_v32 = vadd.f32 %v2362_v58, %v2361_v40  ;;  %v2353_v55 = vadd.f32 %v2352_v36, %v2351_v51 }
0x25b5   :  { %v2364_v60 = vrot.slane %v2363_v32, 2  ;;  %v2410_v34 = vpop.permute.xlu1 %2409  ;;  %v2376_v57 = vpack.c.bf16 %v2353_v55, %v2353_v55 }
0x25b6   :  { %2842 = vmatmul.msk.bf16.vlgmr.msra.gmra.mxu1 %vm312_vm0, %v2410_v34  ;;  %2844 = vmatmul.msk.bf16.vlgmr.msra.gmra.mxu2 %vm312_vm0, %v2410_v34 }
0x25b7   :  { %v2365_v6 = vadd.f32 %v2364_v60, %v2363_v32  ;;  %v2384_v11 = vunpack.c.l.b16 %v2376_v57 }
0x25b9   :  { %v2366_v56 = vrot.slane %v2365_v6, 1  ;;  %v2388_v49 = vsel %vm447_vm7, %v2385_v13, %v2384_v11 }
0x25bb   :  { %v2367_v22 = vadd.f32 %v2366_v56, %v2365_v6 }
0x25bd   :  { %v2378_v12 = vpack.c.bf16 %v2367_v22, %v2367_v22 }
0x25bf   :  { %v2386_v16 = vunpack.c.l.b16 %v2378_v12 }
0x25c1   :  { %v2389_v21 = vsel %vm449_vm8, %v2386_v16, %v2388_v49 }
0x25c2   :  { %v2390_v47 = vsel %vm451_vm9, %v2387_v18, %v2389_v21 }
0x25c3   :  { %v2391_v1 = vpack.c.b16 %v2390_v47, %v2390_v47 }
0x25c5   :  { %2841 = vmatmul.msk.bf16.vlgmr.msrb.gmra.mxu3 %vm251_vm6, %v2391_v1 }
0x2633   :  { %v2423_v29 = vpop.f32.mrf.mxu1 }
0x2639   :  { %v2459_v23 = vpop.f32.mrf.mxu2 }
0x263b   :  { %v2425_v45 = vpop.f32.mrf.mxu1 }
0x2641   :  { %v2461_v3 = vpop.f32.mrf.mxu2 }
0x2648   :  { %v2404_v0 = vpop.f32.mrf.mxu3 }
0x2649   :  { %v2424_v2 = vadd.f32 %v2423_v29, %v2404_v0 }
0x264b   :  { %3015 = vtanh.f32 %v2424_v2 }
0x2650   :  { %v2406_v24 = vpop.f32.mrf.mxu3 }
0x2651   :  { %v3016_v31 = vpop.eup %3015 }
0x2652   :  { %2429 = vst.msk [vmem:[#allocation12 + $0x18] sm:$0xf] %vm664_vm11, %v3016_v31  ;;  %v2432_v61 = vpack.c.bf16 %v3016_v31, %v3016_v31 }
0x2654   :  { %2843 = vmatmul.msk.bf16.vlgmr.msrb.gmra.mxu0 %vm312_vm0, %v2432_v61 }
0x26d1   :  { %v2445_v4 = vpop.f32.mrf.mxu0 }
0x26d2   :  { %v2449_v25 = vadd.f32 %v2445_v4, %v2431_v33 }
0x26d4   :  { %v2463_v26 = vadd.f32 %v2459_v23, %v2449_v25 }
0x26d6   :  { %3017 = vtanh.f32 %v2463_v26  ;;  %v2845_v37 = vmul.f32 -1.442695, %v2463_v26 }
0x26d8   :  { %3019 = vpow2.f32 %v2845_v37 }
0x26d9   :  { %v2447_v27 = vpop.f32.mrf.mxu0 }
0x26dc   :  { %v3018_v15 = vpop.eup %3017 }
0x26dd   :  { %2486 = vrot.lane.b32.xlu2 %v3018_v15, %s3213_s3 }
0x26de   :  { %v3020_v59 = vpop.eup %3019 }
0x26df   :  { %v2467_v41 = vadd.f32 1.0, %v3020_v59 }
0x26e1   :  { %3021 = vrcp.f32 %v2467_v41  ;;  %v2479_v52 = vand.u32 2147483648, %v2467_v41  ;;  %vm2473_vm4 = vweird.f32 %v2467_v41  ;;  %v2477_v48 = vand.u32 2147483647, %v2467_v41 }
0x26e3   :  { %v2480_v51 = vor.u32 1.1754944e-38, %v2479_v52  ;;  %vm2478_vm12 = vcmp.eq.f32.partialorder %v2477_v48, 8.507059e+37 }
0x26e7   :  { %v3022_v44 = vpop.eup %3021 }
0x26e8   :  { %v2469_v35 = vmul.f32 %v3022_v44, %v2467_v41  ;;  %vm2474_vm3 = vweird.f32 %v3022_v44 }
0x26e9   :  { %vm2475_vm5 = vmor %vm2473_vm4, %vm2474_vm3 }
0x26ea   :  { %v2470_v7 = vsub.f32 1.0, %v2469_v35 }
0x26ec   :  { %v2471_v42 = vmul.f32 %v3022_v44, %v2470_v7 }
0x26ee   :  { %v2472_v43 = vadd.f32 %v3022_v44, %v2471_v42 }
0x26f0   :  { %v2476_v50 = vsel %vm2475_vm5, %v3022_v44, %v2472_v43 }
0x26f1   :  { %v2481_v40 = vsel %vm2478_vm12, %v2480_v51, %v2476_v50 }
0x26f2   :  { %v2484_v58 = vmul.f32 %v2481_v40, %v3956_v63 }
0x2737   :  { %v2487_v17 = vpop.permute.xlu2 %2486 }
0x2738   :  { %v2489_v36 = vmul.f32 %v2487_v17, %v2481_v40 }
0x273a   :  { %2491 = vrot.lane.b32.xlu1 %v2489_v36, %s3219_s8 }
0x27ac   :  { %v2492_v53 = vpop.permute.xlu1 %2491 }
0x27ad   :  { %v2494_v32 = vadd.f32 %v2492_v53, %v2484_v58 }
0x27af   :  { %3023 = vtanh.f32 %v2494_v32 }
0x27b5   :  { %v3024_v54 = vpop.eup %3023 }
0x27b6   :  { %2497 = vrot.lane.b32.xlu2 %v3024_v54, %s3213_s3 }
0x2810   :  { %v2498_v55 = vpop.permute.xlu2 %2497 }
0x2811   :  { %v4017_v60 = vmul.f32 %v2498_v55, %v2481_v40 }
0x2813   :  { %v2505_v34 = vperm.slane %v4017_v60, 0  ;;  %v2502_v5 = vrot.slane %v4017_v60, 1  ;;  %v2503_v63 = vrot.slane %v4017_v60, 2  ;;  %v2504_v8 = vrot.slane %v4017_v60, 3 }
0x2815   :  { %2509 = vrot.lane.b32.xlu1 %v2505_v34, %s3219_s8  ;;  %v2506_v6 = vperm.slane %v2502_v5, 0  ;;  %v2507_v57 = vperm.slane %v2503_v63, 0  ;;  %v2508_v56 = vperm.slane %v2504_v8, 0 }
0x2817   :  { %2511 = vrot.lane.b32.xlu2 %v2506_v6, %s3219_s8 }
0x281d   :  { %2513 = vrot.lane.b32.xlu1 %v2507_v57, %s3219_s8 }
0x281f   :  { %2515 = vrot.lane.b32.xlu2 %v2508_v56, %s3219_s8 }
0x2871   :  { %v2512_v9 = vpop.permute.xlu2 %2511 }
0x2872   :  { %v2522_v22 = vmul.f32 %v2512_v9, %v3407_v14 }
0x2874   :  { %v2528_v46 = vsel %vm312_vm0, %v2522_v22, 0.0 }
0x2875   :  { %2529 = vadd.xlane.f32.xlu1 %v2528_v46 }
0x2879   :  { %v2516_v16 = vpop.permute.xlu2 %2515 }
0x287a   :  { %v2524_v18 = vmul.f32 %v2516_v16, %v3413_v20 }
0x287c   :  { %v2534_v1 = vsel %vm312_vm0, %v2524_v18, 0.0  ;;  %v2669_v18 = vpack.c.bf16 %v4017_v60, %v4017_v60 }
0x2887   :  { %v2510_v11 = vpop.permute.xlu1 %2509 }
0x2888   :  { %v2521_v12 = vmul.f32 %v2510_v11, %v3403_v10 }
0x288a   :  { %v2525_v13 = vsel %vm312_vm0, %v2521_v12, 0.0 }
0x288b   :  { %2526 = vadd.xlane.f32.xlu0 %v2525_v13 }
0x288f   :  { %v2514_v49 = vpop.permute.xlu1 %2513 }
0x2890   :  { %v2523_v21 = vmul.f32 %v2514_v49, %v3411_v19 }
0x2892   :  { %v2531_v47 = vsel %vm312_vm0, %v2523_v21, 0.0 }
0x2893   :  { %2532 = vadd.xlane.f32.xlu2 %v2531_v47  ;;  %2535 = vadd.xlane.f32.xlu0 %v2534_v1 }
0x28e8   :  { %v2530_v29 = vpop.xlane.xlu1 %2529 }
0x28e9   :  { %v2542_v10 = vperm.slane %v2530_v29, %v3419_v30 }
0x28fe   :  { %v2527_v14 = vpop.xlane.xlu0 %2526 }
0x28ff   :  { %v2541_v23 = vperm.slane %v2527_v14, %v3419_v30 }
0x2901   :  { %v2545_v19 = vsel %vm447_vm7, %v2542_v10, %v2541_v23 }
0x2906   :  { %v2536_v45 = vpop.xlane.xlu0 %2535  ;;  %v2533_v3 = vpop.xlane.xlu2 %2532 }
0x2907   :  { %v2544_v0 = vperm.slane %v2536_v45, %v3419_v30  ;;  %v2543_v20 = vperm.slane %v2533_v3, %v3419_v30 }
0x2909   :  { %v2546_v2 = vsel %vm449_vm8, %v2543_v20, %v2545_v19 }
0x290a   :  { %v2547_v24 = vsel %vm451_vm9, %v2544_v0, %v2546_v2 }
0x290b   :  { %v2549_v31 = vsel %vm454_vm10, %v2547_v24, -inf }
0x290c   :  { %2550 = vmax.xlane.f32.xlu0 %v2549_v31 }
0x297f   :  { %v2551_v61 = vpop.xlane.xlu0 %2550 }
0x2980   :  { %v2553_v33 = vperm.slane %v2551_v61, 0  ;;  %v2555_v4 = vperm.slane %v2551_v61, 2  ;;  %v2556_v25 = vperm.slane %v2551_v61, 3  ;;  %v2554_v26 = vperm.slane %v2551_v61, 1 }
0x2982   :  { %v2561_v27 = vsub.f32 %v2527_v14, %v2553_v33  ;;  %v2563_v15 = vsub.f32 %v2533_v3, %v2555_v4  ;;  %v2564_v37 = vsub.f32 %v2536_v45, %v2556_v25  ;;  %v2562_v35 = vsub.f32 %v2530_v29, %v2554_v26 }
0x2984   :  { %v2565_v59 = vmul.f32 1.442695, %v2561_v27  ;;  %v2569_v41 = vmul.f32 1.442695, %v2563_v15  ;;  %v2571_v44 = vmul.f32 1.442695, %v2564_v37 }
0x2985   :  { %v2567_v7 = vmul.f32 1.442695, %v2562_v35 }
0x2986   :  { %3025 = vpow2.f32 %v2565_v59 }
0x2987   :  { %3027 = vpow2.f32 %v2569_v41 }
0x2988   :  { %3029 = vpow2.f32 %v2571_v44 }
0x2989   :  { %3031 = vpow2.f32 %v2567_v7 }
0x298c   :  { %v3026_v42 = vpop.eup %3025 }
0x298d   :  { %2578 = vperm.xlu0 %2873, %v3026_v42   ;;  %v3028_v43 = vpop.eup %3027 }
0x298e   :  { %v3030_v52 = vpop.eup %3029  ;;  %2584 = vperm.xlu1 %2874, %v3028_v43  }
0x298f   :  { %2587 = vperm.xlu2 %2875, %v3030_v52   ;;  %v3032_v48 = vpop.eup %3031 }
0x2995   :  { %2581 = vperm.xlu0 %2873, %v3032_v48  }
0x29e9   :  { %v2588_v17 = vpop.permute.xlu2 %2587 }
0x29ea   :  { %v2592_v32 = vperm.slane %v2588_v17, %v3419_v30 }
0x29ff   :  { %v2579_v50 = vpop.permute.xlu0 %2578 }
0x2a00   :  { %v2585_v51 = vpop.permute.xlu1 %2584  ;;  %v2589_v36 = vperm.slane %v2579_v50, %v3419_v30 }
0x2a01   :  { %v2591_v53 = vperm.slane %v2585_v51, %v3419_v30 }
0x2a07   :  { %v2582_v40 = vpop.permute.xlu0 %2581 }
0x2a08   :  { %v2590_v58 = vperm.slane %v2582_v40, %v3419_v30 }
0x2a0a   :  { %v2593_v54 = vsel %vm447_vm7, %v2590_v58, %v2589_v36 }
0x2a0b   :  { %v2594_v55 = vsel %vm449_vm8, %v2591_v53, %v2593_v54 }
0x2a0c   :  { %v2595_v34 = vsel %vm451_vm9, %v2592_v32, %v2594_v55 }
0x2a0d   :  { %v2597_v5 = vsel %vm454_vm10, %v2595_v34, 0.0 }
0x2a0e   :  { %2598 = vadd.xlane.f32.xlu0 %v2597_v5 }
0x2a81   :  { %v2599_v6 = vpop.xlane.xlu0 %2598 }
0x2a82   :  { %3033 = vrcp.f32 %v2599_v6 }
0x2a88   :  { %v3034_v63 = vpop.eup %3033 }
0x2a89   :  { %v2601_v8 = vmul.f32 %v3034_v63, %v2599_v6 }
0x2a8b   :  { %v2602_v57 = vsub.f32 2.0, %v2601_v8 }
0x2a8d   :  { %v2603_v56 = vmul.f32 %v3034_v63, %v2602_v57 }
0x2a8f   :  { %v2606_v9 = vperm.slane %v2603_v56, 1  ;;  %v2605_v22 = vperm.slane %v2603_v56, 0  ;;  %v2608_v30 = vperm.slane %v2603_v56, 3  ;;  %v2607_v12 = vperm.slane %v2603_v56, 2 }
0x2a91   :  { %v2614_v46 = vmul.f32 %v3032_v48, %v2606_v9  ;;  %v2613_v11 = vmul.f32 %v3026_v42, %v2605_v22  ;;  %v2616_v13 = vmul.f32 %v3030_v52, %v2608_v30  ;;  %v2615_v16 = vmul.f32 %v3028_v43, %v2607_v12 }
0x2a93   :  { %2624 = vperm.xlu1 %2874, %v2614_v46   ;;  %2619 = vperm.xlu2 %2875, %v2613_v11  }
0x2a9b   :  { %2634 = vperm.xlu1 %2874, %v2616_v13   ;;  %2629 = vperm.xlu2 %2875, %v2615_v16  }
0x2aa3   :  { %2703 = vrot.lane.b32.xlu2 %v2669_v18, %s3219_s8  ;;  %s2728_s8 = sshll.u32 %s3220_s10, 4  ;;  %s2729_s8 = int_to_ptr.vmem [resolvable:$true] %s2728_s8 }
0x2aed   :  { %v2620_v49 = vpop.permute.xlu2 %2619 }
0x2aee   :  { %v2637_v47 = vmul.f32 %v3924_v28, %v2620_v49 }
0x2af0   :  { %v2641_v14 = vsel %vm251_vm6, %v2637_v47, 0.0 }
0x2af1   :  { %v2642_v23 = vrot.slane %v2641_v14, 4 }
0x2af3   :  { %v2643_v3 = vadd.f32 %v2642_v23, %v2641_v14 }
0x2af5   :  { %v2630_v21 = vpop.permute.xlu2 %2629  ;;  %v2644_v19 = vrot.slane %v2643_v3, 2 }
0x2af6   :  { %v2639_v1 = vmul.f32 %v3931_v39, %v2630_v21 }
0x2af7   :  { %v2645_v39 = vadd.f32 %v2644_v19, %v2643_v3 }
0x2af8   :  { %v2655_v10 = vsel %vm251_vm6, %v2639_v1, 0.0 }
0x2af9   :  { %v2656_v45 = vrot.slane %v2655_v10, 4  ;;  %v2646_v26 = vrot.slane %v2645_v39, 1 }
0x2afb   :  { %v2657_v60 = vadd.f32 %v2656_v45, %v2655_v10 }
0x2afd   :  { %v2704_v29 = vpop.permute.xlu2 %2703  ;;  %v2658_v24 = vrot.slane %v2657_v60, 2 }
0x2afe   :  { %2847 = vmatmul.msk.bf16.vlgmr.msrb.gmra.mxu1 %vm312_vm0, %v2704_v29 }
0x2aff   :  { %v2659_v4 = vadd.f32 %v2658_v24, %v2657_v60 }
0x2b01   :  { %v2660_v41 = vrot.slane %v2659_v4, 1 }
0x2b03   :  { %v2661_v43 = vadd.f32 %v2660_v41, %v2659_v4 }
0x2b05   :  { %v2625_v0 = vpop.permute.xlu1 %2624  ;;  %v2672_v17 = vpack.c.bf16 %v2661_v43, %v2661_v43 }
0x2b06   :  { %v2638_v20 = vmul.f32 %v3910_v38, %v2625_v0  ;;  %v2647_v38 = vadd.f32 %v2646_v26, %v2645_v39 }
0x2b07   :  { %v2680_v53 = vunpack.c.l.b16 %v2672_v17 }
0x2b08   :  { %v2648_v2 = vsel %vm251_vm6, %v2638_v20, 0.0  ;;  %v2670_v52 = vpack.c.bf16 %v2647_v38, %v2647_v38 }
0x2b09   :  { %v2649_v28 = vrot.slane %v2648_v2, 4 }
0x2b0a   :  { %v2678_v40 = vunpack.c.l.b16 %v2670_v52 }
0x2b0b   :  { %v2650_v31 = vadd.f32 %v2649_v28, %v2648_v2 }
0x2b0d   :  { %v2651_v61 = vrot.slane %v2650_v31, 2  ;;  %v2635_v33 = vpop.permute.xlu1 %2634 }
0x2b0e   :  { %v2640_v25 = vmul.f32 %v3916_v62, %v2635_v33 }
0x2b0f   :  { %v2652_v27 = vadd.f32 %v2651_v61, %v2650_v31 }
0x2b10   :  { %v2662_v15 = vsel %vm251_vm6, %v2640_v25, 0.0 }
0x2b11   :  { %v2653_v37 = vrot.slane %v2652_v27, 1  ;;  %v2663_v59 = vrot.slane %v2662_v15, 4 }
0x2b13   :  { %v2654_v44 = vadd.f32 %v2653_v37, %v2652_v27  ;;  %v2664_v35 = vadd.f32 %v2663_v59, %v2662_v15 }
0x2b15   :  { %v2671_v7 = vpack.c.bf16 %v2654_v44, %v2654_v44  ;;  %v2665_v42 = vrot.slane %v2664_v35, 2 }
0x2b17   :  { %v2666_v48 = vadd.f32 %v2665_v42, %v2664_v35  ;;  %v2679_v50 = vunpack.c.l.b16 %v2671_v7 }
0x2b19   :  { %v2667_v51 = vrot.slane %v2666_v48, 1  ;;  %v2682_v36 = vsel %vm447_vm7, %v2679_v50, %v2678_v40 }
0x2b1a   :  { %v2683_v54 = vsel %vm449_vm8, %v2680_v53, %v2682_v36 }
0x2b1b   :  { %v2668_v62 = vadd.f32 %v2667_v51, %v2666_v48 }
0x2b1d   :  { %v2673_v58 = vpack.c.bf16 %v2668_v62, %v2668_v62 }
0x2b1f   :  { %v2681_v32 = vunpack.c.l.b16 %v2673_v58 }
0x2b21   :  { %v2684_v55 = vsel %vm451_vm9, %v2681_v32, %v2683_v54 }
0x2b22   :  { %v2685_v34 = vpack.c.b16 %v2684_v55, %v2684_v55 }
0x2b24   :  { %2846 = vmatmul.msk.bf16.vlgmr.msra.gmra.mxu3 %vm251_vm6, %v2685_v34 }
0x2b7b   :  { %v2717_v5 = vpop.f32.mrf.mxu1 }
0x2b83   :  { %v2719_v6 = vpop.f32.mrf.mxu1 }
0x2ba7   :  { %v2698_v63 = vpop.f32.mrf.mxu3 }
0x2ba8   :  { %v2718_v8 = vadd.f32 %v2717_v5, %v2698_v63 }
0x2baa   :  { %3035 = vtanh.f32 %v2718_v8 }
0x2baf   :  { %v2700_v57 = vpop.f32.mrf.mxu3 }
0x2bb0   :  { %v3036_v56 = vpop.eup %3035 }
0x2bb1   :  { %2723 = vst.msk [vmem:[#allocation12 + $0x1c] sm:$0xf] %vm664_vm11, %v3036_v56 }
0x2bb2   :  { %2736 = dma.vmem_to_hbm [thread:$0]  %s2729_s8, 512, %s2731_s13, [#allocation5], %s3213_s3, %s3213_s3, %s3214_s30  }
0x2bb3   :  { %3209 = dma.done.wait [#allocation5], 512  }
0x2bb4   :  { %3210 = vsyncadd [#allocation5], 4294966784 }
0x2bb5   :  { %2741 = vsyncpa [#allocation4], 1 }
0x2bb6   :  { %2742 = vsyncpa [#allocation7], 1 }
0x2bb7   :  { %2743 = vsyncpa [#allocation10], 1 }
0x2bb8   :  { %2744 = vsyncpa [#allocation5], 1 }

</bundles_post_ra>
